<compile_context>
chip_gen: v6e
topology: v6e:2x2x1
jax: 0.10.0
libtpu: 0.0.40
codegen_flags: <defaults>
</compile_context>

<pallas_src>
import functools

import jax
import jax.numpy as jnp
import numpy as np
from jax.experimental import pallas as pl
from jax.experimental.pallas import tpu as pltpu

NEG_SLOPE = 0.2      # LeakyReLU slope used by GraphAttentionLayer
MASK_BIG = 1e30      # finite "-inf" for masked (non-edge) logits


def _pick_row_tile(n):
    """Largest row tile in {512, 256, 128} dividing n whose per-tile working set
    (double-buffered int8 adj rows + f32 logit/prob temporaries + output block)
    stays well under the 32 MiB default scoped VMEM — and therefore also well
    under v7x's smaller 64 MiB physical VMEM. Falls back to one full block for
    small or non-divisible n (TODO(synk): pad N for arbitrary graph sizes)."""
    budget = 24 * 1024 * 1024
    for t in (512, 256, 128):
        if n % t == 0 and t * n * 14 <= budget:
            return t
    return n


# --------------------------- kernel 1: projection ----------------------------
def _proj_kernel(x_ref, w_ref, al_ref, ar_ref, g_ref, sl_ref, sr_ref,
                 *, n_heads, n_hidden):
    # g = x @ W on the MXU, accumulated in f32.
    g = jnp.dot(x_ref[...], w_ref[...], preferred_element_type=jnp.float32)  # [T, H*D]

    # Attention scalars on the VPU (one multiply over the whole [T, H*D] slab,
    # then a per-head lane reduction) — no tiny [T,8]x[8,1] MXU matmuls.
    prod_l = g * al_ref[...]          # al/ar pre-tiled to [1, H*D] in the wrapper
    prod_r = g * ar_ref[...]
    for h in range(n_heads):
        lo = h * n_hidden
        hi = lo + n_hidden
        sl_ref[:, h:h + 1] = jnp.sum(prod_l[:, lo:hi], axis=-1, keepdims=True)
        sr_ref[:, h:h + 1] = jnp.sum(prod_r[:, lo:hi], axis=-1, keepdims=True)

    # Store g in bf16: halves its resident VMEM footprint in the attention
    # kernel and feeds the MXU aggregation at bf16 rate.
    g_ref[...] = g.astype(g_ref.dtype)


# ---------------------- kernel 2: attention + aggregation --------------------
def _attn_kernel(sl_ref, srt_ref, g_ref, adj_ref, out_ref,
                 *, n_heads, n_hidden, is_concat, apply_elu):
    # Additive mask bias, computed ONCE per row tile (hoisted out of the head
    # loop). adj is int8 in {0,1}: edge -> 0.0 bias, non-edge -> -1e30.
    adjf = adj_ref[...].astype(jnp.float32)          # [T, N]
    bias = (adjf - 1.0) * MASK_BIG

    sl = sl_ref[...]                                  # [T, H]   f32
    srt = srt_ref[...]                                # [H, N]   f32 (resident)
    g = g_ref[...]                                    # [N, H*D] bf16 (resident)

    acc = None
    for h in range(n_heads):
        lo = h * n_hidden
        hi = lo + n_hidden
        # e[i, j] = LeakyReLU(g_i . a_l + g_j . a_r), masked to neighbours.
        e = sl[:, h:h + 1] + srt[h:h + 1, :]          # [T, N]
        e = jnp.where(e >= 0, e, NEG_SLOPE * e)       # LeakyReLU
        e = e + bias
        # softmax over neighbours j (axis=1); finite bias -> no inf-inf NaN.
        m = jnp.max(e, axis=1, keepdims=True)
        p = jnp.exp(e - m)
        inv = pl.reciprocal(jnp.sum(p, axis=1, keepdims=True), approx=True)  # EUP
        a = (p * inv).astype(jnp.bfloat16)
        # attention-weighted aggregation on the MXU (bf16 operands, f32 acc).
        agg = jnp.dot(a, g[:, lo:hi], preferred_element_type=jnp.float32)    # [T, D]
        if is_concat:
            res = agg
            if apply_elu:
                res = jnp.where(res > 0, res, jnp.exp(res) - 1.0)            # ELU
            # stream each head straight into its column slice of the output slab
            out_ref[:, lo:hi] = res.astype(out_ref.dtype)
        else:
            acc = agg if acc is None else acc + agg

    if not is_concat:
        res = acc * (1.0 / float(n_heads))            # mean over heads
        if apply_elu:
            res = jnp.where(res > 0, res, jnp.exp(res) - 1.0)
        out_ref[...] = res.astype(out_ref.dtype)


# ------------------------------- layer wrapper --------------------------------
def gat_layer(x, w, attn_w, adj_i8, *, n_heads, n_hidden, is_concat, apply_elu):
    n, f_in = x.shape
    hd = n_heads * n_hidden
    tile = _pick_row_tile(n)
    grid = (n // tile,)
    params = pltpu.CompilerParams(dimension_semantics=("parallel",))

    # attn weights (shared across heads, as in nn.Linear(2*D, 1)) tiled to [1, H*D]
    a_l = attn_w[:, :n_hidden]
    a_r = attn_w[:, n_hidden:]
    afull_l = jnp.tile(a_l, (1, n_heads))
    afull_r = jnp.tile(a_r, (1, n_heads))

    proj = functools.partial(_proj_kernel, n_heads=n_heads, n_hidden=n_hidden)
    g, sl, sr = pl.pallas_call(
        proj,
        out_shape=(jax.ShapeDtypeStruct((n, hd), jnp.bfloat16),
                   jax.ShapeDtypeStruct((n, n_heads), jnp.float32),
                   jax.ShapeDtypeStruct((n, n_heads), jnp.float32)),
        grid=grid,
        in_specs=[pl.BlockSpec((tile, f_in), lambda i: (i, 0)),
                  pl.BlockSpec((f_in, hd), lambda i: (0, 0)),
                  pl.BlockSpec((1, hd), lambda i: (0, 0)),
                  pl.BlockSpec((1, hd), lambda i: (0, 0))],
        out_specs=(pl.BlockSpec((tile, hd), lambda i: (i, 0)),
                   pl.BlockSpec((tile, n_heads), lambda i: (i, 0)),
                   pl.BlockSpec((tile, n_heads), lambda i: (i, 0))),
        compiler_params=params,
    )(x, w, afull_l, afull_r)

    # tiny [N, H] -> [H, N] transpose done by XLA between the two kernels so the
    # attention kernel can broadcast sr as a lane-dense row per head.
    sr_t = sr.T

    out_dim = hd if is_concat else n_hidden
    attn = functools.partial(_attn_kernel, n_heads=n_heads, n_hidden=n_hidden,
                             is_concat=is_concat, apply_elu=apply_elu)
    return pl.pallas_call(
        attn,
        out_shape=jax.ShapeDtypeStruct((n, out_dim), jnp.float32),
        grid=grid,
        in_specs=[pl.BlockSpec((tile, n_heads), lambda i: (i, 0)),
                  pl.BlockSpec((n_heads, n), lambda i: (0, 0)),
                  pl.BlockSpec((n, hd), lambda i: (0, 0)),
                  pl.BlockSpec((tile, n), lambda i: (i, 0))],
        out_specs=pl.BlockSpec((tile, out_dim), lambda i: (i, 0)),
        compiler_params=params,
    )(sl, sr_t, g, adj_i8)


def gat_forward(x, adj_mat, w1, attn1, w2, attn2, *, n_heads, d1, n_classes):
    """Full GAT forward (dropout = identity in eval mode)."""
    # int8 adjacency: 4x less DMA / VMEM than f32, same semantics (nonzero = edge).
    adj_i8 = (adj_mat[:, :, 0] != 0).astype(jnp.int8)
    h = gat_layer(x, w1, attn1, adj_i8,
                  n_heads=n_heads, n_hidden=d1, is_concat=True, apply_elu=True)
    return gat_layer(h, w2, attn2, adj_i8,
                     n_heads=1, n_hidden=n_classes, is_concat=False, apply_elu=False)


# ---------------- pure-JAX reference (mirrors the torch module, f32) ----------------
def _ref_layer(h, adj_mat, w, attn_w, n_heads, n_hidden, is_concat):
    n = h.shape[0]
    g = (h @ w).reshape(n, n_heads, n_hidden)
    a_l, a_r = attn_w[:, :n_hidden], attn_w[:, n_hidden:]
    sl = jnp.einsum('nhd,od->nh', g, a_l)
    sr = jnp.einsum('nhd,od->nh', g, a_r)
    e = sl[:, None, :] + sr[None, :, :]                     # [N, N, H]
    e = jnp.where(e >= 0, e, NEG_SLOPE * e)
    e = jnp.where(adj_mat != 0, e, -jnp.inf)                # adj [N, N, 1] broadcasts
    a = jax.nn.softmax(e, axis=1)
    res = jnp.einsum('ijh,jhf->ihf', a, g)
    if is_concat:
        return res.reshape(n, n_heads * n_hidden)
    return res.mean(axis=1)


def gat_ref(x, adj_mat, w1, attn1, w2, attn2, n_heads, d1, n_classes):
    h = _ref_layer(x, adj_mat, w1, attn1, n_heads, d1, True)
    h = jnp.where(h > 0, h, jnp.exp(h) - 1.0)               # ELU
    return _ref_layer(h, adj_mat, w2, attn2, 1, n_classes, False)


if __name__ == "__main__":
    # Small but non-trivial: N=1024 nodes -> TILE=512, grid=(2,) per pallas_call.
    N, IN_F, N_HIDDEN, N_CLASSES, N_HEADS = 1024, 32, 32, 8, 4
    D1 = N_HIDDEN // N_HEADS

    key = jax.random.PRNGKey(0)
    ks = jax.random.split(key, 6)
    x = jax.random.normal(ks[0], (N, IN_F), jnp.float32)
    adj2d = (jax.random.uniform(ks[1], (N, N)) < 0.1).astype(jnp.float32)
    adj2d = jnp.maximum(adj2d, jnp.eye(N, dtype=jnp.float32))  # ensure self-loops
    adj_mat = adj2d[:, :, None]                                # [N, N, 1] torch convention

    # Deterministic parameter init (shapes from GraphAttentionLayer.__init__).
    w1 = jax.random.normal(ks[2], (IN_F, N_HIDDEN), jnp.float32) * 0.3     # linear1 (no bias)
    attn1 = jax.random.normal(ks[3], (1, 2 * D1), jnp.float32) * 0.3       # attn1: Linear(2*D1, 1)
    w2 = jax.random.normal(ks[4], (N_HIDDEN, N_CLASSES), jnp.float32) * 0.3
    attn2 = jax.random.normal(ks[5], (1, 2 * N_CLASSES), jnp.float32) * 0.3

    out = gat_forward(x, adj_mat, w1, attn1, w2, attn2,
                      n_heads=N_HEADS, d1=D1, n_classes=N_CLASSES)
    out = jax.block_until_ready(out)

    ref = gat_ref(x, adj_mat, w1, attn1, w2, attn2, N_HEADS, D1, N_CLASSES)
    # tolerance relaxed vs. pure-f32 reference because the aggregation runs with
    # bf16 MXU operands (f32 accumulation), per the perf guidance.
    np.testing.assert_allclose(np.asarray(out), np.asarray(ref), rtol=5e-2, atol=2e-2)

    print("KERNEL_OK")
</pallas_src>

<mosaic_0001>
module attributes {stable_mosaic.version = 11 : i64} {
  func.func @_proj_kernel(%arg0: i32, %arg1: memref<512x32xf32, #tpu.memory_space<vmem>>, %arg2: memref<32x32xf32, #tpu.memory_space<vmem>>, %arg3: memref<1x32xf32, #tpu.memory_space<vmem>>, %arg4: memref<1x32xf32, #tpu.memory_space<vmem>>, %arg5: memref<512x32xbf16, #tpu.memory_space<vmem>>, %arg6: memref<512x4xf32, #tpu.memory_space<vmem>>, %arg7: memref<512x4xf32, #tpu.memory_space<vmem>>) attributes {dimension_semantics = [#tpu.dimension_semantics<parallel>], iteration_bounds = array<i64: 2>, scalar_prefetch = 0 : i64, scratch_operands = 0 : i64, tpu.core_type = #tpu.core_type<tc>, window_params = [{transform_indices = @transform_0, window_bounds = array<i64: 512, 32>}, {pipeline_mode = #tpu.pipeline_mode<synchronous>, transform_indices = @transform_1, window_bounds = array<i64: 32, 32>}, {pipeline_mode = #tpu.pipeline_mode<synchronous>, transform_indices = @transform_2, window_bounds = array<i64: 1, 32>}, {pipeline_mode = #tpu.pipeline_mode<synchronous>, transform_indices = @transform_3, window_bounds = array<i64: 1, 32>}, {transform_indices = @transform_4, window_bounds = array<i64: 512, 32>}, {transform_indices = @transform_5, window_bounds = array<i64: 512, 4>}, {transform_indices = @transform_6, window_bounds = array<i64: 512, 4>}]} {
    %c0 = arith.constant 0 : index
    %c0_0 = arith.constant 0 : index
    %0 = vector.load %arg1[%c0, %c0_0] : memref<512x32xf32, #tpu.memory_space<vmem>>, vector<512x32xf32>
    %c0_1 = arith.constant 0 : index
    %c0_2 = arith.constant 0 : index
    %1 = vector.load %arg2[%c0_1, %c0_2] : memref<32x32xf32, #tpu.memory_space<vmem>>, vector<32x32xf32>
    %cst = arith.constant dense<0.000000e+00> : vector<512x32xf32>
    %2 = tpu.matmul %0, %1, %cst {dimension_numbers = #tpu.dot_dimension_numbers<[1], [0], [0], [1], [0, 0, 1, 1], [], []>} : vector<512x32xf32>, vector<32x32xf32>, vector<512x32xf32> -> vector<512x32xf32>
    %c0_3 = arith.constant 0 : index
    %c0_4 = arith.constant 0 : index
    %3 = vector.load %arg3[%c0_3, %c0_4] : memref<1x32xf32, #tpu.memory_space<vmem>>, vector<1x32xf32>
    %4 = vector.broadcast %3 : vector<1x32xf32> to vector<512x32xf32>
    %5 = arith.mulf %2, %4 : vector<512x32xf32>
    %c0_5 = arith.constant 0 : index
    %c0_6 = arith.constant 0 : index
    %6 = vector.load %arg4[%c0_5, %c0_6] : memref<1x32xf32, #tpu.memory_space<vmem>>, vector<1x32xf32>
    %7 = vector.broadcast %6 : vector<1x32xf32> to vector<512x32xf32>
    %8 = arith.mulf %2, %7 : vector<512x32xf32>
    %9 = vector.extract_strided_slice %5 {offsets = [0, 0], sizes = [512, 8], strides = [1, 1]} : vector<512x32xf32> to vector<512x8xf32>
    %cst_7 = arith.constant dense<0.000000e+00> : vector<512xf32>
    %10 = vector.multi_reduction <add>, %9, %cst_7 [1] : vector<512x8xf32> to vector<512xf32>
    %11 = vector.shape_cast %10 : vector<512xf32> to vector<512x1xf32>
    %c0_8 = arith.constant 0 : index
    %c0_9 = arith.constant 0 : index
    %12 = vector.load %arg6[%c0_8, %c0_9] : memref<512x4xf32, #tpu.memory_space<vmem>>, vector<512x1xf32>
    tpu.vector_store %arg6[%c0_8, %c0_9], %11 {strides = array<i32>} : memref<512x4xf32, #tpu.memory_space<vmem>>, vector<512x1xf32>,
    %13 = vector.extract_strided_slice %8 {offsets = [0, 0], sizes = [512, 8], strides = [1, 1]} : vector<512x32xf32> to vector<512x8xf32>
    %cst_10 = arith.constant dense<0.000000e+00> : vector<512xf32>
    %14 = vector.multi_reduction <add>, %13, %cst_10 [1] : vector<512x8xf32> to vector<512xf32>
    %15 = vector.shape_cast %14 : vector<512xf32> to vector<512x1xf32>
    %c0_11 = arith.constant 0 : index
    %c0_12 = arith.constant 0 : index
    %16 = vector.load %arg7[%c0_11, %c0_12] : memref<512x4xf32, #tpu.memory_space<vmem>>, vector<512x1xf32>
    tpu.vector_store %arg7[%c0_11, %c0_12], %15 {strides = array<i32>} : memref<512x4xf32, #tpu.memory_space<vmem>>, vector<512x1xf32>,
    %17 = vector.extract_strided_slice %5 {offsets = [0, 8], sizes = [512, 8], strides = [1, 1]} : vector<512x32xf32> to vector<512x8xf32>
    %cst_13 = arith.constant dense<0.000000e+00> : vector<512xf32>
    %18 = vector.multi_reduction <add>, %17, %cst_13 [1] : vector<512x8xf32> to vector<512xf32>
    %19 = vector.shape_cast %18 : vector<512xf32> to vector<512x1xf32>
    %c0_14 = arith.constant 0 : index
    %c1 = arith.constant 1 : index
    %20 = vector.load %arg6[%c0_14, %c1] : memref<512x4xf32, #tpu.memory_space<vmem>>, vector<512x1xf32>
    tpu.vector_store %arg6[%c0_14, %c1], %19 {strides = array<i32>} : memref<512x4xf32, #tpu.memory_space<vmem>>, vector<512x1xf32>,
    %21 = vector.extract_strided_slice %8 {offsets = [0, 8], sizes = [512, 8], strides = [1, 1]} : vector<512x32xf32> to vector<512x8xf32>
    %cst_15 = arith.constant dense<0.000000e+00> : vector<512xf32>
    %22 = vector.multi_reduction <add>, %21, %cst_15 [1] : vector<512x8xf32> to vector<512xf32>
    %23 = vector.shape_cast %22 : vector<512xf32> to vector<512x1xf32>
    %c0_16 = arith.constant 0 : index
    %c1_17 = arith.constant 1 : index
    %24 = vector.load %arg7[%c0_16, %c1_17] : memref<512x4xf32, #tpu.memory_space<vmem>>, vector<512x1xf32>
    tpu.vector_store %arg7[%c0_16, %c1_17], %23 {strides = array<i32>} : memref<512x4xf32, #tpu.memory_space<vmem>>, vector<512x1xf32>,
    %25 = vector.extract_strided_slice %5 {offsets = [0, 16], sizes = [512, 8], strides = [1, 1]} : vector<512x32xf32> to vector<512x8xf32>
    %cst_18 = arith.constant dense<0.000000e+00> : vector<512xf32>
    %26 = vector.multi_reduction <add>, %25, %cst_18 [1] : vector<512x8xf32> to vector<512xf32>
    %27 = vector.shape_cast %26 : vector<512xf32> to vector<512x1xf32>
    %c0_19 = arith.constant 0 : index
    %c2 = arith.constant 2 : index
    %28 = vector.load %arg6[%c0_19, %c2] : memref<512x4xf32, #tpu.memory_space<vmem>>, vector<512x1xf32>
    tpu.vector_store %arg6[%c0_19, %c2], %27 {strides = array<i32>} : memref<512x4xf32, #tpu.memory_space<vmem>>, vector<512x1xf32>,
    %29 = vector.extract_strided_slice %8 {offsets = [0, 16], sizes = [512, 8], strides = [1, 1]} : vector<512x32xf32> to vector<512x8xf32>
    %cst_20 = arith.constant dense<0.000000e+00> : vector<512xf32>
    %30 = vector.multi_reduction <add>, %29, %cst_20 [1] : vector<512x8xf32> to vector<512xf32>
    %31 = vector.shape_cast %30 : vector<512xf32> to vector<512x1xf32>
    %c0_21 = arith.constant 0 : index
    %c2_22 = arith.constant 2 : index
    %32 = vector.load %arg7[%c0_21, %c2_22] : memref<512x4xf32, #tpu.memory_space<vmem>>, vector<512x1xf32>
    tpu.vector_store %arg7[%c0_21, %c2_22], %31 {strides = array<i32>} : memref<512x4xf32, #tpu.memory_space<vmem>>, vector<512x1xf32>,
    %33 = vector.extract_strided_slice %5 {offsets = [0, 24], sizes = [512, 8], strides = [1, 1]} : vector<512x32xf32> to vector<512x8xf32>
    %cst_23 = arith.constant dense<0.000000e+00> : vector<512xf32>
    %34 = vector.multi_reduction <add>, %33, %cst_23 [1] : vector<512x8xf32> to vector<512xf32>
    %35 = vector.shape_cast %34 : vector<512xf32> to vector<512x1xf32>
    %c0_24 = arith.constant 0 : index
    %c3 = arith.constant 3 : index
    %36 = vector.load %arg6[%c0_24, %c3] : memref<512x4xf32, #tpu.memory_space<vmem>>, vector<512x1xf32>
    tpu.vector_store %arg6[%c0_24, %c3], %35 {strides = array<i32>} : memref<512x4xf32, #tpu.memory_space<vmem>>, vector<512x1xf32>,
    %37 = vector.extract_strided_slice %8 {offsets = [0, 24], sizes = [512, 8], strides = [1, 1]} : vector<512x32xf32> to vector<512x8xf32>
    %cst_25 = arith.constant dense<0.000000e+00> : vector<512xf32>
    %38 = vector.multi_reduction <add>, %37, %cst_25 [1] : vector<512x8xf32> to vector<512xf32>
    %39 = vector.shape_cast %38 : vector<512xf32> to vector<512x1xf32>
    %c0_26 = arith.constant 0 : index
    %c3_27 = arith.constant 3 : index
    %40 = vector.load %arg7[%c0_26, %c3_27] : memref<512x4xf32, #tpu.memory_space<vmem>>, vector<512x1xf32>
    tpu.vector_store %arg7[%c0_26, %c3_27], %39 {strides = array<i32>} : memref<512x4xf32, #tpu.memory_space<vmem>>, vector<512x1xf32>,
    %41 = arith.truncf %2 : vector<512x32xf32> to vector<512x32xbf16>
    %c0_28 = arith.constant 0 : index
    %c0_29 = arith.constant 0 : index
    %42 = vector.load %arg5[%c0_28, %c0_29] : memref<512x32xbf16, #tpu.memory_space<vmem>>, vector<512x32xbf16>
    tpu.vector_store %arg5[%c0_28, %c0_29], %41 {strides = array<i32>} : memref<512x32xbf16, #tpu.memory_space<vmem>>, vector<512x32xbf16>,
    return
  }
  func.func @transform_0(%arg0: i32) -> (i32, i32) {
    %c0_i32 = arith.constant 0 : i32
    %c0_i32_0 = arith.constant 0 : i32
    return %arg0, %c0_i32 : i32, i32
  }
  func.func @transform_1(%arg0: i32) -> (i32, i32) {
    %c0_i32 = arith.constant 0 : i32
    %c0_i32_0 = arith.constant 0 : i32
    %c0_i32_1 = arith.constant 0 : i32
    return %c0_i32, %c0_i32_0 : i32, i32
  }
  func.func @transform_2(%arg0: i32) -> (i32, i32) {
    %c0_i32 = arith.constant 0 : i32
    %c0_i32_0 = arith.constant 0 : i32
    %c0_i32_1 = arith.constant 0 : i32
    return %c0_i32, %c0_i32_0 : i32, i32
  }
  func.func @transform_3(%arg0: i32) -> (i32, i32) {
    %c0_i32 = arith.constant 0 : i32
    %c0_i32_0 = arith.constant 0 : i32
    %c0_i32_1 = arith.constant 0 : i32
    return %c0_i32, %c0_i32_0 : i32, i32
  }
  func.func @transform_4(%arg0: i32) -> (i32, i32) {
    %c0_i32 = arith.constant 0 : i32
    %c0_i32_0 = arith.constant 0 : i32
    return %arg0, %c0_i32 : i32, i32
  }
  func.func @transform_5(%arg0: i32) -> (i32, i32) {
    %c0_i32 = arith.constant 0 : i32
    %c0_i32_0 = arith.constant 0 : i32
    return %arg0, %c0_i32 : i32, i32
  }
  func.func @transform_6(%arg0: i32) -> (i32, i32) {
    %c0_i32 = arith.constant 0 : i32
    %c0_i32_0 = arith.constant 0 : i32
    return %arg0, %c0_i32 : i32, i32
  }
}

</mosaic_0001>

<bundles_post_ra>
// kernel: tpu_custom_call.1
= control target key start
LH: loop header
LB: loop body
LE: loop exit
PB: predicated region body
PF: predicated region fallthrough
CT: control target
= control target key end

     0   :  { %s5296_s21 = smov 0   ;;  %s8794_s0 = inlined_call_operand.vmem [shape: f32[1024,32], index: 0, kind: input, shape index: {}]   ;;  %s8795_s1 = inlined_call_operand.vmem [shape: f32[32,32], index: 1, kind: input, shape index: {}]   ;;  %s8796_s2 = inlined_call_operand.vmem [shape: f32[1,32], index: 2, kind: input, shape index: {}]   ;;  %s8797_s3 = inlined_call_operand.vmem [shape: f32[1,32], index: 3, kind: input, shape index: {}]   ;;  %s8798_s4 = inlined_call_operand.vmem [shape: bf16[1024,32], index: 4, kind: output, shape index: {0}]   ;;  %s8799_s5 = inlined_call_operand.vmem [shape: f32[1024,4], index: 5, kind: output, shape index: {1}]   ;;  %s8800_s6 = inlined_call_operand.vmem [shape: f32[1024,4], index: 6, kind: output, shape index: {2}]  }
   0x1 LB: > { %s4848_s22 = sadd.s32 4294967295, %s5256_s21   ;;  %p4852_p0 = scmp.ge.s32.totalorder %s5256_s21, 1  ;;  %s5256_s21 = sphi %s5296_s21, %s17_s21  }
   0x2   : > { %p218_p1 = scmp.lt.s32.totalorder %s5256_s21, 3 }
   0x4   : > { %p219_p2 = pnand %p4852_p0, %p218_p1 }
   0x6   : > { %222 = sbr.rel (%p219_p2) target bundleno = 2415 (0x96f), region = 36 }
   0xb   : > { %v349_v0 = vld [vmem:[%s8795_s1 + $0x18] sm:$0xff]  ;;  %v348_v1 = vld [vmem:[%s8795_s1 + $0x10] sm:$0xff]  ;;  %s4853_s27 = sshll.u32 %s4848_s22, 6  ;;  %v347_v2 = vld [vmem:[%s8795_s1 + $0x8] sm:$0xff]  ;;  %vm350_vm0 = vcmask 261120   ;;  %vm4659_vm1 = vcmask 257024  }
   0xc   : > { %5125 = vmatprep.subr.mxu0 %v349_v0  ;;  %5229 = vmatprep.subr.mxu1 %v349_v0  ;;  %p259_p3 = scmp.lt.s32.totalorder %s4853_s27, 127  ;;  %v346_v3 = vld [vmem:[%s8795_s1] sm:$0xff]  ;;  %vm1070_vm2 = vcmask 64512   ;;  %vm1263_vm3 = vcmask 7168   ;;  %s5258_s7 = smov 120   ;;  %vm2032_vm4 = vcmask 15368  }
   0xd   : > { %5126 = vmatpush3.msra.mxu0 %v349_v0  ;;  %5233 = vmatpush3.msra.mxu1 %v349_v0  ;;  %vm2993_vm5 = vcmask 23568   ;;  %s5260_s9 = smov 104   ;;  %vm3890_vm6 = vcmask 31768  }
   0xe   : > { %5127 = vmatprep.subr.mxu0 %v348_v1  ;;  %5230 = vmatprep.subr.mxu1 %v348_v1  ;;  %s9349_s27 = smov (!%p259_p3, %s4853_s27), 127 }
   0xf   : > { %5128 = vmatpush3.msra.mxu0 %v348_v1  ;;  %5234 = vmatpush3.msra.mxu1 %v348_v1  ;;  %s5319_s8 = sshll.u32 %s9349_s27, 3  ;;  %s4856_s12 = sshll.u32 %s9349_s27, 2 }
  0x10   : > { %5129 = vmatprep.subr.mxu0 %v347_v2  ;;  %5231 = vmatprep.subr.mxu1 %v347_v2  ;;  %s5325_s11 = scalar_lea.vmem %s8794_s0, %s5319_s8  ;;  %s5464_s17 = scalar_lea.vmem %s8798_s4, %s4856_s12 }
  0x11   : > { %5130 = vmatpush3.msra.mxu0 %v347_v2  ;;  %5235 = vmatpush3.msra.mxu1 %v347_v2  ;;  %v282_v4 = vld [vmem:[%s5325_s11] sm:$0xff]  ;;  %v283_v6 = vld [vmem:[%s5325_s11 + $0x8] sm:$0xff]  ;;  %v284_v8 = vld [vmem:[%s5325_s11 + $0x10] sm:$0xff]  ;;  %s6257_s23 = scalar_lea.vmem %s8799_s5, %s5319_s8  ;;  %s6279_s26 = scalar_lea.vmem %s8800_s6, %s5319_s8 }
  0x12   : > { %5131 = vmatprep.subr.mxu0 %v346_v3  ;;  %5232 = vmatprep.subr.mxu1 %v346_v3  ;;  %v314_v5 = vld [vmem:[%s5325_s11 + $0x100] sm:$0xff]  ;;  %v315_v7 = vld [vmem:[%s5325_s11 + $0x108] sm:$0xff]  ;;  %v316_v9 = vld [vmem:[%s5325_s11 + $0x110] sm:$0xff]  ;;  %s5259_s8 = smov 112  }
  0x13   : > { %5132 = vmatpush3.msra.mxu0 %v346_v3  ;;  %5236 = vmatpush3.msra.mxu1 %v346_v3  ;;  %v285_v10 = vld [vmem:[%s5325_s11 + $0x18] sm:$0xff]  ;;  %v286_v12 = vld [vmem:[%s5325_s11 + $0x20] sm:$0xff]  ;;  %v287_v14 = vld [vmem:[%s5325_s11 + $0x28] sm:$0xff] }
  0x14   : > { %5133 = vmatprep.mubr.msk.f32.mxu0 %vm350_vm0, %v282_v4  ;;  %5181 = vmatprep.mubr.msk.f32.mxu1 %vm350_vm0, %v314_v5  ;;  %v317_v11 = vld [vmem:[%s5325_s11 + $0x118] sm:$0xff]  ;;  %v318_v13 = vld [vmem:[%s5325_s11 + $0x120] sm:$0xff]  ;;  %v319_v15 = vld [vmem:[%s5325_s11 + $0x128] sm:$0xff] }
  0x15   : > { %5134 = vmatmul.mubr.msk.f32.vlgmr.msra.gmra.mxu0 %vm350_vm0, %v283_v6  ;;  %5182 = vmatmul.mubr.msk.f32.vlgmr.msra.gmra.mxu1 %vm350_vm0, %v315_v7  ;;  %v288_v16 = vld [vmem:[%s5325_s11 + $0x30] sm:$0xff]  ;;  %v289_v18 = vld [vmem:[%s5325_s11 + $0x38] sm:$0xff]  ;;  %v290_v20 = vld [vmem:[%s5325_s11 + $0x40] sm:$0xff] }
  0x16   : > { %5136 = vmatprep.mubr.msk.f32.mxu0 %vm350_vm0, %v284_v8  ;;  %5184 = vmatprep.mubr.msk.f32.mxu1 %vm350_vm0, %v316_v9  ;;  %v320_v17 = vld [vmem:[%s5325_s11 + $0x130] sm:$0xff]  ;;  %v321_v19 = vld [vmem:[%s5325_s11 + $0x138] sm:$0xff]  ;;  %v322_v21 = vld [vmem:[%s5325_s11 + $0x140] sm:$0xff] }
  0x17   : > { %v291_v22 = vld [vmem:[%s5325_s11 + $0x48] sm:$0xff]  ;;  %v292_v24 = vld [vmem:[%s5325_s11 + $0x50] sm:$0xff]  ;;  %v293_v26 = vld [vmem:[%s5325_s11 + $0x58] sm:$0xff] }
  0x18   : > { %v323_v23 = vld [vmem:[%s5325_s11 + $0x148] sm:$0xff]  ;;  %v324_v25 = vld [vmem:[%s5325_s11 + $0x150] sm:$0xff]  ;;  %v325_v27 = vld [vmem:[%s5325_s11 + $0x158] sm:$0xff] }
  0x19   : > { %5137 = vmatmul.mubr.msk.f32.gmra.mxu0 %vm350_vm0, %v285_v10  ;;  %5185 = vmatmul.mubr.msk.f32.gmra.mxu1 %vm350_vm0, %v317_v11  ;;  %v294_v28 = vld [vmem:[%s5325_s11 + $0x60] sm:$0xff]  ;;  %v295_v30 = vld [vmem:[%s5325_s11 + $0x68] sm:$0xff]  ;;  %v296_v32 = vld [vmem:[%s5325_s11 + $0x70] sm:$0xff] }
  0x1a   : > { %5139 = vmatprep.mubr.msk.f32.mxu0 %vm350_vm0, %v286_v12  ;;  %5187 = vmatprep.mubr.msk.f32.mxu1 %vm350_vm0, %v318_v13  ;;  %v326_v29 = vld [vmem:[%s5325_s11 + $0x160] sm:$0xff]  ;;  %v327_v31 = vld [vmem:[%s5325_s11 + $0x168] sm:$0xff]  ;;  %v328_v33 = vld [vmem:[%s5325_s11 + $0x170] sm:$0xff] }
  0x1b   : > { %v297_v34 = vld [vmem:[%s5325_s11 + $0x78] sm:$0xff]  ;;  %v298_v36 = vld [vmem:[%s5325_s11 + $0x80] sm:$0xff]  ;;  %v299_v38 = vld [vmem:[%s5325_s11 + $0x88] sm:$0xff] }
  0x1c   : > { %v329_v35 = vld [vmem:[%s5325_s11 + $0x178] sm:$0xff]  ;;  %v330_v37 = vld [vmem:[%s5325_s11 + $0x180] sm:$0xff]  ;;  %v331_v39 = vld [vmem:[%s5325_s11 + $0x188] sm:$0xff] }
  0x1d   : > { %5140 = vmatmul.mubr.msk.f32.gmra.mxu0 %vm350_vm0, %v287_v14  ;;  %5188 = vmatmul.mubr.msk.f32.gmra.mxu1 %vm350_vm0, %v319_v15  ;;  %v300_v40 = vld [vmem:[%s5325_s11 + $0x90] sm:$0xff]  ;;  %v301_v42 = vld [vmem:[%s5325_s11 + $0x98] sm:$0xff]  ;;  %v302_v44 = vld [vmem:[%s5325_s11 + $0xa0] sm:$0xff] }
  0x1e   : > { %5142 = vmatprep.mubr.msk.f32.mxu0 %vm350_vm0, %v288_v16  ;;  %5190 = vmatprep.mubr.msk.f32.mxu1 %vm350_vm0, %v320_v17  ;;  %v332_v41 = vld [vmem:[%s5325_s11 + $0x190] sm:$0xff]  ;;  %v333_v43 = vld [vmem:[%s5325_s11 + $0x198] sm:$0xff]  ;;  %v334_v45 = vld [vmem:[%s5325_s11 + $0x1a0] sm:$0xff] }
  0x1f   : > { %v303_v46 = vld [vmem:[%s5325_s11 + $0xa8] sm:$0xff]  ;;  %v304_v48 = vld [vmem:[%s5325_s11 + $0xb0] sm:$0xff]  ;;  %v305_v50 = vld [vmem:[%s5325_s11 + $0xb8] sm:$0xff] }
  0x20   : > { %v335_v47 = vld [vmem:[%s5325_s11 + $0x1a8] sm:$0xff]  ;;  %v336_v49 = vld [vmem:[%s5325_s11 + $0x1b0] sm:$0xff]  ;;  %v337_v51 = vld [vmem:[%s5325_s11 + $0x1b8] sm:$0xff] }
  0x21   : > { %5143 = vmatmul.mubr.msk.f32.gmra.mxu0 %vm350_vm0, %v289_v18  ;;  %5191 = vmatmul.mubr.msk.f32.gmra.mxu1 %vm350_vm0, %v321_v19  ;;  %v306_v52 = vld [vmem:[%s5325_s11 + $0xc0] sm:$0xff]  ;;  %v307_v54 = vld [vmem:[%s5325_s11 + $0xc8] sm:$0xff]  ;;  %v308_v56 = vld [vmem:[%s5325_s11 + $0xd0] sm:$0xff] }
  0x22   : > { %5145 = vmatprep.mubr.msk.f32.mxu0 %vm350_vm0, %v290_v20  ;;  %5193 = vmatprep.mubr.msk.f32.mxu1 %vm350_vm0, %v322_v21  ;;  %v338_v53 = vld [vmem:[%s5325_s11 + $0x1c0] sm:$0xff]  ;;  %v339_v55 = vld [vmem:[%s5325_s11 + $0x1c8] sm:$0xff]  ;;  %v309_v57 = vld [vmem:[%s5325_s11 + $0xd8] sm:$0xff] }
  0x23   : > { %v340_v58 = vld [vmem:[%s5325_s11 + $0x1d0] sm:$0xff]  ;;  %v341_v59 = vld [vmem:[%s5325_s11 + $0x1d8] sm:$0xff]  ;;  %v310_v60 = vld [vmem:[%s5325_s11 + $0xe0] sm:$0xff] }
  0x24   : > { %v311_v61 = vld [vmem:[%s5325_s11 + $0xe8] sm:$0xff]  ;;  %v342_v62 = vld [vmem:[%s5325_s11 + $0x1e0] sm:$0xff]  ;;  %v312_v0 = vld [vmem:[%s5325_s11 + $0xf0] sm:$0xff] }
  0x25   : > { %5146 = vmatmul.mubr.msk.f32.gmra.mxu0 %vm350_vm0, %v291_v22  ;;  %5194 = vmatmul.mubr.msk.f32.gmra.mxu1 %vm350_vm0, %v323_v23  ;;  %v343_v63 = vld [vmem:[%s5325_s11 + $0x1e8] sm:$0xff]  ;;  %v313_v1 = vld [vmem:[%s5325_s11 + $0xf8] sm:$0xff]  ;;  %v344_v2 = vld [vmem:[%s5325_s11 + $0x1f0] sm:$0xff] }
  0x26   : > { %5148 = vmatprep.mubr.msk.f32.mxu0 %vm350_vm0, %v292_v24  ;;  %5196 = vmatprep.mubr.msk.f32.mxu1 %vm350_vm0, %v324_v25  ;;  %v345_v3 = vld [vmem:[%s5325_s11 + $0x1f8] sm:$0xff]  ;;  %v5459_v4 = vld [vmem:[%s8796_s2] ss:$0 sm:$0xff] }
  0x27   : > { %v5469_v6 = vld [vmem:[%s8797_s3] ss:$0 sm:$0xff] }
  0x29   : > { %5149 = vmatmul.mubr.msk.f32.gmra.mxu0 %vm350_vm0, %v293_v26  ;;  %5197 = vmatmul.mubr.msk.f32.gmra.mxu1 %vm350_vm0, %v325_v27 }
  0x2a   : > { %5151 = vmatprep.mubr.msk.f32.mxu0 %vm350_vm0, %v294_v28  ;;  %5199 = vmatprep.mubr.msk.f32.mxu1 %vm350_vm0, %v326_v29 }
  0x2d   : > { %5152 = vmatmul.mubr.msk.f32.gmra.mxu0 %vm350_vm0, %v295_v30  ;;  %5200 = vmatmul.mubr.msk.f32.gmra.mxu1 %vm350_vm0, %v327_v31 }
  0x2e   : > { %5154 = vmatprep.mubr.msk.f32.mxu0 %vm350_vm0, %v296_v32  ;;  %5202 = vmatprep.mubr.msk.f32.mxu1 %vm350_vm0, %v328_v33 }
  0x31   : > { %5155 = vmatmul.mubr.msk.f32.gmra.mxu0 %vm350_vm0, %v297_v34  ;;  %5203 = vmatmul.mubr.msk.f32.gmra.mxu1 %vm350_vm0, %v329_v35 }
  0x32   : > { %5157 = vmatprep.mubr.msk.f32.mxu0 %vm350_vm0, %v298_v36  ;;  %5205 = vmatprep.mubr.msk.f32.mxu1 %vm350_vm0, %v330_v37 }
  0x35   : > { %5158 = vmatmul.mubr.msk.f32.gmra.mxu0 %vm350_vm0, %v299_v38  ;;  %5206 = vmatmul.mubr.msk.f32.gmra.mxu1 %vm350_vm0, %v331_v39 }
  0x36   : > { %5160 = vmatprep.mubr.msk.f32.mxu0 %vm350_vm0, %v300_v40  ;;  %5208 = vmatprep.mubr.msk.f32.mxu1 %vm350_vm0, %v332_v41 }
  0x39   : > { %5161 = vmatmul.mubr.msk.f32.gmra.mxu0 %vm350_vm0, %v301_v42  ;;  %5209 = vmatmul.mubr.msk.f32.gmra.mxu1 %vm350_vm0, %v333_v43 }
  0x3a   : > { %5163 = vmatprep.mubr.msk.f32.mxu0 %vm350_vm0, %v302_v44  ;;  %5211 = vmatprep.mubr.msk.f32.mxu1 %vm350_vm0, %v334_v45 }
  0x3d   : > { %5164 = vmatmul.mubr.msk.f32.gmra.mxu0 %vm350_vm0, %v303_v46  ;;  %5212 = vmatmul.mubr.msk.f32.gmra.mxu1 %vm350_vm0, %v335_v47 }
  0x3e   : > { %5166 = vmatprep.mubr.msk.f32.mxu0 %vm350_vm0, %v304_v48  ;;  %5214 = vmatprep.mubr.msk.f32.mxu1 %vm350_vm0, %v336_v49 }
  0x41   : > { %5167 = vmatmul.mubr.msk.f32.gmra.mxu0 %vm350_vm0, %v305_v50  ;;  %5215 = vmatmul.mubr.msk.f32.gmra.mxu1 %vm350_vm0, %v337_v51 }
  0x42   : > { %5169 = vmatprep.mubr.msk.f32.mxu0 %vm350_vm0, %v306_v52  ;;  %5217 = vmatprep.mubr.msk.f32.mxu1 %vm350_vm0, %v338_v53 }
  0x45   : > { %5170 = vmatmul.mubr.msk.f32.gmra.mxu0 %vm350_vm0, %v307_v54  ;;  %5218 = vmatmul.mubr.msk.f32.gmra.mxu1 %vm350_vm0, %v339_v55 }
  0x46   : > { %5172 = vmatprep.mubr.msk.f32.mxu0 %vm350_vm0, %v308_v56  ;;  %5220 = vmatprep.mubr.msk.f32.mxu1 %vm350_vm0, %v340_v58 }
  0x49   : > { %5173 = vmatmul.mubr.msk.f32.gmra.mxu0 %vm350_vm0, %v309_v57  ;;  %5221 = vmatmul.mubr.msk.f32.gmra.mxu1 %vm350_vm0, %v341_v59 }
  0x4a   : > { %5175 = vmatprep.mubr.msk.f32.mxu0 %vm350_vm0, %v310_v60  ;;  %5223 = vmatprep.mubr.msk.f32.mxu1 %vm350_vm0, %v342_v62 }
  0x4d   : > { %5176 = vmatmul.mubr.msk.f32.gmra.mxu0 %vm350_vm0, %v311_v61  ;;  %5224 = vmatmul.mubr.msk.f32.gmra.mxu1 %vm350_vm0, %v343_v63 }
  0x4e   : > { %5178 = vmatprep.mubr.msk.f32.mxu0 %vm350_vm0, %v312_v0  ;;  %5226 = vmatprep.mubr.msk.f32.mxu1 %vm350_vm0, %v344_v2 }
  0x51   : > { %5179 = vmatmul.mubr.msk.f32.gmra.mxu0 %vm350_vm0, %v313_v1  ;;  %5227 = vmatmul.mubr.msk.f32.gmra.mxu1 %vm350_vm0, %v345_v3 }
  0xd5   : > { %v5135_v5 = vpop.f32.mrf.mxu0  ;;  %v5183_v7 = vpop.f32.mrf.mxu1 }
  0xd6   : > { %v5472_v8 = vmul.f32 %v5135_v5, %v5459_v4  ;;  %v4994_v9 = vpack.c.bf16 %v5135_v5, %v5135_v5  ;;  %v5475_v10 = vmul.f32 %v5183_v7, %v5459_v4  ;;  %v5026_v11 = vpack.c.bf16 %v5183_v7, %v5183_v7 }
  0xd7   : > { %v609_v12 = vpop.f32.mrf.mxu0  ;;  %v769_v13 = vpop.f32.mrf.mxu1  ;;  %v5478_v14 = vmul.f32 %v5135_v5, %v5469_v6  ;;  %v5502_v25 = vmul.f32 %v5183_v7, %v5469_v6 }
  0xd8   : > { %8995 = vst [vmem:[#allocation2_spill] sm:$0xff] %v5475_v10  ;;  %4661 = vst.msk [vmem:[%s5464_s17 + $0x4] sm:$0xf] %vm4659_vm1, %v4994_v9  ;;  %v4993_v15 = vpack.c.bf16 %v609_v12, %v609_v12  ;;  %v5485_v16 = vmul.f32 %v5459_v4, %v609_v12  ;;  %v5025_v17 = vpack.c.bf16 %v769_v13, %v769_v13  ;;  %v1170_v18 = vsel %vm1070_vm2, %v5475_v10, 0.0 }
  0xd9   : > { %8996 = vst [vmem:[#allocation3_spill] sm:$0xff] %v5478_v14  ;;  %4693 = vst.msk [vmem:[%s5464_s17 + $0x84] sm:$0xf] %vm4659_vm1, %v5026_v11  ;;  %v1074_v19 = vsel %vm1070_vm2, %v5472_v8, 0.0  ;;  %v5138_v20 = vpop.f32.mrf.mxu0  ;;  %v5491_v21 = vpop.f32.mrf.mxu1  ;;  %1171 = vadd.xlane.f32.xlu1 %v1170_v18  ;;  %v5505_v26 = vmul.f32 %v5459_v4, %v769_v13  ;;  %v1331_v28 = vsel %vm1070_vm2, %v5478_v14, 0.0  ;;  %v5539_v38 = vmul.f32 %v5469_v6, %v609_v12 }
  0xda   : > { %4660 = vst.msk [vmem:[%s5464_s17] sm:$0xf] %vm4659_vm1, %v4993_v15  ;;  %1075 = vadd.xlane.f32.xlu0 %v1074_v19  ;;  %4692 = vst.msk [vmem:[%s5464_s17 + $0x80] sm:$0xf] %vm4659_vm1, %v5025_v17  ;;  %v4996_v22 = vpack.c.bf16 %v5138_v20, %v5138_v20  ;;  %v1071_v29 = vsel %vm1070_vm2, %v5485_v16, 0.0  ;;  %v5028_v30 = vpack.c.bf16 %v5491_v21, %v5491_v21  ;;  %v1427_v39 = vsel %vm1070_vm2, %v5502_v25, 0.0 }
  0xdb   : > { %v5497_v23 = vpop.f32.mrf.mxu0  ;;  %v5499_v24 = vpop.f32.mrf.mxu1  ;;  %8997 = vst [vmem:[#allocation4_spill] sm:$0xff] %v5502_v25  ;;  %8998 = vst [vmem:[#allocation5_spill] sm:$0xff] %v5505_v26  ;;  %v5526_v34 = vmul.f32 %v5138_v20, %v5459_v4  ;;  %v1167_v40 = vsel %vm1070_vm2, %v5505_v26, 0.0  ;;  %v5557_v45 = vmul.f32 %v5491_v21, %v5459_v4  ;;  %v5572_v50 = vmul.f32 %v5469_v6, %v769_v13 }
  0xdc   : > { %v4995_v27 = vpack.c.bf16 %v5497_v23, %v5497_v23  ;;  %4663 = vst.msk [vmem:[%s5464_s17 + $0xc] sm:$0xf] %vm4659_vm1, %v4996_v22  ;;  %v5027_v31 = vpack.c.bf16 %v5499_v24, %v5499_v24  ;;  %4695 = vst.msk [vmem:[%s5464_s17 + $0x8c] sm:$0xf] %vm4659_vm1, %v5028_v30  ;;  %v1328_v51 = vsel %vm1070_vm2, %v5539_v38, 0.0  ;;  %v5601_v61 = vmul.f32 %v5138_v20, %v5469_v6 }
  0xdd   : > { %v5519_v32 = vpop.f32.mrf.mxu0  ;;  %v5521_v33 = vpop.f32.mrf.mxu1  ;;  %1332 = vadd.xlane.f32.xlu1 %v1331_v28  ;;  %8999 = vst [vmem:[#allocation6_spill] sm:$0xff] %v5539_v38  ;;  %9000 = vst [vmem:[#allocation7_spill] sm:$0xff] %v5557_v45  ;;  %v1080_v46 = vsel %vm1070_vm2, %v5526_v34, 0.0  ;;  %v1176_v56 = vsel %vm1070_vm2, %v5557_v45, 0.0  ;;  %v5605_v62 = vmul.f32 %v5459_v4, %v5499_v24  ;;  %v1424_v63 = vsel %vm1070_vm2, %v5572_v50, 0.0 }
  0xde   : > { %1072 = vadd.xlane.f32.xlu0 %v1071_v29  ;;  %4662 = vst.msk [vmem:[%s5464_s17 + $0x8] sm:$0xf] %vm4659_vm1, %v4995_v27  ;;  %4694 = vst.msk [vmem:[%s5464_s17 + $0x88] sm:$0xf] %vm4659_vm1, %v5027_v31  ;;  %v4998_v37 = vpack.c.bf16 %v5519_v32, %v5519_v32  ;;  %v5030_v44 = vpack.c.bf16 %v5521_v33, %v5521_v33  ;;  %v5627_v9 = vmul.f32 %v5469_v6, %v5497_v23 }
  0xdf   : > { %v5532_v35 = vpop.f32.mrf.mxu0  ;;  %v5534_v36 = vpop.f32.mrf.mxu1  ;;  %9001 = vst [vmem:[#allocation8_spill] sm:$0xff] %v5572_v50  ;;  %9002 = vst [vmem:[#allocation9_spill] sm:$0xff] %v5601_v61  ;;  %v5635_v12 = vmul.f32 %v5491_v21, %v5469_v6  ;;  %v1173_v13 = vsel %vm1070_vm2, %v5605_v62, 0.0  ;;  %v1337_v15 = vsel %vm1070_vm2, %v5601_v61, 0.0  ;;  %v5661_v27 = vmul.f32 %v5459_v4, %v5497_v23 }
  0xe0   : > { %v4997_v41 = vpack.c.bf16 %v5532_v35, %v5532_v35  ;;  %4665 = vst.msk [vmem:[%s5464_s17 + $0x14] sm:$0xf] %vm4659_vm1, %v4998_v37  ;;  %v5029_v47 = vpack.c.bf16 %v5534_v36, %v5534_v36  ;;  %4697 = vst.msk [vmem:[%s5464_s17 + $0x94] sm:$0xf] %vm4659_vm1, %v5030_v44  ;;  %v5667_v29 = vmul.f32 %v5469_v6, %v5499_v24  ;;  %v1334_v31 = vsel %vm1070_vm2, %v5627_v9, 0.0 }
  0xe1   : > { %v5547_v42 = vpop.f32.mrf.mxu0  ;;  %v5549_v43 = vpop.f32.mrf.mxu1  ;;  %1428 = vadd.xlane.f32.xlu1 %v1427_v39  ;;  %9003 = vst [vmem:[#allocation10_spill] sm:$0xff] %v5605_v62  ;;  %9004 = vst [vmem:[#allocation11_spill] sm:$0xff] %v5627_v9  ;;  %v1433_v30 = vsel %vm1070_vm2, %v5635_v12, 0.0 }
  0xe2   : > { %1168 = vadd.xlane.f32.xlu0 %v1167_v40  ;;  %4664 = vst.msk [vmem:[%s5464_s17 + $0x10] sm:$0xf] %vm4659_vm1, %v4997_v41  ;;  %4696 = vst.msk [vmem:[%s5464_s17 + $0x90] sm:$0xf] %vm4659_vm1, %v5029_v47  ;;  %v5000_v52 = vpack.c.bf16 %v5547_v42, %v5547_v42  ;;  %v5032_v57 = vpack.c.bf16 %v5549_v43, %v5549_v43  ;;  %v5691_v41 = vmul.f32 %v5519_v32, %v5459_v4 }
  0xe3   : > { %v5565_v48 = vpop.f32.mrf.mxu0  ;;  %v5567_v49 = vpop.f32.mrf.mxu1  ;;  %9005 = vst [vmem:[#allocation12_spill] sm:$0xff] %v5635_v12  ;;  %9006 = vst [vmem:[#allocation13_spill] sm:$0xff] %v5667_v29  ;;  %v1430_v47 = vsel %vm1070_vm2, %v5667_v29, 0.0  ;;  %v5903_v61 = vmul.f32 %v5549_v43, %v5469_v6 }
  0xe4   : > { %v4999_v55 = vpack.c.bf16 %v5565_v48, %v5565_v48  ;;  %4667 = vst.msk [vmem:[%s5464_s17 + $0x1c] sm:$0xf] %vm4659_vm1, %v5000_v52  ;;  %v5031_v60 = vpack.c.bf16 %v5567_v49, %v5567_v49  ;;  %4699 = vst.msk [vmem:[%s5464_s17 + $0x9c] sm:$0xf] %vm4659_vm1, %v5032_v57 }
  0xe5   : > { %v5580_v53 = vpop.f32.mrf.mxu0  ;;  %v5582_v54 = vpop.f32.mrf.mxu1  ;;  %1081 = vadd.xlane.f32.xlu1 %v1080_v46  ;;  %v5699_v46 = vmul.f32 %v5459_v4, %v5532_v35  ;;  %9017 = vst [vmem:[#allocation24_spill] sm:$0xff] %v5903_v61 }
  0xe6   : > { %1329 = vadd.xlane.f32.xlu0 %v1328_v51  ;;  %4666 = vst.msk [vmem:[%s5464_s17 + $0x18] sm:$0xf] %vm4659_vm1, %v4999_v55  ;;  %4698 = vst.msk [vmem:[%s5464_s17 + $0x98] sm:$0xf] %vm4659_vm1, %v5031_v60  ;;  %v5002_v2 = vpack.c.bf16 %v5580_v53, %v5580_v53  ;;  %v5034_v11 = vpack.c.bf16 %v5582_v54, %v5582_v54  ;;  %v1077_v51 = vsel %vm1070_vm2, %v5661_v27, 0.0 }
  0xe7   : > { %v5592_v58 = vpop.f32.mrf.mxu0  ;;  %v5594_v59 = vpop.f32.mrf.mxu1  ;;  %v5967_v9 = vmul.f32 %v5580_v53, %v5469_v6 }
  0xe8   : > { %v5001_v3 = vpack.c.bf16 %v5592_v58, %v5592_v58  ;;  %4669 = vst.msk [vmem:[%s5464_s17 + $0x24] sm:$0xf] %vm4659_vm1, %v5002_v2  ;;  %v5033_v17 = vpack.c.bf16 %v5594_v59, %v5594_v59  ;;  %4701 = vst.msk [vmem:[%s5464_s17 + $0xa4] sm:$0xf] %vm4659_vm1, %v5034_v11  ;;  %v5723_v2 = vmul.f32 %v5521_v33, %v5459_v4  ;;  %v1086_v11 = vsel %vm1070_vm2, %v5691_v41, 0.0 }
  0xe9   : > { %v5611_v0 = vpop.f32.mrf.mxu0  ;;  %v5613_v1 = vpop.f32.mrf.mxu1  ;;  %1177 = vadd.xlane.f32.xlu1 %v1176_v56  ;;  %9021 = vst [vmem:[#allocation28_spill] sm:$0xff] %v5967_v9  ;;  %v5971_v14 = vmul.f32 %v5469_v6, %v5592_v58 }
  0xea   : > { %1425 = vadd.xlane.f32.xlu0 %v1424_v63  ;;  %4668 = vst.msk [vmem:[%s5464_s17 + $0x20] sm:$0xf] %vm4659_vm1, %v5001_v3  ;;  %4700 = vst.msk [vmem:[%s5464_s17 + $0xa0] sm:$0xf] %vm4659_vm1, %v5033_v17  ;;  %v5004_v20 = vpack.c.bf16 %v5611_v0, %v5611_v0  ;;  %v5036_v23 = vpack.c.bf16 %v5613_v1, %v5613_v1  ;;  %v5729_v3 = vmul.f32 %v5459_v4, %v5534_v36 }
  0xeb   : > { %v5621_v5 = vpop.f32.mrf.mxu0  ;;  %v5623_v7 = vpop.f32.mrf.mxu1  ;;  %9007 = vst [vmem:[#allocation14_spill] sm:$0xff] %v5723_v2  ;;  %9022 = vst [vmem:[#allocation29_spill] sm:$0xff] %v5971_v14 }
  0xec   : > { %v5003_v28 = vpack.c.bf16 %v5621_v5, %v5621_v5  ;;  %4671 = vst.msk [vmem:[%s5464_s17 + $0x2c] sm:$0xf] %vm4659_vm1, %v5004_v20  ;;  %v5035_v24 = vpack.c.bf16 %v5623_v7, %v5623_v7  ;;  %4703 = vst.msk [vmem:[%s5464_s17 + $0xac] sm:$0xf] %vm4659_vm1, %v5036_v23 }
  0xed   : > { %v5645_v18 = vpop.f32.mrf.mxu0  ;;  %v5647_v19 = vpop.f32.mrf.mxu1  ;;  %1338 = vadd.xlane.f32.xlu1 %v1337_v15  ;;  %9008 = vst [vmem:[#allocation15_spill] sm:$0xff] %v5729_v3 }
  0xee   : > { %1174 = vadd.xlane.f32.xlu0 %v1173_v13  ;;  %4670 = vst.msk [vmem:[%s5464_s17 + $0x28] sm:$0xf] %vm4659_vm1, %v5003_v28  ;;  %4702 = vst.msk [vmem:[%s5464_s17 + $0xa8] sm:$0xf] %vm4659_vm1, %v5035_v24  ;;  %v5006_v44 = vpack.c.bf16 %v5645_v18, %v5645_v18  ;;  %v5038_v57 = vpack.c.bf16 %v5647_v19, %v5647_v19  ;;  %v1083_v13 = vsel %vm1070_vm2, %v5699_v46, 0.0 }
  0xef   : > { %v5655_v21 = vpop.f32.mrf.mxu0  ;;  %v5657_v22 = vpop.f32.mrf.mxu1  ;;  %v5757_v24 = vmul.f32 %v5519_v32, %v5469_v6 }
  0xf0   : > { %v5005_v52 = vpack.c.bf16 %v5655_v21, %v5655_v21  ;;  %4673 = vst.msk [vmem:[%s5464_s17 + $0x34] sm:$0xf] %vm4659_vm1, %v5006_v44  ;;  %v5037_v60 = vpack.c.bf16 %v5657_v22, %v5657_v22  ;;  %4705 = vst.msk [vmem:[%s5464_s17 + $0xb4] sm:$0xf] %vm4659_vm1, %v5038_v57  ;;  %v5761_v44 = vmul.f32 %v5469_v6, %v5532_v35 }
  0xf1   : > { %v5677_v37 = vpop.f32.mrf.mxu0  ;;  %v5679_v39 = vpop.f32.mrf.mxu1  ;;  %1434 = vadd.xlane.f32.xlu1 %v1433_v30  ;;  %9009 = vst [vmem:[#allocation16_spill] sm:$0xff] %v5757_v24 }
  0xf2   : > { %1335 = vadd.xlane.f32.xlu0 %v1334_v31  ;;  %4672 = vst.msk [vmem:[%s5464_s17 + $0x30] sm:$0xf] %vm4659_vm1, %v5005_v52  ;;  %4704 = vst.msk [vmem:[%s5464_s17 + $0xb0] sm:$0xf] %vm4659_vm1, %v5037_v60  ;;  %v5008_v15 = vpack.c.bf16 %v5677_v37, %v5677_v37  ;;  %v5040_v28 = vpack.c.bf16 %v5679_v39, %v5679_v39  ;;  %v5781_v60 = vmul.f32 %v5521_v33, %v5469_v6 }
  0xf3   : > { %v5687_v40 = vpop.f32.mrf.mxu0  ;;  %v5707_v55 = vpop.f32.mrf.mxu1  ;;  %9010 = vst [vmem:[#allocation17_spill] sm:$0xff] %v5761_v44 }
  0xf4   : > { %v5007_v20 = vpack.c.bf16 %v5687_v40, %v5687_v40  ;;  %4675 = vst.msk [vmem:[%s5464_s17 + $0x3c] sm:$0xf] %vm4659_vm1, %v5008_v15  ;;  %v5039_v23 = vpack.c.bf16 %v5707_v55, %v5707_v55  ;;  %4707 = vst.msk [vmem:[%s5464_s17 + $0xbc] sm:$0xf] %vm4659_vm1, %v5040_v28  ;;  %v1343_v15 = vsel %vm1070_vm2, %v5757_v24, 0.0 }
  0xf5   : > { %v5709_v56 = vpop.f32.mrf.mxu0  ;;  %1078 = vadd.xlane.f32.xlu1 %v1077_v51  ;;  %v5719_v63 = vpop.f32.mrf.mxu1  ;;  %v1179_v51 = vsel %vm1070_vm2, %v5729_v3, 0.0  ;;  %9011 = vst [vmem:[#allocation18_spill] sm:$0xff] %v5781_v60 }
  0xf6   : > { %1431 = vadd.xlane.f32.xlu0 %v1430_v47  ;;  %4674 = vst.msk [vmem:[%s5464_s17 + $0x38] sm:$0xf] %vm4659_vm1, %v5007_v20  ;;  %v1182_v47 = vsel %vm1070_vm2, %v5723_v2, 0.0  ;;  %4706 = vst.msk [vmem:[%s5464_s17 + $0xb8] sm:$0xf] %vm4659_vm1, %v5039_v23  ;;  %v5010_v32 = vpack.c.bf16 %v5709_v56, %v5709_v56  ;;  %v1340_v20 = vsel %vm1070_vm2, %v5761_v44, 0.0  ;;  %v5873_v44 = vmul.f32 %v5547_v42, %v5469_v6 }
  0xf7   : > { %v5739_v17 = vpop.f32.mrf.mxu0  ;;  %v5747_v30 = vpop.f32.mrf.mxu1 }
  0xf8   : > { %v5009_v35 = vpack.c.bf16 %v5739_v17, %v5739_v17  ;;  %4677 = vst.msk [vmem:[%s5464_s17 + $0x44] sm:$0xf] %vm4659_vm1, %v5010_v32  ;;  %v5041_v33 = vpack.c.bf16 %v5747_v30, %v5747_v30  ;;  %9015 = vst [vmem:[#allocation22_spill] sm:$0xff] %v5873_v44 }
  0xf9   : > { %1087 = vadd.xlane.f32.xlu1 %v1086_v11  ;;  %v5749_v31 = vpop.f32.mrf.mxu0  ;;  %v5769_v52 = vpop.f32.mrf.mxu1  ;;  %v5042_v11 = vpack.c.bf16 %v5719_v63, %v5719_v63 }
  0xfa   : > { %1084 = vadd.xlane.f32.xlu0 %v1083_v13  ;;  %v5789_v13 = vmul.f32 %v5469_v6, %v5534_v36  ;;  %4676 = vst.msk [vmem:[%s5464_s17 + $0x40] sm:$0xf] %vm4659_vm1, %v5009_v35  ;;  %4708 = vst.msk [vmem:[%s5464_s17 + $0xc0] sm:$0xf] %vm4659_vm1, %v5041_v33  ;;  %v5012_v36 = vpack.c.bf16 %v5749_v31, %v5749_v31  ;;  %v5819_v35 = vmul.f32 %v5459_v4, %v5565_v48 }
  0xfb   : > { %v5777_v57 = vpop.f32.mrf.mxu0  ;;  %v5799_v28 = vpop.f32.mrf.mxu1  ;;  %4709 = vst.msk [vmem:[%s5464_s17 + $0xc4] sm:$0xf] %vm4659_vm1, %v5042_v11  ;;  %v1439_v11 = vsel %vm1070_vm2, %v5781_v60, 0.0 }
  0xfc   : > { %9012 = vst [vmem:[#allocation19_spill] sm:$0xff] %v5789_v13  ;;  %v5011_v32 = vpack.c.bf16 %v5777_v57, %v5777_v57  ;;  %4679 = vst.msk [vmem:[%s5464_s17 + $0x4c] sm:$0xf] %vm4659_vm1, %v5012_v36  ;;  %v5043_v12 = vpack.c.bf16 %v5799_v28, %v5799_v28  ;;  %v5843_v36 = vmul.f32 %v5549_v43, %v5459_v4 }
  0xfd   : > { %1183 = vadd.xlane.f32.xlu1 %v1182_v47  ;;  %v5801_v23 = vpop.f32.mrf.mxu0  ;;  %v5809_v47 = vpop.f32.mrf.mxu1 }
  0xfe   : > { %1180 = vadd.xlane.f32.xlu0 %v1179_v51  ;;  %v5813_v51 = vmul.f32 %v5547_v42, %v5459_v4  ;;  %4678 = vst.msk [vmem:[%s5464_s17 + $0x48] sm:$0xf] %vm4659_vm1, %v5011_v32  ;;  %9013 = vst [vmem:[#allocation20_spill] sm:$0xff] %v5843_v36  ;;  %v5014_v32 = vpack.c.bf16 %v5801_v23, %v5801_v23 }
  0xff   : > { %v5829_v33 = vpop.f32.mrf.mxu0  ;;  %v5837_v60 = vpop.f32.mrf.mxu1  ;;  %4710 = vst.msk [vmem:[%s5464_s17 + $0xc8] sm:$0xf] %vm4659_vm1, %v5043_v12  ;;  %v5046_v12 = vpack.c.bf16 %v5809_v47, %v5809_v47 }
 0x100   : > { %v5013_v29 = vpack.c.bf16 %v5829_v33, %v5829_v33  ;;  %4681 = vst.msk [vmem:[%s5464_s17 + $0x54] sm:$0xf] %vm4659_vm1, %v5014_v32  ;;  %v5045_v50 = vpack.c.bf16 %v5837_v60, %v5837_v60  ;;  %v5879_v32 = vmul.f32 %v5469_v6, %v5565_v48 }
 0x101   : > { %1344 = vadd.xlane.f32.xlu1 %v1343_v15  ;;  %v1436_v15 = vsel %vm1070_vm2, %v5789_v13, 0.0  ;;  %v5839_v13 = vpop.f32.mrf.mxu0  ;;  %v5859_v25 = vpop.f32.mrf.mxu1  ;;  %4713 = vst.msk [vmem:[%s5464_s17 + $0xd4] sm:$0xf] %vm4659_vm1, %v5046_v12 }
 0x102   : > { %1341 = vadd.xlane.f32.xlu0 %v1340_v20  ;;  %v5044_v20 = vpack.c.bf16 %v5769_v52, %v5769_v52  ;;  %4680 = vst.msk [vmem:[%s5464_s17 + $0x50] sm:$0xf] %vm4659_vm1, %v5013_v29  ;;  %9016 = vst [vmem:[#allocation23_spill] sm:$0xff] %v5879_v32  ;;  %v5048_v12 = vpack.c.bf16 %v5859_v25, %v5859_v25 }
 0x103   : > { %v5869_v24 = vpop.f32.mrf.mxu0  ;;  %4712 = vst.msk [vmem:[%s5464_s17 + $0xd0] sm:$0xf] %vm4659_vm1, %v5045_v50  ;;  %v5889_v42 = vpop.f32.mrf.mxu1 }
 0x104   : > { %4711 = vst.msk [vmem:[%s5464_s17 + $0xcc] sm:$0xf] %vm4659_vm1, %v5044_v20  ;;  %v1089_v20 = vsel %vm1070_vm2, %v5819_v35, 0.0  ;;  %v5015_v48 = vpack.c.bf16 %v5869_v24, %v5869_v24  ;;  %v5047_v50 = vpack.c.bf16 %v5889_v42, %v5889_v42  ;;  %4715 = vst.msk [vmem:[%s5464_s17 + $0xdc] sm:$0xf] %vm4659_vm1, %v5048_v12  ;;  %v5929_v12 = vmul.f32 %v5459_v4, %v5592_v58 }
 0x105   : > { %1440 = vadd.xlane.f32.xlu1 %v1439_v11  ;;  %v5851_v11 = vmul.f32 %v5459_v4, %v5567_v49  ;;  %v1355_v58 = vsel %vm1070_vm2, %v5967_v9, 0.0  ;;  %v6003_v9 = vmul.f32 %v5459_v4, %v5621_v5 }
 0x106   : > { %1437 = vadd.xlane.f32.xlu0 %v1436_v15  ;;  %v1092_v15 = vsel %vm1070_vm2, %v5813_v51, 0.0  ;;  %4682 = vst.msk [vmem:[%s5464_s17 + $0x58] sm:$0xf] %vm4659_vm1, %v5015_v48  ;;  %4714 = vst.msk [vmem:[%s5464_s17 + $0xd8] sm:$0xf] %vm4659_vm1, %v5047_v50  ;;  %v5917_v48 = vpop.f32.mrf.mxu0 }
 0x107   : > { %9014 = vst [vmem:[#allocation21_spill] sm:$0xff] %v5851_v11  ;;  %v1185_v29 = vsel %vm1070_vm2, %v5851_v11, 0.0  ;;  %v5018_v43 = vpack.c.bf16 %v5917_v48, %v5917_v48 }
 0x109   : > { %1093 = vadd.xlane.f32.xlu1 %v1092_v15  ;;  %v1188_v15 = vsel %vm1070_vm2, %v5843_v36, 0.0  ;;  %4685 = vst.msk [vmem:[%s5464_s17 + $0x64] sm:$0xf] %vm4659_vm1, %v5018_v43  ;;  %v5953_v43 = vmul.f32 %v5459_v4, %v5594_v59 }
 0x10a   : > { %1090 = vadd.xlane.f32.xlu0 %v1089_v20  ;;  %v5016_v20 = vpack.c.bf16 %v5839_v13, %v5839_v13 }
 0x10b   : > { %9020 = vst [vmem:[#allocation27_spill] sm:$0xff] %v5953_v43 }
 0x10c   : > { %4683 = vst.msk [vmem:[%s5464_s17 + $0x5c] sm:$0xf] %vm4659_vm1, %v5016_v20  ;;  %v1346_v20 = vsel %vm1070_vm2, %v5879_v32, 0.0  ;;  %v5939_v32 = vpop.f32.mrf.mxu1 }
 0x10d   : > { %1189 = vadd.xlane.f32.xlu1 %v1188_v15  ;;  %v5907_v15 = vmul.f32 %v5469_v6, %v5567_v49  ;;  %v5923_v49 = vmul.f32 %v5580_v53, %v5459_v4  ;;  %v5050_v38 = vpack.c.bf16 %v5939_v32, %v5939_v32  ;;  %v5983_v53 = vmul.f32 %v5469_v6, %v5594_v59 }
 0x10e   : > { %1186 = vadd.xlane.f32.xlu0 %v1185_v29  ;;  %v1349_v29 = vsel %vm1070_vm2, %v5873_v44, 0.0  ;;  %v5925_v44 = vpop.f32.mrf.mxu0 }
 0x10f   : > { %9018 = vst [vmem:[#allocation25_spill] sm:$0xff] %v5907_v15  ;;  %v1442_v50 = vsel %vm1070_vm2, %v5907_v15, 0.0  ;;  %v5949_v15 = vpop.f32.mrf.mxu1  ;;  %4717 = vst.msk [vmem:[%s5464_s17 + $0xe4] sm:$0xf] %vm4659_vm1, %v5050_v38  ;;  %v1191_v38 = vsel %vm1070_vm2, %v5953_v43, 0.0  ;;  %v6019_v43 = vmul.f32 %v5613_v1, %v5459_v4 }
 0x110   : > { %9024 = vst [vmem:[#allocation31_spill] sm:$0xff] %v5983_v53 }
 0x111   : > { %1350 = vadd.xlane.f32.xlu1 %v1349_v29  ;;  %v1445_v29 = vsel %vm1070_vm2, %v5903_v61, 0.0  ;;  %v5947_v61 = vmul.f32 %v5582_v54, %v5459_v4  ;;  %9025 = vst [vmem:[#allocation32_spill] sm:$0xff] %v6019_v43  ;;  %v1200_v11 = vsel %vm1070_vm2, %v6019_v43, 0.0 }
 0x112   : > { %1347 = vadd.xlane.f32.xlu0 %v1346_v20  ;;  %v5017_v20 = vpack.c.bf16 %v5925_v44, %v5925_v44 }
 0x113   : > { %9019 = vst [vmem:[#allocation26_spill] sm:$0xff] %v5947_v61  ;;  %v1194_v36 = vsel %vm1070_vm2, %v5947_v61, 0.0 }
 0x114   : > { %4684 = vst.msk [vmem:[%s5464_s17 + $0x60] sm:$0xf] %vm4659_vm1, %v5017_v20  ;;  %v5049_v20 = vpack.c.bf16 %v5949_v15, %v5949_v15 }
 0x115   : > { %1446 = vadd.xlane.f32.xlu1 %v1445_v29  ;;  %v1098_v29 = vsel %vm1070_vm2, %v5923_v49, 0.0 }
 0x116   : > { %1443 = vadd.xlane.f32.xlu0 %v1442_v50  ;;  %v1095_v50 = vsel %vm1070_vm2, %v5929_v12, 0.0  ;;  %4716 = vst.msk [vmem:[%s5464_s17 + $0xe0] sm:$0xf] %vm4659_vm1, %v5049_v20  ;;  %v5995_v20 = vmul.f32 %v5611_v0, %v5459_v4 }
 0x119   : > { %1099 = vadd.xlane.f32.xlu1 %v1098_v29  ;;  %v5979_v29 = vmul.f32 %v5582_v54, %v5469_v6 }
 0x11a   : > { %1096 = vadd.xlane.f32.xlu0 %v1095_v50  ;;  %v1352_v50 = vsel %vm1070_vm2, %v5971_v14, 0.0 }
 0x11b   : > { %9023 = vst [vmem:[#allocation30_spill] sm:$0xff] %v5979_v29 }
 0x11d   : > { %1195 = vadd.xlane.f32.xlu1 %v1194_v36  ;;  %v5989_v36 = vpop.f32.mrf.mxu0 }
 0x11e   : > { %1192 = vadd.xlane.f32.xlu0 %v1191_v38  ;;  %v5020_v54 = vpack.c.bf16 %v5989_v36, %v5989_v36  ;;  %v5999_v38 = vpop.f32.mrf.mxu1 }
 0x11f   : > { %v5997_v59 = vpop.f32.mrf.mxu0  ;;  %v5052_v61 = vpack.c.bf16 %v5999_v38, %v5999_v38 }
 0x120   : > { %4687 = vst.msk [vmem:[%s5464_s17 + $0x6c] sm:$0xf] %vm4659_vm1, %v5020_v54  ;;  %v5019_v14 = vpack.c.bf16 %v5997_v59, %v5997_v59  ;;  %v6027_v54 = vmul.f32 %v5459_v4, %v5623_v7 }
 0x121   : > { %1356 = vadd.xlane.f32.xlu1 %v1355_v58  ;;  %v1451_v58 = vsel %vm1070_vm2, %v5979_v29, 0.0  ;;  %4719 = vst.msk [vmem:[%s5464_s17 + $0xec] sm:$0xf] %vm4659_vm1, %v5052_v61  ;;  %v6023_v29 = vpop.f32.mrf.mxu1  ;;  %v6039_v61 = vmul.f32 %v5611_v0, %v5469_v6  ;;  %v6055_v0 = vmul.f32 %v5469_v6, %v5623_v7 }
 0x122   : > { %1353 = vadd.xlane.f32.xlu0 %v1352_v50  ;;  %v1448_v50 = vsel %vm1070_vm2, %v5983_v53, 0.0  ;;  %4686 = vst.msk [vmem:[%s5464_s17 + $0x68] sm:$0xf] %vm4659_vm1, %v5019_v14  ;;  %9026 = vst [vmem:[#allocation33_spill] sm:$0xff] %v6027_v54  ;;  %v5051_v14 = vpack.c.bf16 %v6023_v29, %v6023_v29  ;;  %v6043_v53 = vmul.f32 %v5469_v6, %v5621_v5  ;;  %v1197_v2 = vsel %vm1070_vm2, %v6027_v54, 0.0 }
 0x123   : > { %9027 = vst [vmem:[#allocation34_spill] sm:$0xff] %v6039_v61  ;;  %9030 = vst [vmem:[#allocation37_spill] sm:$0xff] %v6055_v0  ;;  %v1361_v5 = vsel %vm1070_vm2, %v6039_v61, 0.0  ;;  %v6075_v61 = vmul.f32 %v5459_v4, %v5655_v21  ;;  %v6091_v54 = vmul.f32 %v5647_v19, %v5459_v4 }
 0x124   : > { %4718 = vst.msk [vmem:[%s5464_s17 + $0xe8] sm:$0xf] %vm4659_vm1, %v5051_v14  ;;  %9028 = vst [vmem:[#allocation35_spill] sm:$0xff] %v6043_v53  ;;  %v6071_v14 = vpop.f32.mrf.mxu1 }
 0x125   : > { %1452 = vadd.xlane.f32.xlu1 %v1451_v58  ;;  %v1104_v58 = vsel %vm1070_vm2, %v5995_v20, 0.0  ;;  %v5054_v43 = vpack.c.bf16 %v6071_v14, %v6071_v14  ;;  %9031 = vst [vmem:[#allocation38_spill] sm:$0xff] %v6091_v54  ;;  %v1206_v3 = vsel %vm1070_vm2, %v6091_v54, 0.0 }
 0x126   : > { %1449 = vadd.xlane.f32.xlu0 %v1448_v50  ;;  %v1101_v50 = vsel %vm1070_vm2, %v6003_v9, 0.0 }
 0x127   : > { %4721 = vst.msk [vmem:[%s5464_s17 + $0xf4] sm:$0xf] %vm4659_vm1, %v5054_v43  ;;  %v6111_v43 = vmul.f32 %v5645_v18, %v5469_v6 }
 0x129   : > { %1105 = vadd.xlane.f32.xlu1 %v1104_v58  ;;  %v6051_v58 = vmul.f32 %v5613_v1, %v5469_v6  ;;  %9033 = vst [vmem:[#allocation40_spill] sm:$0xff] %v6111_v43 }
 0x12a   : > { %1102 = vadd.xlane.f32.xlu0 %v1101_v50  ;;  %v1358_v50 = vsel %vm1070_vm2, %v6043_v53, 0.0 }
 0x12b   : > { %9029 = vst [vmem:[#allocation36_spill] sm:$0xff] %v6051_v58 }
 0x12d   : > { %1201 = vadd.xlane.f32.xlu1 %v1200_v11  ;;  %v6061_v11 = vpop.f32.mrf.mxu0 }
 0x12e   : > { %1198 = vadd.xlane.f32.xlu0 %v1197_v2  ;;  %v5022_v1 = vpack.c.bf16 %v6061_v11, %v6061_v11  ;;  %v6067_v2 = vmul.f32 %v5645_v18, %v5459_v4  ;;  %v6127_v18 = vmul.f32 %v5469_v6, %v5657_v22 }
 0x12f   : > { %v6069_v7 = vpop.f32.mrf.mxu0 }
 0x130   : > { %4689 = vst.msk [vmem:[%s5464_s17 + $0x74] sm:$0xf] %vm4659_vm1, %v5022_v1  ;;  %v5021_v53 = vpack.c.bf16 %v6069_v7, %v6069_v7  ;;  %v6099_v1 = vmul.f32 %v5459_v4, %v5657_v22  ;;  %9036 = vst [vmem:[#allocation43_spill] sm:$0xff] %v6127_v18 }
 0x131   : > { %1362 = vadd.xlane.f32.xlu1 %v1361_v5  ;;  %v1457_v5 = vsel %vm1070_vm2, %v6051_v58, 0.0  ;;  %v6095_v58 = vpop.f32.mrf.mxu1 }
 0x132   : > { %1359 = vadd.xlane.f32.xlu0 %v1358_v50  ;;  %v1454_v50 = vsel %vm1070_vm2, %v6055_v0, 0.0  ;;  %4688 = vst.msk [vmem:[%s5464_s17 + $0x70] sm:$0xf] %vm4659_vm1, %v5021_v53  ;;  %9032 = vst [vmem:[#allocation39_spill] sm:$0xff] %v6099_v1  ;;  %v5053_v53 = vpack.c.bf16 %v6095_v58, %v6095_v58  ;;  %v6115_v0 = vmul.f32 %v5469_v6, %v5655_v21  ;;  %v1203_v45 = vsel %vm1070_vm2, %v6099_v1, 0.0 }
 0x133   : > { %v1367_v21 = vsel %vm1070_vm2, %v6111_v43, 0.0  ;;  %v6147_v43 = vmul.f32 %v5459_v4, %v5687_v40  ;;  %v6163_v1 = vmul.f32 %v5679_v39, %v5459_v4 }
 0x134   : > { %4720 = vst.msk [vmem:[%s5464_s17 + $0xf0] sm:$0xf] %vm4659_vm1, %v5053_v53  ;;  %9034 = vst [vmem:[#allocation41_spill] sm:$0xff] %v6115_v0  ;;  %v6143_v53 = vpop.f32.mrf.mxu1 }
 0x135   : > { %1458 = vadd.xlane.f32.xlu1 %v1457_v5  ;;  %v1110_v5 = vsel %vm1070_vm2, %v6067_v2, 0.0  ;;  %v5056_v54 = vpack.c.bf16 %v6143_v53, %v6143_v53  ;;  %9037 = vst [vmem:[#allocation44_spill] sm:$0xff] %v6163_v1  ;;  %v1212_v62 = vsel %vm1070_vm2, %v6163_v1, 0.0 }
 0x136   : > { %1455 = vadd.xlane.f32.xlu0 %v1454_v50  ;;  %v1107_v50 = vsel %vm1070_vm2, %v6075_v61, 0.0 }
 0x137   : > { %4723 = vst.msk [vmem:[%s5464_s17 + $0xfc] sm:$0xf] %vm4659_vm1, %v5056_v54  ;;  %v6183_v54 = vmul.f32 %v5677_v37, %v5469_v6 }
 0x139   : > { %1111 = vadd.xlane.f32.xlu1 %v1110_v5  ;;  %v6123_v5 = vmul.f32 %v5647_v19, %v5469_v6  ;;  %v6139_v19 = vmul.f32 %v5677_v37, %v5459_v4  ;;  %9039 = vst [vmem:[#allocation46_spill] sm:$0xff] %v6183_v54  ;;  %v6199_v37 = vmul.f32 %v5469_v6, %v5707_v55 }
 0x13a   : > { %1108 = vadd.xlane.f32.xlu0 %v1107_v50  ;;  %v1364_v50 = vsel %vm1070_vm2, %v6115_v0, 0.0 }
 0x13b   : > { %9035 = vst [vmem:[#allocation42_spill] sm:$0xff] %v6123_v5  ;;  %9042 = vst [vmem:[#allocation49_spill] sm:$0xff] %v6199_v37 }
 0x13d   : > { %1207 = vadd.xlane.f32.xlu1 %v1206_v3  ;;  %v6133_v3 = vpop.f32.mrf.mxu0 }
 0x13e   : > { %1204 = vadd.xlane.f32.xlu0 %v1203_v45  ;;  %v5024_v45 = vpack.c.bf16 %v6133_v3, %v6133_v3 }
 0x13f   : > { %v6141_v22 = vpop.f32.mrf.mxu0 }
 0x140   : > { %4691 = vst.msk [vmem:[%s5464_s17 + $0x7c] sm:$0xf] %vm4659_vm1, %v5024_v45  ;;  %v5023_v0 = vpack.c.bf16 %v6141_v22, %v6141_v22  ;;  %v6171_v45 = vmul.f32 %v5459_v4, %v5707_v55  ;;  %v1466_v55 = vsel %vm1070_vm2, %v6199_v37, 0.0 }
 0x141   : > { %1368 = vadd.xlane.f32.xlu1 %v1367_v21  ;;  %v1463_v21 = vsel %vm1070_vm2, %v6123_v5, 0.0  ;;  %v6167_v5 = vpop.f32.mrf.mxu1 }
 0x142   : > { %1365 = vadd.xlane.f32.xlu0 %v1364_v50  ;;  %v1460_v50 = vsel %vm1070_vm2, %v6127_v18, 0.0  ;;  %4690 = vst.msk [vmem:[%s5464_s17 + $0x78] sm:$0xf] %vm4659_vm1, %v5023_v0  ;;  %9038 = vst [vmem:[#allocation45_spill] sm:$0xff] %v6171_v45  ;;  %v5055_v0 = vpack.c.bf16 %v6167_v5, %v6167_v5  ;;  %v6187_v18 = vmul.f32 %v5469_v6, %v5687_v40  ;;  %v1209_v10 = vsel %vm1070_vm2, %v6171_v45, 0.0 }
 0x143   : > { %v1373_v40 = vsel %vm1070_vm2, %v6183_v54, 0.0 }
 0x144   : > { %4722 = vst.msk [vmem:[%s5464_s17 + $0xf8] sm:$0xf] %vm4659_vm1, %v5055_v0  ;;  %9040 = vst [vmem:[#allocation47_spill] sm:$0xff] %v6187_v18  ;;  %v6219_v0 = vmul.f32 %v5719_v63, %v5459_v4 }
 0x145   : > { %1464 = vadd.xlane.f32.xlu1 %v1463_v21  ;;  %v1116_v21 = vsel %vm1070_vm2, %v6139_v19, 0.0 }
 0x146   : > { %1461 = vadd.xlane.f32.xlu0 %v1460_v50  ;;  %v1113_v50 = vsel %vm1070_vm2, %v6147_v43, 0.0  ;;  %9043 = vst [vmem:[#allocation50_spill] sm:$0xff] %v6219_v0  ;;  %v1218_v37 = vsel %vm1070_vm2, %v6219_v0, 0.0 }
 0x149   : > { %1117 = vadd.xlane.f32.xlu1 %v1116_v21  ;;  %v6195_v21 = vmul.f32 %v5679_v39, %v5469_v6 }
 0x14a   : > { %1114 = vadd.xlane.f32.xlu0 %v1113_v50  ;;  %v1370_v50 = vsel %vm1070_vm2, %v6187_v18, 0.0 }
 0x14b   : > { %9041 = vst [vmem:[#allocation48_spill] sm:$0xff] %v6195_v21  ;;  %v1469_v39 = vsel %vm1070_vm2, %v6195_v21, 0.0 }
 0x14d   : > { %1213 = vadd.xlane.f32.xlu1 %v1212_v62  ;;  %v6207_v62 = vmul.f32 %v5709_v56, %v5459_v4 }
 0x14e   : > { %1210 = vadd.xlane.f32.xlu0 %v1209_v10  ;;  %v6211_v10 = vmul.f32 %v5459_v4, %v5739_v17 }
 0x150   : > { %v1119_v21 = vsel %vm1070_vm2, %v6211_v10, 0.0 }
 0x151   : > { %1374 = vadd.xlane.f32.xlu1 %v1373_v40  ;;  %v6223_v40 = vmul.f32 %v5459_v4, %v5747_v30 }
 0x152   : > { %1371 = vadd.xlane.f32.xlu0 %v1370_v50  ;;  %v1122_v50 = vsel %vm1070_vm2, %v6207_v62, 0.0 }
 0x153   : > { %9044 = vst [vmem:[#allocation51_spill] sm:$0xff] %v6223_v40  ;;  %v1215_v54 = vsel %vm1070_vm2, %v6223_v40, 0.0 }
 0x155   : > { %1470 = vadd.xlane.f32.xlu1 %v1469_v39  ;;  %v6231_v39 = vmul.f32 %v5709_v56, %v5469_v6  ;;  %v6247_v56 = vmul.f32 %v5469_v6, %v5747_v30 }
 0x156   : > { %1467 = vadd.xlane.f32.xlu0 %v1466_v55  ;;  %v6235_v55 = vmul.f32 %v5469_v6, %v5739_v17 }
 0x157   : > { %9045 = vst [vmem:[#allocation52_spill] sm:$0xff] %v6231_v39  ;;  %9048 = vst [vmem:[#allocation55_spill] sm:$0xff] %v6247_v56  ;;  %v1379_v17 = vsel %vm1070_vm2, %v6231_v39, 0.0 }
 0x158   : > { %9046 = vst [vmem:[#allocation53_spill] sm:$0xff] %v6235_v55 }
 0x159   : > { %1123 = vadd.xlane.f32.xlu1 %v1122_v50  ;;  %v6243_v50 = vmul.f32 %v5719_v63, %v5469_v6 }
 0x15a   : > { %1120 = vadd.xlane.f32.xlu0 %v1119_v21  ;;  %v1376_v21 = vsel %vm1070_vm2, %v6235_v55, 0.0  ;;  %v6307_v55 = vmul.f32 %v5469_v6, %v5777_v57 }
 0x15b   : > { %9047 = vst [vmem:[#allocation54_spill] sm:$0xff] %v6243_v50  ;;  %v1475_v39 = vsel %vm1070_vm2, %v6243_v50, 0.0  ;;  %v6291_v50 = vmul.f32 %v5459_v4, %v5799_v28 }
 0x15c   : > { %9052 = vst [vmem:[#allocation59_spill] sm:$0xff] %v6307_v55 }
 0x15d   : > { %1219 = vadd.xlane.f32.xlu1 %v1218_v37  ;;  %v6269_v37 = vmul.f32 %v5459_v4, %v5777_v57  ;;  %9050 = vst [vmem:[#allocation57_spill] sm:$0xff] %v6291_v50  ;;  %v6323_v57 = vmul.f32 %v5469_v6, %v5799_v28  ;;  %v6339_v28 = vmul.f32 %v5459_v4, %v5829_v33 }
 0x15e   : > { %1216 = vadd.xlane.f32.xlu0 %v1215_v54  ;;  %v6265_v54 = vmul.f32 %v5749_v31, %v5459_v4 }
 0x15f   : > { %9054 = vst [vmem:[#allocation61_spill] sm:$0xff] %v6323_v57 }
 0x161   : > { %1380 = vadd.xlane.f32.xlu1 %v1379_v17  ;;  %v1472_v17 = vsel %vm1070_vm2, %v6247_v56, 0.0  ;;  %v1128_v56 = vsel %vm1070_vm2, %v6265_v54, 0.0 }
 0x162   : > { %1377 = vadd.xlane.f32.xlu0 %v1376_v21  ;;  %v1172_v63 = vpop.xlane.xlu1 %1171 }
 0x163   : > { %v1076_v30 = vpop.xlane.xlu0 %1075  ;;  %1297 = vst.msk [vmem:[%s6257_s23 + $0x108] sm:$0xff] %vm1263_vm3, %v1172_v63 }
 0x164   : > { %1265 = vst.msk [vmem:[%s6257_s23 + $0x8] sm:$0xff] %vm1263_vm3, %v1076_v30  ;;  %v6287_v30 = vmul.f32 %v5769_v52, %v5459_v4 }
 0x165   : > { %1476 = vadd.xlane.f32.xlu1 %v1475_v39  ;;  %v1125_v39 = vsel %vm1070_vm2, %v6269_v37, 0.0 }
 0x166   : > { %1473 = vadd.xlane.f32.xlu0 %v1472_v17  ;;  %v1333_v21 = vpop.xlane.xlu1 %1332  ;;  %9049 = vst [vmem:[#allocation56_spill] sm:$0xff] %v6287_v30  ;;  %v1224_v18 = vsel %vm1070_vm2, %v6287_v30, 0.0 }
 0x167   : > { %v1073_v63 = vpop.xlane.xlu0 %1072  ;;  %1521 = vst.msk [vmem:[%s6279_s26 + $0x8] sm:$0xff] %vm1263_vm3, %v1333_v21 }
 0x168   : > { %1264 = vst.msk [vmem:[%s6257_s23] sm:$0xff] %vm1263_vm3, %v1073_v63  ;;  %v6303_v63 = vmul.f32 %v5749_v31, %v5469_v6  ;;  %v6319_v31 = vmul.f32 %v5769_v52, %v5469_v6  ;;  %v6335_v52 = vmul.f32 %v5801_v23, %v5459_v4 }
 0x169   : > { %1129 = vadd.xlane.f32.xlu1 %v1128_v56  ;;  %v1221_v56 = vsel %vm1070_vm2, %v6291_v50, 0.0 }
 0x16a   : > { %1126 = vadd.xlane.f32.xlu0 %v1125_v39  ;;  %v1429_v17 = vpop.xlane.xlu1 %1428  ;;  %9051 = vst [vmem:[#allocation58_spill] sm:$0xff] %v6303_v63  ;;  %9053 = vst [vmem:[#allocation60_spill] sm:$0xff] %v6319_v31 }
 0x16b   : > { %v1169_v21 = vpop.xlane.xlu0 %1168  ;;  %1553 = vst.msk [vmem:[%s6279_s26 + $0x108] sm:$0xff] %vm1263_vm3, %v1429_v17 }
 0x16c   : > { %1296 = vst.msk [vmem:[%s6257_s23 + $0x100] sm:$0xff] %vm1263_vm3, %v1169_v21  ;;  %v1385_v21 = vsel %vm1070_vm2, %v6303_v63, 0.0  ;;  %v6371_v63 = vmul.f32 %v5469_v6, %v5829_v33  ;;  %v6387_v33 = vmul.f32 %v5469_v6, %v5837_v60 }
 0x16d   : > { %1225 = vadd.xlane.f32.xlu1 %v1224_v18  ;;  %v1382_v18 = vsel %vm1070_vm2, %v6307_v55, 0.0 }
 0x16e   : > { %1222 = vadd.xlane.f32.xlu0 %v1221_v56  ;;  %v1082_v17 = vpop.xlane.xlu1 %1081  ;;  %9058 = vst [vmem:[#allocation65_spill] sm:$0xff] %v6371_v63  ;;  %9060 = vst [vmem:[#allocation67_spill] sm:$0xff] %v6387_v33 }
 0x16f   : > { %v1330_v39 = vpop.xlane.xlu0 %1329  ;;  %1267 = vst.msk [vmem:[%s6257_s23 + $0x18] sm:$0xff] %vm1263_vm3, %v1082_v17  ;;  %v1481_v17 = vsel %vm1070_vm2, %v6319_v31, 0.0  ;;  %v6355_v31 = vmul.f32 %v5459_v4, %v5837_v60  ;;  %v6403_v60 = vmul.f32 %v5459_v4, %v5869_v24 }
 0x170   : > { %1520 = vst.msk [vmem:[%s6279_s26] sm:$0xff] %vm1263_vm3, %v1330_v39 }
 0x171   : > { %1386 = vadd.xlane.f32.xlu1 %v1385_v21  ;;  %v1478_v21 = vsel %vm1070_vm2, %v6323_v57, 0.0  ;;  %9056 = vst [vmem:[#allocation63_spill] sm:$0xff] %v6355_v31  ;;  %v1134_v57 = vsel %vm1070_vm2, %v6335_v52, 0.0 }
 0x172   : > { %1383 = vadd.xlane.f32.xlu0 %v1382_v18  ;;  %v1178_v39 = vpop.xlane.xlu1 %1177 }
 0x173   : > { %v1426_v56 = vpop.xlane.xlu0 %1425  ;;  %1299 = vst.msk [vmem:[%s6257_s23 + $0x118] sm:$0xff] %vm1263_vm3, %v1178_v39  ;;  %v6351_v39 = vmul.f32 %v5809_v47, %v5459_v4 }
 0x174   : > { %1552 = vst.msk [vmem:[%s6279_s26 + $0x100] sm:$0xff] %vm1263_vm3, %v1426_v56 }
 0x175   : > { %1482 = vadd.xlane.f32.xlu1 %v1481_v17  ;;  %9055 = vst [vmem:[#allocation62_spill] sm:$0xff] %v6351_v39  ;;  %v1131_v17 = vsel %vm1070_vm2, %v6339_v28, 0.0  ;;  %v1230_v55 = vsel %vm1070_vm2, %v6351_v39, 0.0 }
 0x176   : > { %1479 = vadd.xlane.f32.xlu0 %v1478_v21  ;;  %v1339_v56 = vpop.xlane.xlu1 %1338 }
 0x177   : > { %v1175_v18 = vpop.xlane.xlu0 %1174  ;;  %1523 = vst.msk [vmem:[%s6279_s26 + $0x18] sm:$0xff] %vm1263_vm3, %v1339_v56  ;;  %v6367_v56 = vmul.f32 %v5801_v23, %v5469_v6  ;;  %v6383_v23 = vmul.f32 %v5809_v47, %v5469_v6  ;;  %v6399_v6 = vmul.f32 %v5839_v13, %v5459_v4 }
 0x178   : > { %1298 = vst.msk [vmem:[%s6257_s23 + $0x110] sm:$0xff] %vm1263_vm3, %v1175_v18 }
 0x179   : > { %1135 = vadd.xlane.f32.xlu1 %v1134_v57  ;;  %9057 = vst [vmem:[#allocation64_spill] sm:$0xff] %v6367_v56  ;;  %v1227_v57 = vsel %vm1070_vm2, %v6355_v31, 0.0  ;;  %9059 = vst [vmem:[#allocation66_spill] sm:$0xff] %v6383_v23  ;;  %v1487_v47 = vsel %vm1070_vm2, %v6383_v23, 0.0  ;;  %v1140_v23 = vsel %vm1070_vm2, %v6399_v6, 0.0 }
 0x17a   : > { %1132 = vadd.xlane.f32.xlu0 %v1131_v17  ;;  %v1435_v21 = vpop.xlane.xlu1 %1434 }
 0x17b   : > { %v1336_v18 = vpop.xlane.xlu0 %1335  ;;  %1555 = vst.msk [vmem:[%s6279_s26 + $0x118] sm:$0xff] %vm1263_vm3, %v1435_v21 }
 0x17c   : > { %1522 = vst.msk [vmem:[%s6279_s26 + $0x10] sm:$0xff] %vm1263_vm3, %v1336_v18  ;;  %v1391_v18 = vsel %vm1070_vm2, %v6367_v56, 0.0 }
 0x17d   : > { %1231 = vadd.xlane.f32.xlu1 %v1230_v55  ;;  %v1388_v55 = vsel %vm1070_vm2, %v6371_v63, 0.0 }
 0x17e   : > { %1228 = vadd.xlane.f32.xlu0 %v1227_v57  ;;  %v1079_v21 = vpop.xlane.xlu1 %1078 }
 0x17f   : > { %v1432_v17 = vpop.xlane.xlu0 %1431  ;;  %1266 = vst.msk [vmem:[%s6257_s23 + $0x10] sm:$0xff] %vm1263_vm3, %v1079_v21  ;;  %v1484_v21 = vsel %vm1070_vm2, %v6387_v33, 0.0 }
 0x180   : > { %1554 = vst.msk [vmem:[%s6279_s26 + $0x110] sm:$0xff] %vm1263_vm3, %v1432_v17 }
 0x181   : > { %1392 = vadd.xlane.f32.xlu1 %v1391_v18 }
 0x182   : > { %1389 = vadd.xlane.f32.xlu0 %v1388_v55  ;;  %v1088_v57 = vpop.xlane.xlu1 %1087 }
 0x183   : > { %v1085_v17 = vpop.xlane.xlu0 %1084  ;;  %1269 = vst.msk [vmem:[%s6257_s23 + $0x28] sm:$0xff] %vm1263_vm3, %v1088_v57  ;;  %v6415_v57 = vmul.f32 %v5859_v25, %v5459_v4 }
 0x184   : > { %1268 = vst.msk [vmem:[%s6257_s23 + $0x20] sm:$0xff] %vm1263_vm3, %v1085_v17  ;;  %v6419_v17 = vmul.f32 %v5459_v4, %v5889_v42  ;;  %v6432_v4 = vld [vmem:[%s8797_s3] ss:$0 sm:$0xff] }
 0x185   : > { %1488 = vadd.xlane.f32.xlu1 %v1487_v47  ;;  %9061 = vst [vmem:[#allocation68_spill] sm:$0xff] %v6415_v57  ;;  %v1137_v47 = vsel %vm1070_vm2, %v6403_v60, 0.0 }
 0x186   : > { %1485 = vadd.xlane.f32.xlu0 %v1484_v21  ;;  %v1184_v18 = vpop.xlane.xlu1 %1183  ;;  %9062 = vst [vmem:[#allocation69_spill] sm:$0xff] %v6419_v17 }
 0x187   : > { %v1181_v55 = vpop.xlane.xlu0 %1180  ;;  %1301 = vst.msk [vmem:[%s6257_s23 + $0x128] sm:$0xff] %vm1263_vm3, %v1184_v18 }
 0x188   : > { %1300 = vst.msk [vmem:[%s6257_s23 + $0x120] sm:$0xff] %vm1263_vm3, %v1181_v55  ;;  %v6436_v55 = vmul.f32 %v6432_v4, %v5839_v13  ;;  %v6456_v13 = vmul.f32 %v6432_v4, %v5889_v42 }
 0x189   : > { %1141 = vadd.xlane.f32.xlu1 %v1140_v23  ;;  %v6440_v23 = vmul.f32 %v6432_v4, %v5869_v24  ;;  %v6452_v24 = vmul.f32 %v6432_v4, %v5859_v25  ;;  %v6469_v25 = vld [vmem:[%s8796_s2] ss:$0 sm:$0xff] }
 0x18a   : > { %1138 = vadd.xlane.f32.xlu0 %v1137_v47  ;;  %v1345_v21 = vpop.xlane.xlu1 %1344  ;;  %9063 = vst [vmem:[#allocation70_spill] sm:$0xff] %v6436_v55  ;;  %v1236_v47 = vsel %vm1070_vm2, %v6415_v57, 0.0  ;;  %9066 = vst [vmem:[#allocation73_spill] sm:$0xff] %v6456_v13  ;;  %v1397_v56 = vsel %vm1070_vm2, %v6436_v55, 0.0  ;;  %v6473_v42 = vmul.f32 %v6469_v25, %v5917_v48  ;;  %v6489_v55 = vmul.f32 %v6469_v25, %v5939_v32 }
 0x18b   : > { %v1342_v18 = vpop.xlane.xlu0 %1341  ;;  %1525 = vst.msk [vmem:[%s6279_s26 + $0x28] sm:$0xff] %vm1263_vm3, %v1345_v21  ;;  %9064 = vst [vmem:[#allocation71_spill] sm:$0xff] %v6440_v23  ;;  %v1233_v21 = vsel %vm1070_vm2, %v6419_v17, 0.0 }
 0x18c   : > { %1524 = vst.msk [vmem:[%s6279_s26 + $0x20] sm:$0xff] %vm1263_vm3, %v1342_v18  ;;  %9065 = vst [vmem:[#allocation72_spill] sm:$0xff] %v6452_v24  ;;  %v1242_v63 = vsel %vm1070_vm2, %v6489_v55, 0.0 }
 0x18d   : > { %1237 = vadd.xlane.f32.xlu1 %v1236_v47  ;;  %v1394_v47 = vsel %vm1070_vm2, %v6440_v23, 0.0  ;;  %9067 = vst [vmem:[#allocation74_spill] sm:$0xff] %v6489_v55  ;;  %v6509_v23 = vmul.f32 %v6432_v4, %v5925_v44 }
 0x18e   : > { %1234 = vadd.xlane.f32.xlu0 %v1233_v21  ;;  %v1441_v18 = vpop.xlane.xlu1 %1440 }
 0x18f   : > { %v1438_v33 = vpop.xlane.xlu0 %1437  ;;  %1557 = vst.msk [vmem:[%s6279_s26 + $0x128] sm:$0xff] %vm1263_vm3, %v1441_v18  ;;  %v1493_v18 = vsel %vm1070_vm2, %v6452_v24, 0.0  ;;  %v6493_v24 = vmul.f32 %v6469_v25, %v5949_v15  ;;  %9070 = vst [vmem:[#allocation77_spill] sm:$0xff] %v6509_v23 }
 0x190   : > { %1556 = vst.msk [vmem:[%s6279_s26 + $0x120] sm:$0xff] %vm1263_vm3, %v1438_v33 }
 0x191   : > { %1398 = vadd.xlane.f32.xlu1 %v1397_v56  ;;  %v6477_v56 = vmul.f32 %v6469_v25, %v5925_v44  ;;  %9068 = vst [vmem:[#allocation75_spill] sm:$0xff] %v6493_v24  ;;  %v6521_v44 = vmul.f32 %v6432_v4, %v5939_v32  ;;  %v6537_v32 = vmul.f32 %v6469_v25, %v5989_v36 }
 0x192   : > { %1395 = vadd.xlane.f32.xlu0 %v1394_v47  ;;  %v1094_v21 = vpop.xlane.xlu1 %1093  ;;  %v1490_v47 = vsel %vm1070_vm2, %v6456_v13, 0.0  ;;  %v1146_v13 = vsel %vm1070_vm2, %v6473_v42, 0.0 }
 0x193   : > { %v1091_v33 = vpop.xlane.xlu0 %1090  ;;  %1271 = vst.msk [vmem:[%s6257_s23 + $0x38] sm:$0xff] %vm1263_vm3, %v1094_v21  ;;  %9071 = vst [vmem:[#allocation78_spill] sm:$0xff] %v6521_v44 }
 0x194   : > { %1270 = vst.msk [vmem:[%s6257_s23 + $0x30] sm:$0xff] %vm1263_vm3, %v1091_v33 }
 0x195   : > { %1494 = vadd.xlane.f32.xlu1 %v1493_v18  ;;  %v1143_v18 = vsel %vm1070_vm2, %v6477_v56, 0.0 }
 0x196   : > { %1491 = vadd.xlane.f32.xlu0 %v1490_v47  ;;  %v1190_v21 = vpop.xlane.xlu1 %1189 }
 0x197   : > { %v1187_v33 = vpop.xlane.xlu0 %1186  ;;  %1303 = vst.msk [vmem:[%s6257_s23 + $0x138] sm:$0xff] %vm1263_vm3, %v1190_v21 }
 0x198   : > { %1302 = vst.msk [vmem:[%s6257_s23 + $0x130] sm:$0xff] %vm1263_vm3, %v1187_v33  ;;  %v6505_v33 = vmul.f32 %v6432_v4, %v5917_v48  ;;  %v6525_v48 = vmul.f32 %v6432_v4, %v5949_v15  ;;  %v6541_v15 = vmul.f32 %v6469_v25, %v5997_v59 }
 0x199   : > { %1147 = vadd.xlane.f32.xlu1 %v1146_v13  ;;  %v1239_v13 = vsel %vm1070_vm2, %v6493_v24, 0.0 }
 0x19a   : > { %1144 = vadd.xlane.f32.xlu0 %v1143_v18  ;;  %v1351_v47 = vpop.xlane.xlu1 %1350  ;;  %9069 = vst [vmem:[#allocation76_spill] sm:$0xff] %v6505_v33  ;;  %9072 = vst [vmem:[#allocation79_spill] sm:$0xff] %v6525_v48 }
 0x19b   : > { %v1348_v21 = vpop.xlane.xlu0 %1347  ;;  %1527 = vst.msk [vmem:[%s6279_s26 + $0x38] sm:$0xff] %vm1263_vm3, %v1351_v47 }
 0x19c   : > { %1526 = vst.msk [vmem:[%s6279_s26 + $0x30] sm:$0xff] %vm1263_vm3, %v1348_v21  ;;  %v1403_v21 = vsel %vm1070_vm2, %v6505_v33, 0.0  ;;  %v6573_v33 = vmul.f32 %v6432_v4, %v5997_v59  ;;  %v6589_v59 = vmul.f32 %v6432_v4, %v6023_v29 }
 0x19d   : > { %1243 = vadd.xlane.f32.xlu1 %v1242_v63  ;;  %v1400_v63 = vsel %vm1070_vm2, %v6509_v23, 0.0 }
 0x19e   : > { %1240 = vadd.xlane.f32.xlu0 %v1239_v13  ;;  %v1447_v18 = vpop.xlane.xlu1 %1446  ;;  %9076 = vst [vmem:[#allocation83_spill] sm:$0xff] %v6573_v33  ;;  %9078 = vst [vmem:[#allocation85_spill] sm:$0xff] %v6589_v59 }
 0x19f   : > { %v1444_v47 = vpop.xlane.xlu0 %1443  ;;  %1559 = vst.msk [vmem:[%s6279_s26 + $0x138] sm:$0xff] %vm1263_vm3, %v1447_v18 }
 0x1a0   : > { %1558 = vst.msk [vmem:[%s6279_s26 + $0x130] sm:$0xff] %vm1263_vm3, %v1444_v47  ;;  %v1499_v47 = vsel %vm1070_vm2, %v6521_v44, 0.0  ;;  %v6557_v44 = vmul.f32 %v6469_v25, %v6023_v29  ;;  %v6601_v29 = vmul.f32 %v6469_v25, %v6061_v11 }
 0x1a1   : > { %1404 = vadd.xlane.f32.xlu1 %v1403_v21  ;;  %v1496_v21 = vsel %vm1070_vm2, %v6525_v48, 0.0  ;;  %v1152_v48 = vsel %vm1070_vm2, %v6537_v32, 0.0 }
 0x1a2   : > { %1401 = vadd.xlane.f32.xlu0 %v1400_v63  ;;  %v1100_v13 = vpop.xlane.xlu1 %1099  ;;  %9074 = vst [vmem:[#allocation81_spill] sm:$0xff] %v6557_v44 }
 0x1a3   : > { %v1097_v18 = vpop.xlane.xlu0 %1096  ;;  %1273 = vst.msk [vmem:[%s6257_s23 + $0x48] sm:$0xff] %vm1263_vm3, %v1100_v13 }
 0x1a4   : > { %1272 = vst.msk [vmem:[%s6257_s23 + $0x40] sm:$0xff] %vm1263_vm3, %v1097_v18  ;;  %v6553_v18 = vmul.f32 %v6469_v25, %v5999_v38 }
 0x1a5   : > { %1500 = vadd.xlane.f32.xlu1 %v1499_v47  ;;  %v1149_v47 = vsel %vm1070_vm2, %v6541_v15, 0.0 }
 0x1a6   : > { %1497 = vadd.xlane.f32.xlu0 %v1496_v21  ;;  %v1196_v63 = vpop.xlane.xlu1 %1195  ;;  %9073 = vst [vmem:[#allocation80_spill] sm:$0xff] %v6553_v18  ;;  %v1248_v23 = vsel %vm1070_vm2, %v6553_v18, 0.0 }
 0x1a7   : > { %v1193_v13 = vpop.xlane.xlu0 %1192  ;;  %1305 = vst.msk [vmem:[%s6257_s23 + $0x148] sm:$0xff] %vm1263_vm3, %v1196_v63 }
 0x1a8   : > { %1304 = vst.msk [vmem:[%s6257_s23 + $0x140] sm:$0xff] %vm1263_vm3, %v1193_v13  ;;  %v6569_v13 = vmul.f32 %v6432_v4, %v5989_v36  ;;  %v6585_v36 = vmul.f32 %v6432_v4, %v5999_v38  ;;  %v6605_v38 = vmul.f32 %v6469_v25, %v6069_v7 }
 0x1a9   : > { %1153 = vadd.xlane.f32.xlu1 %v1152_v48  ;;  %v1245_v48 = vsel %vm1070_vm2, %v6557_v44, 0.0 }
 0x1aa   : > { %1150 = vadd.xlane.f32.xlu0 %v1149_v47  ;;  %v1357_v21 = vpop.xlane.xlu1 %1356  ;;  %9075 = vst [vmem:[#allocation82_spill] sm:$0xff] %v6569_v13  ;;  %9077 = vst [vmem:[#allocation84_spill] sm:$0xff] %v6585_v36 }
 0x1ab   : > { %v1354_v63 = vpop.xlane.xlu0 %1353  ;;  %1529 = vst.msk [vmem:[%s6279_s26 + $0x48] sm:$0xff] %vm1263_vm3, %v1357_v21 }
 0x1ac   : > { %1528 = vst.msk [vmem:[%s6279_s26 + $0x40] sm:$0xff] %vm1263_vm3, %v1354_v63  ;;  %v1409_v63 = vsel %vm1070_vm2, %v6569_v13, 0.0  ;;  %v6637_v13 = vmul.f32 %v6432_v4, %v6069_v7  ;;  %v6653_v7 = vmul.f32 %v6432_v4, %v6095_v58 }
 0x1ad   : > { %1249 = vadd.xlane.f32.xlu1 %v1248_v23  ;;  %v1406_v23 = vsel %vm1070_vm2, %v6573_v33, 0.0 }
 0x1ae   : > { %1246 = vadd.xlane.f32.xlu0 %v1245_v48  ;;  %v1453_v47 = vpop.xlane.xlu1 %1452  ;;  %9082 = vst [vmem:[#allocation89_spill] sm:$0xff] %v6637_v13  ;;  %9084 = vst [vmem:[#allocation91_spill] sm:$0xff] %v6653_v7 }
 0x1af   : > { %v1450_v21 = vpop.xlane.xlu0 %1449  ;;  %1561 = vst.msk [vmem:[%s6279_s26 + $0x148] sm:$0xff] %vm1263_vm3, %v1453_v47 }
 0x1b0   : > { %1560 = vst.msk [vmem:[%s6279_s26 + $0x140] sm:$0xff] %vm1263_vm3, %v1450_v21  ;;  %v1505_v21 = vsel %vm1070_vm2, %v6585_v36, 0.0  ;;  %v6621_v36 = vmul.f32 %v6469_v25, %v6095_v58  ;;  %v6665_v58 = vmul.f32 %v6469_v25, %v6133_v3 }
 0x1b1   : > { %1410 = vadd.xlane.f32.xlu1 %v1409_v63  ;;  %v1502_v63 = vsel %vm1070_vm2, %v6589_v59, 0.0  ;;  %v1158_v59 = vsel %vm1070_vm2, %v6601_v29, 0.0 }
 0x1b2   : > { %1407 = vadd.xlane.f32.xlu0 %v1406_v23  ;;  %v1106_v48 = vpop.xlane.xlu1 %1105  ;;  %9080 = vst [vmem:[#allocation87_spill] sm:$0xff] %v6621_v36  ;;  %9085 = vst [vmem:[#allocation92_spill] sm:$0xff] %v6665_v58 }
 0x1b3   : > { %v1103_v47 = vpop.xlane.xlu0 %1102  ;;  %1275 = vst.msk [vmem:[%s6257_s23 + $0x58] sm:$0xff] %vm1263_vm3, %v1106_v48 }
 0x1b4   : > { %1274 = vst.msk [vmem:[%s6257_s23 + $0x50] sm:$0xff] %vm1263_vm3, %v1103_v47  ;;  %v6617_v47 = vmul.f32 %v6469_v25, %v6071_v14 }
 0x1b5   : > { %1506 = vadd.xlane.f32.xlu1 %v1505_v21  ;;  %v1155_v21 = vsel %vm1070_vm2, %v6605_v38, 0.0 }
 0x1b6   : > { %1503 = vadd.xlane.f32.xlu0 %v1502_v63  ;;  %v1202_v23 = vpop.xlane.xlu1 %1201  ;;  %9079 = vst [vmem:[#allocation86_spill] sm:$0xff] %v6617_v47  ;;  %v1254_v33 = vsel %vm1070_vm2, %v6617_v47, 0.0 }
 0x1b7   : > { %v1199_v48 = vpop.xlane.xlu0 %1198  ;;  %1307 = vst.msk [vmem:[%s6257_s23 + $0x158] sm:$0xff] %vm1263_vm3, %v1202_v23 }
 0x1b8   : > { %1306 = vst.msk [vmem:[%s6257_s23 + $0x150] sm:$0xff] %vm1263_vm3, %v1199_v48  ;;  %v6633_v48 = vmul.f32 %v6432_v4, %v6061_v11  ;;  %v6649_v11 = vmul.f32 %v6432_v4, %v6071_v14  ;;  %v6669_v14 = vmul.f32 %v6469_v25, %v6141_v22 }
 0x1b9   : > { %1159 = vadd.xlane.f32.xlu1 %v1158_v59  ;;  %v1251_v59 = vsel %vm1070_vm2, %v6621_v36, 0.0 }
 0x1ba   : > { %1156 = vadd.xlane.f32.xlu0 %v1155_v21  ;;  %v1363_v63 = vpop.xlane.xlu1 %1362  ;;  %9081 = vst [vmem:[#allocation88_spill] sm:$0xff] %v6633_v48  ;;  %9083 = vst [vmem:[#allocation90_spill] sm:$0xff] %v6649_v11 }
 0x1bb   : > { %v1360_v23 = vpop.xlane.xlu0 %1359  ;;  %1531 = vst.msk [vmem:[%s6279_s26 + $0x58] sm:$0xff] %vm1263_vm3, %v1363_v63 }
 0x1bc   : > { %1530 = vst.msk [vmem:[%s6279_s26 + $0x50] sm:$0xff] %vm1263_vm3, %v1360_v23  ;;  %v1415_v23 = vsel %vm1070_vm2, %v6633_v48, 0.0 }
 0x1bd   : > { %1255 = vadd.xlane.f32.xlu1 %v1254_v33  ;;  %v1412_v33 = vsel %vm1070_vm2, %v6637_v13, 0.0 }
 0x1be   : > { %1252 = vadd.xlane.f32.xlu0 %v1251_v59  ;;  %v1459_v21 = vpop.xlane.xlu1 %1458 }
 0x1bf   : > { %v1456_v63 = vpop.xlane.xlu0 %1455  ;;  %1563 = vst.msk [vmem:[%s6279_s26 + $0x158] sm:$0xff] %vm1263_vm3, %v1459_v21 }
 0x1c0   : > { %1562 = vst.msk [vmem:[%s6279_s26 + $0x150] sm:$0xff] %vm1263_vm3, %v1456_v63  ;;  %v1511_v63 = vsel %vm1070_vm2, %v6649_v11, 0.0  ;;  %v6685_v11 = vmul.f32 %v6469_v25, %v6167_v5 }
 0x1c1   : > { %1416 = vadd.xlane.f32.xlu1 %v1415_v23  ;;  %v1508_v23 = vsel %vm1070_vm2, %v6653_v7, 0.0  ;;  %v1164_v7 = vsel %vm1070_vm2, %v6665_v58, 0.0 }
 0x1c2   : > { %1413 = vadd.xlane.f32.xlu0 %v1412_v33  ;;  %v1112_v59 = vpop.xlane.xlu1 %1111  ;;  %9087 = vst [vmem:[#allocation94_spill] sm:$0xff] %v6685_v11 }
 0x1c3   : > { %v1109_v21 = vpop.xlane.xlu0 %1108  ;;  %1277 = vst.msk [vmem:[%s6257_s23 + $0x68] sm:$0xff] %vm1263_vm3, %v1112_v59 }
 0x1c4   : > { %1276 = vst.msk [vmem:[%s6257_s23 + $0x60] sm:$0xff] %vm1263_vm3, %v1109_v21  ;;  %v6681_v21 = vmul.f32 %v6469_v25, %v6143_v53  ;;  %v6697_v25 = vmul.f32 %v6432_v4, %v6133_v3  ;;  %v6713_v3 = vmul.f32 %v6432_v4, %v6143_v53 }
 0x1c5   : > { %1512 = vadd.xlane.f32.xlu1 %v1511_v63  ;;  %v1161_v63 = vsel %vm1070_vm2, %v6669_v14, 0.0 }
 0x1c6   : > { %1509 = vadd.xlane.f32.xlu0 %v1508_v23  ;;  %v1208_v33 = vpop.xlane.xlu1 %1207  ;;  %9086 = vst [vmem:[#allocation93_spill] sm:$0xff] %v6681_v21  ;;  %9088 = vst [vmem:[#allocation95_spill] sm:$0xff] %v6697_v25  ;;  %v1260_v48 = vsel %vm1070_vm2, %v6681_v21, 0.0 }
 0x1c7   : > { %v1205_v59 = vpop.xlane.xlu0 %1204  ;;  %1309 = vst.msk [vmem:[%s6257_s23 + $0x168] sm:$0xff] %vm1263_vm3, %v1208_v33  ;;  %9090 = vst [vmem:[#allocation97_spill] sm:$0xff] %v6713_v3 }
 0x1c8   : > { %1308 = vst.msk [vmem:[%s6257_s23 + $0x160] sm:$0xff] %vm1263_vm3, %v1205_v59  ;;  %v6701_v59 = vmul.f32 %v6432_v4, %v6141_v22  ;;  %v6717_v22 = vmul.f32 %v6432_v4, %v6167_v5  ;;  %v1517_v5 = vsel %vm1070_vm2, %v6713_v3, 0.0 }
 0x1c9   : > { %1165 = vadd.xlane.f32.xlu1 %v1164_v7  ;;  %v1257_v7 = vsel %vm1070_vm2, %v6685_v11, 0.0 }
 0x1ca   : > { %1162 = vadd.xlane.f32.xlu0 %v1161_v63  ;;  %v1369_v23 = vpop.xlane.xlu1 %1368  ;;  %9089 = vst [vmem:[#allocation96_spill] sm:$0xff] %v6701_v59  ;;  %9091 = vst [vmem:[#allocation98_spill] sm:$0xff] %v6717_v22  ;;  %v1514_v53 = vsel %vm1070_vm2, %v6717_v22, 0.0 }
 0x1cb   : > { %v1366_v33 = vpop.xlane.xlu0 %1365  ;;  %1533 = vst.msk [vmem:[%s6279_s26 + $0x68] sm:$0xff] %vm1263_vm3, %v1369_v23 }
 0x1cc   : > { %1532 = vst.msk [vmem:[%s6279_s26 + $0x60] sm:$0xff] %vm1263_vm3, %v1366_v33  ;;  %v1418_v33 = vsel %vm1070_vm2, %v6701_v59, 0.0 }
 0x1cd   : > { %1261 = vadd.xlane.f32.xlu1 %v1260_v48  ;;  %v1421_v48 = vsel %vm1070_vm2, %v6697_v25, 0.0 }
 0x1ce   : > { %1258 = vadd.xlane.f32.xlu0 %v1257_v7  ;;  %v1465_v63 = vpop.xlane.xlu1 %1464 }
 0x1cf   : > { %v1462_v23 = vpop.xlane.xlu0 %1461  ;;  %1565 = vst.msk [vmem:[%s6279_s26 + $0x168] sm:$0xff] %vm1263_vm3, %v1465_v63 }
 0x1d0   : > { %1564 = vst.msk [vmem:[%s6279_s26 + $0x160] sm:$0xff] %vm1263_vm3, %v1462_v23 }
 0x1d1   : > { %1422 = vadd.xlane.f32.xlu1 %v1421_v48 }
 0x1d2   : > { %1419 = vadd.xlane.f32.xlu0 %v1418_v33  ;;  %v1118_v7 = vpop.xlane.xlu1 %1117 }
 0x1d3   : > { %v1115_v63 = vpop.xlane.xlu0 %1114  ;;  %1279 = vst.msk [vmem:[%s6257_s23 + $0x78] sm:$0xff] %vm1263_vm3, %v1118_v7 }
 0x1d4   : > { %1278 = vst.msk [vmem:[%s6257_s23 + $0x70] sm:$0xff] %vm1263_vm3, %v1115_v63 }
 0x1d5   : > { %1518 = vadd.xlane.f32.xlu1 %v1517_v5 }
 0x1d6   : > { %1515 = vadd.xlane.f32.xlu0 %v1514_v53  ;;  %v1214_v4 = vpop.xlane.xlu1 %1213 }
 0x1d7   : > { %v1211_v23 = vpop.xlane.xlu0 %1210  ;;  %1311 = vst.msk [vmem:[%s6257_s23 + $0x178] sm:$0xff] %vm1263_vm3, %v1214_v4 }
 0x1d8   : > { %1310 = vst.msk [vmem:[%s6257_s23 + $0x170] sm:$0xff] %vm1263_vm3, %v1211_v23 }
 0x1da   : > { %v1375_v48 = vpop.xlane.xlu1 %1374 }
 0x1db   : > { %v1372_v33 = vpop.xlane.xlu0 %1371  ;;  %1535 = vst.msk [vmem:[%s6279_s26 + $0x78] sm:$0xff] %vm1263_vm3, %v1375_v48 }
 0x1dc   : > { %1534 = vst.msk [vmem:[%s6279_s26 + $0x70] sm:$0xff] %vm1263_vm3, %v1372_v33 }
 0x1de   : > { %v1471_v7 = vpop.xlane.xlu1 %1470 }
 0x1df   : > { %v1468_v63 = vpop.xlane.xlu0 %1467  ;;  %1567 = vst.msk [vmem:[%s6279_s26 + $0x178] sm:$0xff] %vm1263_vm3, %v1471_v7 }
 0x1e0   : > { %1566 = vst.msk [vmem:[%s6279_s26 + $0x170] sm:$0xff] %vm1263_vm3, %v1468_v63 }
 0x1e2   : > { %v1124_v5 = vpop.xlane.xlu1 %1123 }
 0x1e3   : > { %v1121_v53 = vpop.xlane.xlu0 %1120  ;;  %1281 = vst.msk [vmem:[%s6257_s23 + $0x88] sm:$0xff] %vm1263_vm3, %v1124_v5 }
 0x1e4   : > { %1280 = vst.msk [vmem:[%s6257_s23 + $0x80] sm:$0xff] %vm1263_vm3, %v1121_v53 }
 0x1e6   : > { %v1220_v4 = vpop.xlane.xlu1 %1219  ;;  %1650 = vrot.lane.b32.xlu1 %v5472_v8, %s5258_s7 }
 0x1e7   : > { %v1217_v23 = vpop.xlane.xlu0 %1216  ;;  %1313 = vst.msk [vmem:[%s6257_s23 + $0x188] sm:$0xff] %vm1263_vm3, %v1220_v4 }
 0x1e8   : > { %1312 = vst.msk [vmem:[%s6257_s23 + $0x180] sm:$0xff] %vm1263_vm3, %v1217_v23 }
 0x1ea   : > { %v1381_v48 = vpop.xlane.xlu1 %1380  ;;  %1652 = vrot.lane.b32.xlu1 %v5661_v27, %s5258_s7 }
 0x1eb   : > { %v1378_v33 = vpop.xlane.xlu0 %1377  ;;  %1537 = vst.msk [vmem:[%s6279_s26 + $0x88] sm:$0xff] %vm1263_vm3, %v1381_v48 }
 0x1ec   : > { %1536 = vst.msk [vmem:[%s6279_s26 + $0x80] sm:$0xff] %vm1263_vm3, %v1378_v33  ;;  %1648 = vrot.lane.b32.xlu0 %v5485_v16, %s5258_s7 }
 0x1ee   : > { %v1477_v7 = vpop.xlane.xlu1 %1476  ;;  %1654 = vrot.lane.b32.xlu1 %v5526_v34, %s5258_s7 }
 0x1ef   : > { %v1474_v63 = vpop.xlane.xlu0 %1473  ;;  %1569 = vst.msk [vmem:[%s6279_s26 + $0x188] sm:$0xff] %vm1263_vm3, %v1477_v7 }
 0x1f0   : > { %1568 = vst.msk [vmem:[%s6279_s26 + $0x180] sm:$0xff] %vm1263_vm3, %v1474_v63  ;;  %1656 = vrot.lane.b32.xlu0 %v5699_v46, %s5258_s7 }
 0x1f2   : > { %v1130_v5 = vpop.xlane.xlu1 %1129  ;;  %1658 = vrot.lane.b32.xlu1 %v5691_v41, %s5258_s7 }
 0x1f3   : > { %v1127_v53 = vpop.xlane.xlu0 %1126  ;;  %1283 = vst.msk [vmem:[%s6257_s23 + $0x98] sm:$0xff] %vm1263_vm3, %v1130_v5 }
 0x1f4   : > { %1282 = vst.msk [vmem:[%s6257_s23 + $0x90] sm:$0xff] %vm1263_vm3, %v1127_v53  ;;  %1660 = vrot.lane.b32.xlu0 %v5819_v35, %s5258_s7 }
 0x1f6   : > { %v1226_v4 = vpop.xlane.xlu1 %1225  ;;  %1662 = vrot.lane.b32.xlu1 %v5813_v51, %s5258_s7 }
 0x1f7   : > { %v1223_v23 = vpop.xlane.xlu0 %1222  ;;  %1315 = vst.msk [vmem:[%s6257_s23 + $0x198] sm:$0xff] %vm1263_vm3, %v1226_v4 }
 0x1f8   : > { %1314 = vst.msk [vmem:[%s6257_s23 + $0x190] sm:$0xff] %vm1263_vm3, %v1223_v23  ;;  %1664 = vrot.lane.b32.xlu0 %v5929_v12, %s5258_s7 }
 0x1fa   : > { %v1387_v48 = vpop.xlane.xlu1 %1386  ;;  %1666 = vrot.lane.b32.xlu1 %v5923_v49, %s5258_s7 }
 0x1fb   : > { %v1384_v33 = vpop.xlane.xlu0 %1383  ;;  %1539 = vst.msk [vmem:[%s6279_s26 + $0x98] sm:$0xff] %vm1263_vm3, %v1387_v48 }
 0x1fc   : > { %1538 = vst.msk [vmem:[%s6279_s26 + $0x90] sm:$0xff] %vm1263_vm3, %v1384_v33  ;;  %1668 = vrot.lane.b32.xlu0 %v6003_v9, %s5258_s7 }
 0x1fe   : > { %v1483_v7 = vpop.xlane.xlu1 %1482  ;;  %1670 = vrot.lane.b32.xlu1 %v5995_v20, %s5258_s7 }
 0x1ff   : > { %v1480_v63 = vpop.xlane.xlu0 %1479  ;;  %1571 = vst.msk [vmem:[%s6279_s26 + $0x198] sm:$0xff] %vm1263_vm3, %v1483_v7 }
 0x200   : > { %1570 = vst.msk [vmem:[%s6279_s26 + $0x190] sm:$0xff] %vm1263_vm3, %v1480_v63  ;;  %1672 = vrot.lane.b32.xlu0 %v6075_v61, %s5258_s7 }
 0x202   : > { %v1136_v5 = vpop.xlane.xlu1 %1135  ;;  %1674 = vrot.lane.b32.xlu1 %v6067_v2, %s5258_s7 }
 0x203   : > { %v1133_v53 = vpop.xlane.xlu0 %1132  ;;  %1285 = vst.msk [vmem:[%s6257_s23 + $0xa8] sm:$0xff] %vm1263_vm3, %v1136_v5 }
 0x204   : > { %1284 = vst.msk [vmem:[%s6257_s23 + $0xa0] sm:$0xff] %vm1263_vm3, %v1133_v53  ;;  %1676 = vrot.lane.b32.xlu0 %v6147_v43, %s5258_s7 }
 0x206   : > { %v1232_v4 = vpop.xlane.xlu1 %1231  ;;  %1678 = vrot.lane.b32.xlu1 %v6139_v19, %s5258_s7 }
 0x207   : > { %v1229_v23 = vpop.xlane.xlu0 %1228  ;;  %1317 = vst.msk [vmem:[%s6257_s23 + $0x1a8] sm:$0xff] %vm1263_vm3, %v1232_v4 }
 0x208   : > { %1316 = vst.msk [vmem:[%s6257_s23 + $0x1a0] sm:$0xff] %vm1263_vm3, %v1229_v23  ;;  %1680 = vrot.lane.b32.xlu0 %v6211_v10, %s5258_s7 }
 0x20a   : > { %v1393_v48 = vpop.xlane.xlu1 %1392  ;;  %1682 = vrot.lane.b32.xlu1 %v6207_v62, %s5258_s7 }
 0x20b   : > { %v1390_v33 = vpop.xlane.xlu0 %1389  ;;  %1541 = vst.msk [vmem:[%s6279_s26 + $0xa8] sm:$0xff] %vm1263_vm3, %v1393_v48 }
 0x20c   : > { %1540 = vst.msk [vmem:[%s6279_s26 + $0xa0] sm:$0xff] %vm1263_vm3, %v1390_v33  ;;  %1684 = vrot.lane.b32.xlu0 %v6269_v37, %s5258_s7 }
 0x20e   : > { %v1489_v7 = vpop.xlane.xlu1 %1488  ;;  %1686 = vrot.lane.b32.xlu1 %v6265_v54, %s5258_s7 }
 0x20f   : > { %v1486_v63 = vpop.xlane.xlu0 %1485  ;;  %1573 = vst.msk [vmem:[%s6279_s26 + $0x1a8] sm:$0xff] %vm1263_vm3, %v1489_v7 }
 0x210   : > { %1572 = vst.msk [vmem:[%s6279_s26 + $0x1a0] sm:$0xff] %vm1263_vm3, %v1486_v63  ;;  %1688 = vrot.lane.b32.xlu0 %v6339_v28, %s5258_s7 }
 0x212   : > { %v1142_v5 = vpop.xlane.xlu1 %1141  ;;  %1690 = vrot.lane.b32.xlu1 %v6335_v52, %s5258_s7 }
 0x213   : > { %v1139_v53 = vpop.xlane.xlu0 %1138  ;;  %1287 = vst.msk [vmem:[%s6257_s23 + $0xb8] sm:$0xff] %vm1263_vm3, %v1142_v5 }
 0x214   : > { %1286 = vst.msk [vmem:[%s6257_s23 + $0xb0] sm:$0xff] %vm1263_vm3, %v1139_v53  ;;  %1692 = vrot.lane.b32.xlu0 %v6403_v60, %s5258_s7 }
 0x216   : > { %v1238_v4 = vpop.xlane.xlu1 %1237  ;;  %1694 = vrot.lane.b32.xlu1 %v6399_v6, %s5258_s7 }
 0x217   : > { %v1235_v23 = vpop.xlane.xlu0 %1234  ;;  %1319 = vst.msk [vmem:[%s6257_s23 + $0x1b8] sm:$0xff] %vm1263_vm3, %v1238_v4 }
 0x218   : > { %1318 = vst.msk [vmem:[%s6257_s23 + $0x1b0] sm:$0xff] %vm1263_vm3, %v1235_v23  ;;  %1696 = vrot.lane.b32.xlu0 %v6477_v56, %s5258_s7 }
 0x21a   : > { %v1399_v48 = vpop.xlane.xlu1 %1398  ;;  %1698 = vrot.lane.b32.xlu1 %v6473_v42, %s5258_s7 }
 0x21b   : > { %v1396_v33 = vpop.xlane.xlu0 %1395  ;;  %1543 = vst.msk [vmem:[%s6279_s26 + $0xb8] sm:$0xff] %vm1263_vm3, %v1399_v48 }
 0x21c   : > { %1542 = vst.msk [vmem:[%s6279_s26 + $0xb0] sm:$0xff] %vm1263_vm3, %v1396_v33  ;;  %1700 = vrot.lane.b32.xlu0 %v6541_v15, %s5258_s7 }
 0x21e   : > { %v1495_v7 = vpop.xlane.xlu1 %1494  ;;  %1702 = vrot.lane.b32.xlu1 %v6537_v32, %s5258_s7 }
 0x21f   : > { %v1492_v63 = vpop.xlane.xlu0 %1491  ;;  %1575 = vst.msk [vmem:[%s6279_s26 + $0x1b8] sm:$0xff] %vm1263_vm3, %v1495_v7  ;;  %v9092_v7 = vld [vmem:[#allocation2_spill] sm:$0xff] }
 0x220   : > { %1574 = vst.msk [vmem:[%s6279_s26 + $0x1b0] sm:$0xff] %vm1263_vm3, %v1492_v63  ;;  %1704 = vrot.lane.b32.xlu0 %v6605_v38, %s5258_s7  ;;  %v9093_v63 = vld [vmem:[#allocation10_spill] sm:$0xff] }
 0x222   : > { %v1148_v5 = vpop.xlane.xlu1 %1147  ;;  %1706 = vrot.lane.b32.xlu1 %v6601_v29, %s5258_s7 }
 0x223   : > { %v1145_v53 = vpop.xlane.xlu0 %1144  ;;  %1289 = vst.msk [vmem:[%s6257_s23 + $0xc8] sm:$0xff] %vm1263_vm3, %v1148_v5 }
 0x224   : > { %1288 = vst.msk [vmem:[%s6257_s23 + $0xc0] sm:$0xff] %vm1263_vm3, %v1145_v53  ;;  %1708 = vrot.lane.b32.xlu0 %v6669_v14, %s5258_s7 }
 0x226   : > { %v1244_v4 = vpop.xlane.xlu1 %1243  ;;  %1710 = vrot.lane.b32.xlu1 %v6665_v58, %s5258_s7 }
 0x227   : > { %v1241_v23 = vpop.xlane.xlu0 %1240  ;;  %1321 = vst.msk [vmem:[%s6257_s23 + $0x1c8] sm:$0xff] %vm1263_vm3, %v1244_v4  ;;  %v9094_v4 = vld [vmem:[#allocation7_spill] sm:$0xff] }
 0x228   : > { %1320 = vst.msk [vmem:[%s6257_s23 + $0x1c0] sm:$0xff] %vm1263_vm3, %v1241_v23  ;;  %1712 = vrot.lane.b32.xlu0 %v5505_v26, %s5258_s7  ;;  %v9095_v23 = vld [vmem:[#allocation15_spill] sm:$0xff] }
 0x22a   : > { %v1405_v48 = vpop.xlane.xlu1 %1404  ;;  %1714 = vrot.lane.b32.xlu1 %v9092_v7, %s5258_s7 }
 0x22b   : > { %v1402_v33 = vpop.xlane.xlu0 %1401  ;;  %1545 = vst.msk [vmem:[%s6279_s26 + $0xc8] sm:$0xff] %vm1263_vm3, %v1405_v48 }
 0x22c   : > { %1544 = vst.msk [vmem:[%s6279_s26 + $0xc0] sm:$0xff] %vm1263_vm3, %v1402_v33  ;;  %1716 = vrot.lane.b32.xlu0 %v9093_v63, %s5258_s7  ;;  %v9096_v63 = vld [vmem:[#allocation14_spill] sm:$0xff] }
 0x22e   : > { %v1501_v5 = vpop.xlane.xlu1 %1500  ;;  %1718 = vrot.lane.b32.xlu1 %v9094_v4, %s5258_s7  ;;  %v9097_v4 = vld [vmem:[#allocation21_spill] sm:$0xff] }
 0x22f   : > { %v1498_v53 = vpop.xlane.xlu0 %1497  ;;  %1577 = vst.msk [vmem:[%s6279_s26 + $0x1c8] sm:$0xff] %vm1263_vm3, %v1501_v5 }
 0x230   : > { %1576 = vst.msk [vmem:[%s6279_s26 + $0x1c0] sm:$0xff] %vm1263_vm3, %v1498_v53  ;;  %1720 = vrot.lane.b32.xlu0 %v9095_v23, %s5258_s7  ;;  %v9098_v23 = vld [vmem:[#allocation20_spill] sm:$0xff] }
 0x232   : > { %v1154_v48 = vpop.xlane.xlu1 %1153  ;;  %1722 = vrot.lane.b32.xlu1 %v9096_v63, %s5258_s7  ;;  %v9099_v63 = vld [vmem:[#allocation27_spill] sm:$0xff] }
 0x233   : > { %v1151_v33 = vpop.xlane.xlu0 %1150  ;;  %1291 = vst.msk [vmem:[%s6257_s23 + $0xd8] sm:$0xff] %vm1263_vm3, %v1154_v48 }
 0x234   : > { %1290 = vst.msk [vmem:[%s6257_s23 + $0xd0] sm:$0xff] %vm1263_vm3, %v1151_v33  ;;  %1724 = vrot.lane.b32.xlu0 %v9097_v4, %s5258_s7  ;;  %v9100_v4 = vld [vmem:[#allocation26_spill] sm:$0xff] }
 0x236   : > { %v1250_v5 = vpop.xlane.xlu1 %1249  ;;  %1726 = vrot.lane.b32.xlu1 %v9098_v23, %s5258_s7  ;;  %v9101_v23 = vld [vmem:[#allocation33_spill] sm:$0xff] }
 0x237   : > { %v1247_v53 = vpop.xlane.xlu0 %1246  ;;  %1323 = vst.msk [vmem:[%s6257_s23 + $0x1d8] sm:$0xff] %vm1263_vm3, %v1250_v5 }
 0x238   : > { %1322 = vst.msk [vmem:[%s6257_s23 + $0x1d0] sm:$0xff] %vm1263_vm3, %v1247_v53  ;;  %1728 = vrot.lane.b32.xlu0 %v9099_v63, %s5258_s7  ;;  %v9102_v63 = vld [vmem:[#allocation32_spill] sm:$0xff] }
 0x23a   : > { %v1411_v48 = vpop.xlane.xlu1 %1410  ;;  %1730 = vrot.lane.b32.xlu1 %v9100_v4, %s5258_s7  ;;  %v9103_v4 = vld [vmem:[#allocation39_spill] sm:$0xff] }
 0x23b   : > { %v1408_v33 = vpop.xlane.xlu0 %1407  ;;  %1547 = vst.msk [vmem:[%s6279_s26 + $0xd8] sm:$0xff] %vm1263_vm3, %v1411_v48 }
 0x23c   : > { %1546 = vst.msk [vmem:[%s6279_s26 + $0xd0] sm:$0xff] %vm1263_vm3, %v1408_v33  ;;  %1732 = vrot.lane.b32.xlu0 %v9101_v23, %s5258_s7  ;;  %v9104_v23 = vld [vmem:[#allocation38_spill] sm:$0xff] }
 0x23e   : > { %v1507_v5 = vpop.xlane.xlu1 %1506  ;;  %1734 = vrot.lane.b32.xlu1 %v9102_v63, %s5258_s7 }
 0x23f   : > { %v1504_v53 = vpop.xlane.xlu0 %1503  ;;  %1579 = vst.msk [vmem:[%s6279_s26 + $0x1d8] sm:$0xff] %vm1263_vm3, %v1507_v5 }
 0x240   : > { %1578 = vst.msk [vmem:[%s6279_s26 + $0x1d0] sm:$0xff] %vm1263_vm3, %v1504_v53  ;;  %1736 = vrot.lane.b32.xlu0 %v9103_v4, %s5258_s7 }
 0x242   : > { %v1160_v48 = vpop.xlane.xlu1 %1159  ;;  %1738 = vrot.lane.b32.xlu1 %v9104_v23, %s5258_s7 }
 0x243   : > { %v1157_v33 = vpop.xlane.xlu0 %1156  ;;  %1293 = vst.msk [vmem:[%s6257_s23 + $0xe8] sm:$0xff] %vm1263_vm3, %v1160_v48 }
 0x244   : > { %1292 = vst.msk [vmem:[%s6257_s23 + $0xe0] sm:$0xff] %vm1263_vm3, %v1157_v33  ;;  %1740 = vrot.lane.b32.xlu0 %v6171_v45, %s5258_s7 }
 0x246   : > { %v1256_v5 = vpop.xlane.xlu1 %1255  ;;  %1742 = vrot.lane.b32.xlu1 %v6163_v1, %s5258_s7 }
 0x247   : > { %v1253_v53 = vpop.xlane.xlu0 %1252  ;;  %1325 = vst.msk [vmem:[%s6257_s23 + $0x1e8] sm:$0xff] %vm1263_vm3, %v1256_v5 }
 0x248   : > { %1324 = vst.msk [vmem:[%s6257_s23 + $0x1e0] sm:$0xff] %vm1263_vm3, %v1253_v53  ;;  %1744 = vrot.lane.b32.xlu0 %v6223_v40, %s5258_s7 }
 0x24a   : > { %v1417_v48 = vpop.xlane.xlu1 %1416  ;;  %1746 = vrot.lane.b32.xlu1 %v6219_v0, %s5258_s7 }
 0x24b   : > { %v1414_v33 = vpop.xlane.xlu0 %1413  ;;  %1549 = vst.msk [vmem:[%s6279_s26 + $0xe8] sm:$0xff] %vm1263_vm3, %v1417_v48 }
 0x24c   : > { %1548 = vst.msk [vmem:[%s6279_s26 + $0xe0] sm:$0xff] %vm1263_vm3, %v1414_v33  ;;  %1748 = vrot.lane.b32.xlu0 %v6291_v50, %s5258_s7 }
 0x24e   : > { %v1513_v5 = vpop.xlane.xlu1 %1512  ;;  %1750 = vrot.lane.b32.xlu1 %v6287_v30, %s5258_s7 }
 0x24f   : > { %v1510_v53 = vpop.xlane.xlu0 %1509  ;;  %1581 = vst.msk [vmem:[%s6279_s26 + $0x1e8] sm:$0xff] %vm1263_vm3, %v1513_v5 }
 0x250   : > { %1580 = vst.msk [vmem:[%s6279_s26 + $0x1e0] sm:$0xff] %vm1263_vm3, %v1510_v53  ;;  %1752 = vrot.lane.b32.xlu0 %v6355_v31, %s5258_s7 }
 0x252   : > { %1754 = vrot.lane.b32.xlu1 %v6351_v39, %s5258_s7  ;;  %v1166_v48 = vpop.xlane.xlu1 %1165 }
 0x253   : > { %v1163_v33 = vpop.xlane.xlu0 %1162  ;;  %1295 = vst.msk [vmem:[%s6257_s23 + $0xf8] sm:$0xff] %vm1263_vm3, %v1166_v48 }
 0x254   : > { %1294 = vst.msk [vmem:[%s6257_s23 + $0xf0] sm:$0xff] %vm1263_vm3, %v1163_v33  ;;  %1756 = vrot.lane.b32.xlu0 %v6419_v17, %s5258_s7 }
 0x256   : > { %1758 = vrot.lane.b32.xlu1 %v6415_v57, %s5258_s7  ;;  %v1262_v5 = vpop.xlane.xlu1 %1261 }
 0x257   : > { %v1259_v53 = vpop.xlane.xlu0 %1258  ;;  %1327 = vst.msk [vmem:[%s6257_s23 + $0x1f8] sm:$0xff] %vm1263_vm3, %v1262_v5 }
 0x258   : > { %1326 = vst.msk [vmem:[%s6257_s23 + $0x1f0] sm:$0xff] %vm1263_vm3, %v1259_v53  ;;  %1760 = vrot.lane.b32.xlu0 %v6493_v24, %s5258_s7 }
 0x25a   : > { %1762 = vrot.lane.b32.xlu1 %v6489_v55, %s5258_s7  ;;  %v1423_v48 = vpop.xlane.xlu1 %1422 }
 0x25b   : > { %v1420_v33 = vpop.xlane.xlu0 %1419  ;;  %1551 = vst.msk [vmem:[%s6279_s26 + $0xf8] sm:$0xff] %vm1263_vm3, %v1423_v48 }
 0x25c   : > { %1550 = vst.msk [vmem:[%s6279_s26 + $0xf0] sm:$0xff] %vm1263_vm3, %v1420_v33  ;;  %1764 = vrot.lane.b32.xlu0 %v6557_v44, %s5258_s7 }
 0x25e   : > { %1766 = vrot.lane.b32.xlu1 %v6553_v18, %s5258_s7  ;;  %v1519_v5 = vpop.xlane.xlu1 %1518 }
 0x25f   : > { %v1516_v53 = vpop.xlane.xlu0 %1515  ;;  %1583 = vst.msk [vmem:[%s6279_s26 + $0x1f8] sm:$0xff] %vm1263_vm3, %v1519_v5 }
 0x260   : > { %1582 = vst.msk [vmem:[%s6279_s26 + $0x1f0] sm:$0xff] %vm1263_vm3, %v1516_v53  ;;  %1768 = vrot.lane.b32.xlu0 %v6621_v36, %s5258_s7 }
 0x262   : > { %1770 = vrot.lane.b32.xlu1 %v6617_v47, %s5258_s7  ;;  %v1651_v48 = vpop.permute.xlu1 %1650 }
 0x263   : > { %v1649_v33 = vpop.permute.xlu0 %1648  ;;  %v1843_v23 = vsel %vm1070_vm2, %v1651_v48, 0.0 }
 0x264   : > { %1772 = vrot.lane.b32.xlu0 %v6685_v11, %s5258_s7  ;;  %v1840_v0 = vsel %vm1070_vm2, %v1649_v33, 0.0 }
 0x266   : > { %1774 = vrot.lane.b32.xlu1 %v6681_v21, %s5258_s7  ;;  %v1653_v18 = vpop.permute.xlu1 %1652 }
 0x267   : > { %v1657_v44 = vpop.permute.xlu0 %1656  ;;  %v1846_v21 = vsel %vm1070_vm2, %v1653_v18, 0.0 }
 0x268   : > { %v1852_v33 = vsel %vm1070_vm2, %v1657_v44, 0.0 }
 0x26a   : > { %v1655_v55 = vpop.permute.xlu1 %1654 }
 0x26b   : > { %v1661_v5 = vpop.permute.xlu0 %1660  ;;  %v1849_v4 = vsel %vm1070_vm2, %v1655_v55, 0.0 }
 0x26e   : > { %v1659_v24 = vpop.permute.xlu1 %1658 }
 0x26f   : > { %v1665_v53 = vpop.permute.xlu0 %1664  ;;  %v1855_v26 = vsel %vm1070_vm2, %v1659_v24, 0.0 }
 0x272   : > { %v1663_v57 = vpop.permute.xlu1 %1662 }
 0x273   : > { %v1669_v17 = vpop.permute.xlu0 %1668  ;;  %v1861_v18 = vsel %vm1070_vm2, %v1663_v57, 0.0 }
 0x276   : > { %v1667_v36 = vpop.permute.xlu1 %1666 }
 0x277   : > { %v1673_v39 = vpop.permute.xlu0 %1672 }
 0x27a   : > { %v1671_v31 = vpop.permute.xlu1 %1670 }
 0x27b   : > { %v1677_v47 = vpop.permute.xlu0 %1676 }
 0x27e   : > { %v1675_v30 = vpop.permute.xlu1 %1674 }
 0x27f   : > { %v1681_v50 = vpop.permute.xlu0 %1680 }
 0x282   : > { %v1679_v11 = vpop.permute.xlu1 %1678 }
 0x283   : > { %1841 = vadd.xlane.f32.xlu0 %v1840_v0  ;;  %v1685_v40 = vpop.permute.xlu0 %1684 }
 0x286   : > { %v1683_v1 = vpop.permute.xlu1 %1682 }
 0x287   : > { %1847 = vadd.xlane.f32.xlu0 %v1846_v21  ;;  %v1689_v45 = vpop.permute.xlu0 %1688  ;;  %v1858_v21 = vsel %vm1070_vm2, %v1661_v5, 0.0  ;;  %v1879_v5 = vsel %vm1070_vm2, %v1675_v30, 0.0 }
 0x28a   : > { %1844 = vadd.xlane.f32.xlu1 %v1843_v23  ;;  %v1687_v63 = vpop.permute.xlu1 %1686  ;;  %v1867_v23 = vsel %vm1070_vm2, %v1667_v36, 0.0 }
 0x28b   : > { %1850 = vadd.xlane.f32.xlu0 %v1849_v4  ;;  %v1693_v7 = vpop.permute.xlu0 %1692  ;;  %v1864_v4 = vsel %vm1070_vm2, %v1665_v53, 0.0  ;;  %v1885_v53 = vsel %vm1070_vm2, %v1679_v11, 0.0 }
 0x28e   : > { %1856 = vadd.xlane.f32.xlu1 %v1855_v26  ;;  %v1691_v0 = vpop.permute.xlu1 %1690  ;;  %v1873_v26 = vsel %vm1070_vm2, %v1671_v31, 0.0 }
 0x28f   : > { %1853 = vadd.xlane.f32.xlu0 %v1852_v33  ;;  %v1697_v58 = vpop.permute.xlu0 %1696  ;;  %v1870_v33 = vsel %vm1070_vm2, %v1669_v17, 0.0  ;;  %v1891_v17 = vsel %vm1070_vm2, %v1683_v1, 0.0 }
 0x292   : > { %1862 = vadd.xlane.f32.xlu1 %v1861_v18  ;;  %v1695_v48 = vpop.permute.xlu1 %1694  ;;  %v1876_v18 = vsel %vm1070_vm2, %v1673_v39, 0.0  ;;  %v1897_v39 = vsel %vm1070_vm2, %v1687_v63, 0.0  ;;  %v1912_v63 = vsel %vm1070_vm2, %v1697_v58, 0.0 }
 0x293   : > { %1859 = vadd.xlane.f32.xlu0 %v1858_v21  ;;  %v1701_v55 = vpop.permute.xlu0 %1700 }
 0x296   : > { %1868 = vadd.xlane.f32.xlu1 %v1867_v23  ;;  %v1699_v24 = vpop.permute.xlu1 %1698  ;;  %v1882_v23 = vsel %vm1070_vm2, %v1677_v47, 0.0  ;;  %v1903_v47 = vsel %vm1070_vm2, %v1691_v0, 0.0  ;;  %v1918_v0 = vsel %vm1070_vm2, %v1701_v55, 0.0 }
 0x297   : > { %1865 = vadd.xlane.f32.xlu0 %v1864_v4  ;;  %v1705_v44 = vpop.permute.xlu0 %1704 }
 0x29a   : > { %1874 = vadd.xlane.f32.xlu1 %v1873_v26  ;;  %v1703_v57 = vpop.permute.xlu1 %1702  ;;  %v1888_v26 = vsel %vm1070_vm2, %v1681_v50, 0.0  ;;  %v1909_v50 = vsel %vm1070_vm2, %v1695_v48, 0.0 }
 0x29b   : > { %1871 = vadd.xlane.f32.xlu0 %v1870_v33  ;;  %v1709_v21 = vpop.permute.xlu0 %1708  ;;  %v1894_v33 = vsel %vm1070_vm2, %v1685_v40, 0.0  ;;  %v1915_v40 = vsel %vm1070_vm2, %v1699_v24, 0.0 }
 0x29c   : > { %v1930_v24 = vsel %vm1070_vm2, %v1709_v21, 0.0 }
 0x29e   : > { %1880 = vadd.xlane.f32.xlu1 %v1879_v5  ;;  %v1707_v36 = vpop.permute.xlu1 %1706 }
 0x29f   : > { %1877 = vadd.xlane.f32.xlu0 %v1876_v18  ;;  %v1713_v31 = vpop.permute.xlu0 %1712  ;;  %v1900_v18 = vsel %vm1070_vm2, %v1689_v45, 0.0  ;;  %v1921_v45 = vsel %vm1070_vm2, %v1703_v57, 0.0 }
 0x2a0   : > { %v1936_v57 = vsel %vm1070_vm2, %v1713_v31, 0.0 }
 0x2a2   : > { %1886 = vadd.xlane.f32.xlu1 %v1885_v53  ;;  %v1711_v4 = vpop.permute.xlu1 %1710 }
 0x2a3   : > { %1883 = vadd.xlane.f32.xlu0 %v1882_v23  ;;  %v1717_v5 = vpop.permute.xlu0 %1716  ;;  %v1906_v23 = vsel %vm1070_vm2, %v1693_v7, 0.0  ;;  %v1927_v7 = vsel %vm1070_vm2, %v1707_v36, 0.0  ;;  %v1933_v58 = vsel %vm1070_vm2, %v1711_v4, 0.0 }
 0x2a6   : > { %1892 = vadd.xlane.f32.xlu1 %v1891_v17  ;;  %v1715_v30 = vpop.permute.xlu1 %1714 }
 0x2a7   : > { %1889 = vadd.xlane.f32.xlu0 %v1888_v26  ;;  %v1721_v1 = vpop.permute.xlu0 %1720  ;;  %v1939_v55 = vsel %vm1070_vm2, %v1715_v30, 0.0 }
 0x2a8   : > { %v1948_v4 = vsel %vm1070_vm2, %v1721_v1, 0.0 }
 0x2aa   : > { %1898 = vadd.xlane.f32.xlu1 %v1897_v39  ;;  %v1719_v11 = vpop.permute.xlu1 %1718 }
 0x2ab   : > { %1895 = vadd.xlane.f32.xlu0 %v1894_v33  ;;  %v1725_v17 = vpop.permute.xlu0 %1724  ;;  %v1924_v33 = vsel %vm1070_vm2, %v1705_v44, 0.0  ;;  %v1945_v44 = vsel %vm1070_vm2, %v1719_v11, 0.0 }
 0x2ac   : > { %v1954_v30 = vsel %vm1070_vm2, %v1725_v17, 0.0 }
 0x2ae   : > { %1904 = vadd.xlane.f32.xlu1 %v1903_v47  ;;  %v1723_v53 = vpop.permute.xlu1 %1722 }
 0x2af   : > { %1901 = vadd.xlane.f32.xlu0 %v1900_v18  ;;  %v1729_v39 = vpop.permute.xlu0 %1728  ;;  %v1951_v21 = vsel %vm1070_vm2, %v1723_v53, 0.0 }
 0x2b2   : > { %1910 = vadd.xlane.f32.xlu1 %v1909_v50  ;;  %v1727_v26 = vpop.permute.xlu1 %1726 }
 0x2b3   : > { %1907 = vadd.xlane.f32.xlu0 %v1906_v23  ;;  %v1733_v47 = vpop.permute.xlu0 %1732  ;;  %v1942_v23 = vsel %vm1070_vm2, %v1717_v5, 0.0  ;;  %v1957_v31 = vsel %vm1070_vm2, %v1727_v26, 0.0 }
 0x2b4   : > { %v1966_v53 = vsel %vm1070_vm2, %v1733_v47, 0.0 }
 0x2b6   : > { %1916 = vadd.xlane.f32.xlu1 %v1915_v40  ;;  %v1731_v48 = vpop.permute.xlu1 %1730 }
 0x2b7   : > { %1913 = vadd.xlane.f32.xlu0 %v1912_v63  ;;  %v1737_v50 = vpop.permute.xlu0 %1736  ;;  %v1963_v5 = vsel %vm1070_vm2, %v1731_v48, 0.0 }
 0x2b8   : > { %v1972_v26 = vsel %vm1070_vm2, %v1737_v50, 0.0 }
 0x2ba   : > { %1922 = vadd.xlane.f32.xlu1 %v1921_v45  ;;  %v1735_v18 = vpop.permute.xlu1 %1734 }
 0x2bb   : > { %1919 = vadd.xlane.f32.xlu0 %v1918_v0  ;;  %v1741_v40 = vpop.permute.xlu0 %1740  ;;  %v1960_v0 = vsel %vm1070_vm2, %v1729_v39, 0.0  ;;  %v1969_v1 = vsel %vm1070_vm2, %v1735_v18, 0.0 }
 0x2be   : > { %1928 = vadd.xlane.f32.xlu1 %v1927_v7  ;;  %v1739_v36 = vpop.permute.xlu1 %1738 }
 0x2bf   : > { %1925 = vadd.xlane.f32.xlu0 %v1924_v33  ;;  %v1745_v45 = vpop.permute.xlu0 %1744  ;;  %v1975_v17 = vsel %vm1070_vm2, %v1739_v36, 0.0 }
 0x2c0   : > { %v1984_v18 = vsel %vm1070_vm2, %v1745_v45, 0.0 }
 0x2c2   : > { %1934 = vadd.xlane.f32.xlu1 %v1933_v58  ;;  %v1743_v63 = vpop.permute.xlu1 %1742 }
 0x2c3   : > { %1931 = vadd.xlane.f32.xlu0 %v1930_v24  ;;  %v1749_v7 = vpop.permute.xlu0 %1748  ;;  %v1981_v39 = vsel %vm1070_vm2, %v1743_v63, 0.0  ;;  %v1978_v24 = vsel %vm1070_vm2, %v1741_v40, 0.0 }
 0x2c4   : > { %v1990_v36 = vsel %vm1070_vm2, %v1749_v7, 0.0 }
 0x2c6   : > { %1940 = vadd.xlane.f32.xlu1 %v1939_v55  ;;  %v1747_v11 = vpop.permute.xlu1 %1746 }
 0x2c7   : > { %1937 = vadd.xlane.f32.xlu0 %v1936_v57  ;;  %v1753_v58 = vpop.permute.xlu0 %1752  ;;  %v1987_v47 = vsel %vm1070_vm2, %v1747_v11, 0.0 }
 0x2ca   : > { %1946 = vadd.xlane.f32.xlu1 %v1945_v44  ;;  %v1751_v33 = vpop.permute.xlu1 %1750 }
 0x2cb   : > { %1943 = vadd.xlane.f32.xlu0 %v1942_v23  ;;  %v1757_v55 = vpop.permute.xlu0 %1756  ;;  %v1993_v50 = vsel %vm1070_vm2, %v1751_v33, 0.0 }
 0x2cc   : > { %v2002_v63 = vsel %vm1070_vm2, %v1757_v55, 0.0 }
 0x2ce   : > { %1952 = vadd.xlane.f32.xlu1 %v1951_v21  ;;  %v1755_v48 = vpop.permute.xlu1 %1754 }
 0x2cf   : > { %1949 = vadd.xlane.f32.xlu0 %v1948_v4  ;;  %v1761_v44 = vpop.permute.xlu0 %1760  ;;  %v1999_v21 = vsel %vm1070_vm2, %v1755_v48, 0.0  ;;  %v1996_v4 = vsel %vm1070_vm2, %v1753_v58, 0.0 }
 0x2d0   : > { %v2008_v11 = vsel %vm1070_vm2, %v1761_v44, 0.0  ;;  %v9107_v44 = vld [vmem:[#allocation6_spill] sm:$0xff] }
 0x2d2   : > { %1958 = vadd.xlane.f32.xlu1 %v1957_v31  ;;  %v1759_v57 = vpop.permute.xlu1 %1758 }
 0x2d3   : > { %1955 = vadd.xlane.f32.xlu0 %v1954_v30  ;;  %v2005_v40 = vsel %vm1070_vm2, %v1759_v57, 0.0  ;;  %v1765_v31 = vpop.permute.xlu0 %1764  ;;  %v9106_v57 = vld [vmem:[#allocation11_spill] sm:$0xff] }
 0x2d6   : > { %1964 = vadd.xlane.f32.xlu1 %v1963_v5  ;;  %v1763_v23 = vpop.permute.xlu1 %1762 }
 0x2d7   : > { %1961 = vadd.xlane.f32.xlu0 %v1960_v0  ;;  %v2011_v45 = vsel %vm1070_vm2, %v1763_v23, 0.0  ;;  %v1769_v5 = vpop.permute.xlu0 %1768  ;;  %v9108_v23 = vld [vmem:[#allocation9_spill] sm:$0xff] }
 0x2d8   : > { %v2020_v33 = vsel %vm1070_vm2, %v1769_v5, 0.0 }
 0x2da   : > { %1970 = vadd.xlane.f32.xlu1 %v1969_v1  ;;  %v1767_v30 = vpop.permute.xlu1 %1766 }
 0x2db   : > { %1967 = vadd.xlane.f32.xlu0 %v1966_v53  ;;  %v2017_v1 = vsel %vm1070_vm2, %v1767_v30, 0.0  ;;  %v2014_v53 = vsel %vm1070_vm2, %v1765_v31, 0.0 }
 0x2de   : > { %1976 = vadd.xlane.f32.xlu1 %v1975_v17  ;;  %v1771_v0 = vpop.permute.xlu1 %1770  ;;  %v1773_v17 = vpop.permute.xlu0 %1772 }
 0x2df   : > { %1973 = vadd.xlane.f32.xlu0 %v1972_v26  ;;  %v2023_v7 = vsel %vm1070_vm2, %v1771_v0, 0.0  ;;  %v2026_v48 = vsel %vm1070_vm2, %v1773_v17, 0.0  ;;  %v9115_v17 = vld [vmem:[#allocation35_spill] sm:$0xff] }
 0x2e2   : > { %1982 = vadd.xlane.f32.xlu1 %v1981_v39  ;;  %v1775_v26 = vpop.permute.xlu1 %1774 }
 0x2e3   : > { %1979 = vadd.xlane.f32.xlu0 %v1978_v24  ;;  %v2029_v58 = vsel %vm1070_vm2, %v1775_v26, 0.0  ;;  %v9116_v26 = vld [vmem:[#allocation34_spill] sm:$0xff] }
 0x2e6   : > { %1988 = vadd.xlane.f32.xlu1 %v1987_v47  ;;  %v9105_v47 = vld [vmem:[#allocation3_spill] sm:$0xff] }
 0x2e7   : > { %1985 = vadd.xlane.f32.xlu0 %v1984_v18 }
 0x2ea   : > { %1994 = vadd.xlane.f32.xlu1 %v1993_v50 }
 0x2eb   : > { %1991 = vadd.xlane.f32.xlu0 %v1990_v36 }
 0x2ee   : > { %2000 = vadd.xlane.f32.xlu1 %v1999_v21 }
 0x2ef   : > { %1997 = vadd.xlane.f32.xlu0 %v1996_v4 }
 0x2f2   : > { %2006 = vadd.xlane.f32.xlu1 %v2005_v40  ;;  %v9109_v40 = vld [vmem:[#allocation17_spill] sm:$0xff] }
 0x2f3   : > { %2003 = vadd.xlane.f32.xlu0 %v2002_v63  ;;  %v9110_v63 = vld [vmem:[#allocation16_spill] sm:$0xff] }
 0x2f6   : > { %2012 = vadd.xlane.f32.xlu1 %v2011_v45  ;;  %v9111_v45 = vld [vmem:[#allocation23_spill] sm:$0xff] }
 0x2f7   : > { %2009 = vadd.xlane.f32.xlu0 %v2008_v11  ;;  %v9112_v11 = vld [vmem:[#allocation22_spill] sm:$0xff] }
 0x2fa   : > { %2018 = vadd.xlane.f32.xlu1 %v2017_v1  ;;  %v9113_v1 = vld [vmem:[#allocation29_spill] sm:$0xff] }
 0x2fb   : > { %2015 = vadd.xlane.f32.xlu0 %v2014_v53  ;;  %v9114_v53 = vld [vmem:[#allocation28_spill] sm:$0xff] }
 0x2fe   : > { %2024 = vadd.xlane.f32.xlu1 %v2023_v7 }
 0x2ff   : > { %2021 = vadd.xlane.f32.xlu0 %v2020_v33 }
 0x302   : > { %2030 = vadd.xlane.f32.xlu1 %v2029_v58 }
 0x303   : > { %2027 = vadd.xlane.f32.xlu0 %v2026_v48 }
 0x30c   : > { %v1842_v39 = vpop.xlane.xlu0 %1841 }
 0x30d   : > { %2033 = vst.msk [vmem:[%s6257_s23] sm:$0xff] %vm2032_vm4, %v1842_v39  ;;  %v9117_v39 = vld [vmem:[#allocation41_spill] sm:$0xff] }
 0x310   : > { %v1848_v24 = vpop.xlane.xlu0 %1847 }
 0x311   : > { %2035 = vst.msk [vmem:[%s6257_s23 + $0x10] sm:$0xff] %vm2032_vm4, %v1848_v24  ;;  %v9118_v24 = vld [vmem:[#allocation40_spill] sm:$0xff] }
 0x313   : > { %2163 = vrot.lane.b32.xlu1 %v9105_v47, %s5258_s7  ;;  %v1845_v18 = vpop.xlane.xlu1 %1844 }
 0x314   : > { %v1851_v55 = vpop.xlane.xlu0 %1850  ;;  %2034 = vst.msk [vmem:[%s6257_s23 + $0x8] sm:$0xff] %vm2032_vm4, %v1845_v18 }
 0x315   : > { %2036 = vst.msk [vmem:[%s6257_s23 + $0x18] sm:$0xff] %vm2032_vm4, %v1851_v55 }
 0x317   : > { %2165 = vrot.lane.b32.xlu1 %v9106_v57, %s5258_s7  ;;  %v1857_v50 = vpop.xlane.xlu1 %1856 }
 0x318   : > { %v1854_v36 = vpop.xlane.xlu0 %1853  ;;  %2038 = vst.msk [vmem:[%s6257_s23 + $0x28] sm:$0xff] %vm2032_vm4, %v1857_v50  ;;  %v9119_v50 = vld [vmem:[#allocation47_spill] sm:$0xff] }
 0x319   : > { %2037 = vst.msk [vmem:[%s6257_s23 + $0x20] sm:$0xff] %vm2032_vm4, %v1854_v36  ;;  %2161 = vrot.lane.b32.xlu0 %v9107_v44, %s5258_s7  ;;  %v9120_v36 = vld [vmem:[#allocation46_spill] sm:$0xff] }
 0x31b   : > { %2167 = vrot.lane.b32.xlu1 %v9108_v23, %s5258_s7  ;;  %v1863_v21 = vpop.xlane.xlu1 %1862 }
 0x31c   : > { %v1860_v4 = vpop.xlane.xlu0 %1859  ;;  %2040 = vst.msk [vmem:[%s6257_s23 + $0x38] sm:$0xff] %vm2032_vm4, %v1863_v21 }
 0x31d   : > { %2039 = vst.msk [vmem:[%s6257_s23 + $0x30] sm:$0xff] %vm2032_vm4, %v1860_v4  ;;  %2169 = vrot.lane.b32.xlu0 %v9109_v40, %s5258_s7 }
 0x31f   : > { %2171 = vrot.lane.b32.xlu1 %v9110_v63, %s5258_s7  ;;  %v1869_v31 = vpop.xlane.xlu1 %1868 }
 0x320   : > { %v1866_v30 = vpop.xlane.xlu0 %1865  ;;  %2042 = vst.msk [vmem:[%s6257_s23 + $0x48] sm:$0xff] %vm2032_vm4, %v1869_v31  ;;  %v9121_v31 = vld [vmem:[#allocation53_spill] sm:$0xff] }
 0x321   : > { %2041 = vst.msk [vmem:[%s6257_s23 + $0x40] sm:$0xff] %vm2032_vm4, %v1866_v30  ;;  %2173 = vrot.lane.b32.xlu0 %v9111_v45, %s5258_s7  ;;  %v9122_v30 = vld [vmem:[#allocation52_spill] sm:$0xff] }
 0x323   : > { %2175 = vrot.lane.b32.xlu1 %v9112_v11, %s5258_s7  ;;  %v1875_v5 = vpop.xlane.xlu1 %1874 }
 0x324   : > { %v1872_v0 = vpop.xlane.xlu0 %1871  ;;  %2044 = vst.msk [vmem:[%s6257_s23 + $0x58] sm:$0xff] %vm2032_vm4, %v1875_v5 }
 0x325   : > { %2043 = vst.msk [vmem:[%s6257_s23 + $0x50] sm:$0xff] %vm2032_vm4, %v1872_v0  ;;  %2177 = vrot.lane.b32.xlu0 %v9113_v1, %s5258_s7 }
 0x327   : > { %2179 = vrot.lane.b32.xlu1 %v9114_v53, %s5258_s7  ;;  %v1881_v7 = vpop.xlane.xlu1 %1880 }
 0x328   : > { %v1878_v33 = vpop.xlane.xlu0 %1877  ;;  %2046 = vst.msk [vmem:[%s6257_s23 + $0x68] sm:$0xff] %vm2032_vm4, %v1881_v7  ;;  %v9123_v7 = vld [vmem:[#allocation59_spill] sm:$0xff] }
 0x329   : > { %2045 = vst.msk [vmem:[%s6257_s23 + $0x60] sm:$0xff] %vm2032_vm4, %v1878_v33  ;;  %2181 = vrot.lane.b32.xlu0 %v9115_v17, %s5258_s7  ;;  %v9124_v33 = vld [vmem:[#allocation58_spill] sm:$0xff] }
 0x32b   : > { %2183 = vrot.lane.b32.xlu1 %v9116_v26, %s5258_s7  ;;  %v1887_v58 = vpop.xlane.xlu1 %1886 }
 0x32c   : > { %v1884_v48 = vpop.xlane.xlu0 %1883  ;;  %2048 = vst.msk [vmem:[%s6257_s23 + $0x78] sm:$0xff] %vm2032_vm4, %v1887_v58 }
 0x32d   : > { %2047 = vst.msk [vmem:[%s6257_s23 + $0x70] sm:$0xff] %vm2032_vm4, %v1884_v48  ;;  %2185 = vrot.lane.b32.xlu0 %v9117_v39, %s5258_s7 }
 0x32f   : > { %2187 = vrot.lane.b32.xlu1 %v9118_v24, %s5258_s7  ;;  %v1893_v18 = vpop.xlane.xlu1 %1892 }
 0x330   : > { %v1890_v55 = vpop.xlane.xlu0 %1889  ;;  %2050 = vst.msk [vmem:[%s6257_s23 + $0x88] sm:$0xff] %vm2032_vm4, %v1893_v18  ;;  %v9125_v18 = vld [vmem:[#allocation65_spill] sm:$0xff] }
 0x331   : > { %2049 = vst.msk [vmem:[%s6257_s23 + $0x80] sm:$0xff] %vm2032_vm4, %v1890_v55  ;;  %2189 = vrot.lane.b32.xlu0 %v9119_v50, %s5258_s7  ;;  %v9126_v55 = vld [vmem:[#allocation64_spill] sm:$0xff] }
 0x333   : > { %2191 = vrot.lane.b32.xlu1 %v9120_v36, %s5258_s7  ;;  %v1899_v21 = vpop.xlane.xlu1 %1898 }
 0x334   : > { %v1896_v4 = vpop.xlane.xlu0 %1895  ;;  %2052 = vst.msk [vmem:[%s6257_s23 + $0x98] sm:$0xff] %vm2032_vm4, %v1899_v21 }
 0x335   : > { %2051 = vst.msk [vmem:[%s6257_s23 + $0x90] sm:$0xff] %vm2032_vm4, %v1896_v4  ;;  %2193 = vrot.lane.b32.xlu0 %v9121_v31, %s5258_s7 }
 0x337   : > { %2195 = vrot.lane.b32.xlu1 %v9122_v30, %s5258_s7  ;;  %v1905_v5 = vpop.xlane.xlu1 %1904 }
 0x338   : > { %v1902_v0 = vpop.xlane.xlu0 %1901  ;;  %2054 = vst.msk [vmem:[%s6257_s23 + $0xa8] sm:$0xff] %vm2032_vm4, %v1905_v5  ;;  %v9127_v5 = vld [vmem:[#allocation71_spill] sm:$0xff] }
 0x339   : > { %2053 = vst.msk [vmem:[%s6257_s23 + $0xa0] sm:$0xff] %vm2032_vm4, %v1902_v0  ;;  %2197 = vrot.lane.b32.xlu0 %v9123_v7, %s5258_s7  ;;  %v9128_v0 = vld [vmem:[#allocation70_spill] sm:$0xff] }
 0x33b   : > { %2199 = vrot.lane.b32.xlu1 %v9124_v33, %s5258_s7  ;;  %v1911_v58 = vpop.xlane.xlu1 %1910 }
 0x33c   : > { %v1908_v48 = vpop.xlane.xlu0 %1907  ;;  %2056 = vst.msk [vmem:[%s6257_s23 + $0xb8] sm:$0xff] %vm2032_vm4, %v1911_v58 }
 0x33d   : > { %2055 = vst.msk [vmem:[%s6257_s23 + $0xb0] sm:$0xff] %vm2032_vm4, %v1908_v48  ;;  %2201 = vrot.lane.b32.xlu0 %v9125_v18, %s5258_s7 }
 0x33f   : > { %2203 = vrot.lane.b32.xlu1 %v9126_v55, %s5258_s7  ;;  %v1917_v21 = vpop.xlane.xlu1 %1916  ;;  %v9129_v55 = vld [vmem:[#allocation77_spill] sm:$0xff] }
 0x340   : > { %v1914_v4 = vpop.xlane.xlu0 %1913  ;;  %2058 = vst.msk [vmem:[%s6257_s23 + $0xc8] sm:$0xff] %vm2032_vm4, %v1917_v21  ;;  %v9130_v21 = vld [vmem:[#allocation76_spill] sm:$0xff] }
 0x341   : > { %2057 = vst.msk [vmem:[%s6257_s23 + $0xc0] sm:$0xff] %vm2032_vm4, %v1914_v4  ;;  %2205 = vrot.lane.b32.xlu0 %v9127_v5, %s5258_s7 }
 0x343   : > { %2207 = vrot.lane.b32.xlu1 %v9128_v0, %s5258_s7  ;;  %v1923_v58 = vpop.xlane.xlu1 %1922  ;;  %v9131_v0 = vld [vmem:[#allocation83_spill] sm:$0xff] }
 0x344   : > { %v1920_v48 = vpop.xlane.xlu0 %1919  ;;  %2060 = vst.msk [vmem:[%s6257_s23 + $0xd8] sm:$0xff] %vm2032_vm4, %v1923_v58  ;;  %v9132_v58 = vld [vmem:[#allocation82_spill] sm:$0xff] }
 0x345   : > { %2059 = vst.msk [vmem:[%s6257_s23 + $0xd0] sm:$0xff] %vm2032_vm4, %v1920_v48  ;;  %2209 = vrot.lane.b32.xlu0 %v9129_v55, %s5258_s7 }
 0x347   : > { %2211 = vrot.lane.b32.xlu1 %v9130_v21, %s5258_s7  ;;  %v1929_v4 = vpop.xlane.xlu1 %1928 }
 0x348   : > { %v1926_v5 = vpop.xlane.xlu0 %1925  ;;  %2062 = vst.msk [vmem:[%s6257_s23 + $0xe8] sm:$0xff] %vm2032_vm4, %v1929_v4  ;;  %v9133_v4 = vld [vmem:[#allocation88_spill] sm:$0xff] }
 0x349   : > { %2061 = vst.msk [vmem:[%s6257_s23 + $0xe0] sm:$0xff] %vm2032_vm4, %v1926_v5  ;;  %2213 = vrot.lane.b32.xlu0 %v9131_v0, %s5258_s7 }
 0x34b   : > { %2215 = vrot.lane.b32.xlu1 %v9132_v58, %s5258_s7  ;;  %v1935_v48 = vpop.xlane.xlu1 %1934 }
 0x34c   : > { %v1932_v55 = vpop.xlane.xlu0 %1931  ;;  %2064 = vst.msk [vmem:[%s6257_s23 + $0xf8] sm:$0xff] %vm2032_vm4, %v1935_v48 }
 0x34d   : > { %2063 = vst.msk [vmem:[%s6257_s23 + $0xf0] sm:$0xff] %vm2032_vm4, %v1932_v55  ;;  %2217 = vrot.lane.b32.xlu0 %v6637_v13, %s5258_s7 }
 0x34f   : > { %2219 = vrot.lane.b32.xlu1 %v9133_v4, %s5258_s7  ;;  %v1941_v5 = vpop.xlane.xlu1 %1940  ;;  %v9134_v4 = vld [vmem:[#allocation8_spill] sm:$0xff] }
 0x350   : > { %v1938_v0 = vpop.xlane.xlu0 %1937  ;;  %2066 = vst.msk [vmem:[%s6257_s23 + $0x108] sm:$0xff] %vm2032_vm4, %v1941_v5  ;;  %v9135_v5 = vld [vmem:[#allocation4_spill] sm:$0xff] }
 0x351   : > { %2065 = vst.msk [vmem:[%s6257_s23 + $0x100] sm:$0xff] %vm2032_vm4, %v1938_v0  ;;  %2221 = vrot.lane.b32.xlu0 %v6701_v59, %s5258_s7 }
 0x353   : > { %2223 = vrot.lane.b32.xlu1 %v6697_v25, %s5258_s7  ;;  %v1947_v55 = vpop.xlane.xlu1 %1946  ;;  %v9136_v25 = vld [vmem:[#allocation13_spill] sm:$0xff] }
 0x354   : > { %v1944_v48 = vpop.xlane.xlu0 %1943  ;;  %2068 = vst.msk [vmem:[%s6257_s23 + $0x118] sm:$0xff] %vm2032_vm4, %v1947_v55  ;;  %v9137_v55 = vld [vmem:[#allocation12_spill] sm:$0xff] }
 0x355   : > { %2067 = vst.msk [vmem:[%s6257_s23 + $0x110] sm:$0xff] %vm2032_vm4, %v1944_v48  ;;  %2225 = vrot.lane.b32.xlu0 %v9134_v4, %s5258_s7 }
 0x357   : > { %2227 = vrot.lane.b32.xlu1 %v9135_v5, %s5258_s7  ;;  %v1953_v0 = vpop.xlane.xlu1 %1952  ;;  %v9138_v5 = vld [vmem:[#allocation19_spill] sm:$0xff] }
 0x358   : > { %v1950_v59 = vpop.xlane.xlu0 %1949  ;;  %2070 = vst.msk [vmem:[%s6257_s23 + $0x128] sm:$0xff] %vm2032_vm4, %v1953_v0  ;;  %v9139_v0 = vld [vmem:[#allocation18_spill] sm:$0xff] }
 0x359   : > { %2069 = vst.msk [vmem:[%s6257_s23 + $0x120] sm:$0xff] %vm2032_vm4, %v1950_v59  ;;  %2229 = vrot.lane.b32.xlu0 %v9136_v25, %s5258_s7 }
 0x35b   : > { %2231 = vrot.lane.b32.xlu1 %v9137_v55, %s5258_s7  ;;  %v1959_v48 = vpop.xlane.xlu1 %1958  ;;  %v9140_v55 = vld [vmem:[#allocation25_spill] sm:$0xff] }
 0x35c   : > { %v1956_v4 = vpop.xlane.xlu0 %1955  ;;  %2072 = vst.msk [vmem:[%s6257_s23 + $0x138] sm:$0xff] %vm2032_vm4, %v1959_v48  ;;  %v9141_v48 = vld [vmem:[#allocation24_spill] sm:$0xff] }
 0x35d   : > { %2071 = vst.msk [vmem:[%s6257_s23 + $0x130] sm:$0xff] %vm2032_vm4, %v1956_v4  ;;  %2233 = vrot.lane.b32.xlu0 %v9138_v5, %s5258_s7 }
 0x35f   : > { %2235 = vrot.lane.b32.xlu1 %v9139_v0, %s5258_s7  ;;  %v1965_v59 = vpop.xlane.xlu1 %1964  ;;  %v9142_v0 = vld [vmem:[#allocation31_spill] sm:$0xff] }
 0x360   : > { %v1962_v25 = vpop.xlane.xlu0 %1961  ;;  %2074 = vst.msk [vmem:[%s6257_s23 + $0x148] sm:$0xff] %vm2032_vm4, %v1965_v59  ;;  %v9143_v59 = vld [vmem:[#allocation30_spill] sm:$0xff] }
 0x361   : > { %2073 = vst.msk [vmem:[%s6257_s23 + $0x140] sm:$0xff] %vm2032_vm4, %v1962_v25  ;;  %2237 = vrot.lane.b32.xlu0 %v9140_v55, %s5258_s7 }
 0x363   : > { %2239 = vrot.lane.b32.xlu1 %v9141_v48, %s5258_s7  ;;  %v1971_v4 = vpop.xlane.xlu1 %1970  ;;  %v9144_v48 = vld [vmem:[#allocation37_spill] sm:$0xff] }
 0x364   : > { %v1968_v5 = vpop.xlane.xlu0 %1967  ;;  %2076 = vst.msk [vmem:[%s6257_s23 + $0x158] sm:$0xff] %vm2032_vm4, %v1971_v4  ;;  %v9145_v4 = vld [vmem:[#allocation36_spill] sm:$0xff] }
 0x365   : > { %2075 = vst.msk [vmem:[%s6257_s23 + $0x150] sm:$0xff] %vm2032_vm4, %v1968_v5  ;;  %2241 = vrot.lane.b32.xlu0 %v9142_v0, %s5258_s7 }
 0x367   : > { %2243 = vrot.lane.b32.xlu1 %v9143_v59, %s5258_s7  ;;  %v1977_v25 = vpop.xlane.xlu1 %1976  ;;  %v9146_v59 = vld [vmem:[#allocation43_spill] sm:$0xff] }
 0x368   : > { %v1974_v55 = vpop.xlane.xlu0 %1973  ;;  %2078 = vst.msk [vmem:[%s6257_s23 + $0x168] sm:$0xff] %vm2032_vm4, %v1977_v25  ;;  %v9147_v25 = vld [vmem:[#allocation42_spill] sm:$0xff] }
 0x369   : > { %2077 = vst.msk [vmem:[%s6257_s23 + $0x160] sm:$0xff] %vm2032_vm4, %v1974_v55  ;;  %2245 = vrot.lane.b32.xlu0 %v9144_v48, %s5258_s7 }
 0x36b   : > { %2247 = vrot.lane.b32.xlu1 %v9145_v4, %s5258_s7  ;;  %v1983_v5 = vpop.xlane.xlu1 %1982  ;;  %v9148_v4 = vld [vmem:[#allocation49_spill] sm:$0xff] }
 0x36c   : > { %v1980_v0 = vpop.xlane.xlu0 %1979  ;;  %2080 = vst.msk [vmem:[%s6257_s23 + $0x178] sm:$0xff] %vm2032_vm4, %v1983_v5  ;;  %v9149_v5 = vld [vmem:[#allocation48_spill] sm:$0xff] }
 0x36d   : > { %2079 = vst.msk [vmem:[%s6257_s23 + $0x170] sm:$0xff] %vm2032_vm4, %v1980_v0  ;;  %2249 = vrot.lane.b32.xlu0 %v9146_v59, %s5258_s7 }
 0x36f   : > { %2251 = vrot.lane.b32.xlu1 %v9147_v25, %s5258_s7  ;;  %v1989_v55 = vpop.xlane.xlu1 %1988  ;;  %v9150_v25 = vld [vmem:[#allocation55_spill] sm:$0xff] }
 0x370   : > { %v1986_v48 = vpop.xlane.xlu0 %1985  ;;  %2082 = vst.msk [vmem:[%s6257_s23 + $0x188] sm:$0xff] %vm2032_vm4, %v1989_v55  ;;  %v9151_v55 = vld [vmem:[#allocation54_spill] sm:$0xff] }
 0x371   : > { %2081 = vst.msk [vmem:[%s6257_s23 + $0x180] sm:$0xff] %vm2032_vm4, %v1986_v48  ;;  %2253 = vrot.lane.b32.xlu0 %v9148_v4, %s5258_s7 }
 0x373   : > { %2255 = vrot.lane.b32.xlu1 %v9149_v5, %s5258_s7  ;;  %v1995_v0 = vpop.xlane.xlu1 %1994  ;;  %v9152_v5 = vld [vmem:[#allocation61_spill] sm:$0xff] }
 0x374   : > { %v1992_v59 = vpop.xlane.xlu0 %1991  ;;  %2084 = vst.msk [vmem:[%s6257_s23 + $0x198] sm:$0xff] %vm2032_vm4, %v1995_v0  ;;  %v9153_v0 = vld [vmem:[#allocation60_spill] sm:$0xff] }
 0x375   : > { %2083 = vst.msk [vmem:[%s6257_s23 + $0x190] sm:$0xff] %vm2032_vm4, %v1992_v59  ;;  %2257 = vrot.lane.b32.xlu0 %v9150_v25, %s5258_s7 }
 0x377   : > { %2259 = vrot.lane.b32.xlu1 %v9151_v55, %s5258_s7  ;;  %v2001_v48 = vpop.xlane.xlu1 %2000  ;;  %v9154_v55 = vld [vmem:[#allocation67_spill] sm:$0xff] }
 0x378   : > { %v1998_v4 = vpop.xlane.xlu0 %1997  ;;  %2086 = vst.msk [vmem:[%s6257_s23 + $0x1a8] sm:$0xff] %vm2032_vm4, %v2001_v48  ;;  %v9155_v48 = vld [vmem:[#allocation66_spill] sm:$0xff] }
 0x379   : > { %2085 = vst.msk [vmem:[%s6257_s23 + $0x1a0] sm:$0xff] %vm2032_vm4, %v1998_v4  ;;  %2261 = vrot.lane.b32.xlu0 %v9152_v5, %s5258_s7 }
 0x37b   : > { %2263 = vrot.lane.b32.xlu1 %v9153_v0, %s5258_s7  ;;  %v2007_v59 = vpop.xlane.xlu1 %2006  ;;  %v9156_v0 = vld [vmem:[#allocation73_spill] sm:$0xff] }
 0x37c   : > { %v2004_v25 = vpop.xlane.xlu0 %2003  ;;  %2088 = vst.msk [vmem:[%s6257_s23 + $0x1b8] sm:$0xff] %vm2032_vm4, %v2007_v59  ;;  %v9157_v59 = vld [vmem:[#allocation72_spill] sm:$0xff] }
 0x37d   : > { %2087 = vst.msk [vmem:[%s6257_s23 + $0x1b0] sm:$0xff] %vm2032_vm4, %v2004_v25  ;;  %2265 = vrot.lane.b32.xlu0 %v9154_v55, %s5258_s7 }
 0x37f   : > { %2267 = vrot.lane.b32.xlu1 %v9155_v48, %s5258_s7  ;;  %v2013_v4 = vpop.xlane.xlu1 %2012  ;;  %v9158_v48 = vld [vmem:[#allocation79_spill] sm:$0xff] }
 0x380   : > { %v2010_v5 = vpop.xlane.xlu0 %2009  ;;  %2090 = vst.msk [vmem:[%s6257_s23 + $0x1c8] sm:$0xff] %vm2032_vm4, %v2013_v4  ;;  %v9159_v4 = vld [vmem:[#allocation78_spill] sm:$0xff] }
 0x381   : > { %2089 = vst.msk [vmem:[%s6257_s23 + $0x1c0] sm:$0xff] %vm2032_vm4, %v2010_v5  ;;  %2269 = vrot.lane.b32.xlu0 %v9156_v0, %s5258_s7  ;;  %v9161_v0 = vld [vmem:[#allocation84_spill] sm:$0xff] }
 0x383   : > { %2271 = vrot.lane.b32.xlu1 %v9157_v59, %s5258_s7  ;;  %v2019_v25 = vpop.xlane.xlu1 %2018  ;;  %v9160_v59 = vld [vmem:[#allocation85_spill] sm:$0xff] }
 0x384   : > { %v2016_v55 = vpop.xlane.xlu0 %2015  ;;  %2092 = vst.msk [vmem:[%s6257_s23 + $0x1d8] sm:$0xff] %vm2032_vm4, %v2019_v25 }
 0x385   : > { %2091 = vst.msk [vmem:[%s6257_s23 + $0x1d0] sm:$0xff] %vm2032_vm4, %v2016_v55  ;;  %2273 = vrot.lane.b32.xlu0 %v9158_v48, %s5258_s7  ;;  %v9163_v48 = vld [vmem:[#allocation90_spill] sm:$0xff] }
 0x387   : > { %2275 = vrot.lane.b32.xlu1 %v9159_v4, %s5258_s7  ;;  %v2025_v5 = vpop.xlane.xlu1 %2024  ;;  %v9162_v4 = vld [vmem:[#allocation91_spill] sm:$0xff] }
 0x388   : > { %v2022_v13 = vpop.xlane.xlu0 %2021  ;;  %2094 = vst.msk [vmem:[%s6257_s23 + $0x1e8] sm:$0xff] %vm2032_vm4, %v2025_v5 }
 0x389   : > { %2093 = vst.msk [vmem:[%s6257_s23 + $0x1e0] sm:$0xff] %vm2032_vm4, %v2022_v13  ;;  %2277 = vrot.lane.b32.xlu0 %v9160_v59, %s5258_s7 }
 0x38b   : > { %2279 = vrot.lane.b32.xlu1 %v9161_v0, %s5258_s7  ;;  %v2031_v25 = vpop.xlane.xlu1 %2030 }
 0x38c   : > { %v2028_v55 = vpop.xlane.xlu0 %2027  ;;  %2096 = vst.msk [vmem:[%s6257_s23 + $0x1f8] sm:$0xff] %vm2032_vm4, %v2031_v25 }
 0x38d   : > { %2095 = vst.msk [vmem:[%s6257_s23 + $0x1f0] sm:$0xff] %vm2032_vm4, %v2028_v55  ;;  %2281 = vrot.lane.b32.xlu0 %v9162_v4, %s5258_s7 }
 0x38f   : > { %2283 = vrot.lane.b32.xlu1 %v9163_v48, %s5258_s7  ;;  %v2164_v5 = vpop.permute.xlu1 %2163 }
 0x390   : > { %v2162_v13 = vpop.permute.xlu0 %2161  ;;  %v2356_v17 = vsel %vm1070_vm2, %v2164_v5, 0.0 }
 0x391   : > { %2285 = vrot.lane.b32.xlu0 %v6717_v22, %s5258_s7  ;;  %v2353_v50 = vsel %vm1070_vm2, %v2162_v13, 0.0 }
 0x393   : > { %2287 = vrot.lane.b32.xlu1 %v6713_v3, %s5258_s7  ;;  %v2166_v0 = vpop.permute.xlu1 %2165 }
 0x394   : > { %v2170_v59 = vpop.permute.xlu0 %2169  ;;  %v2359_v3 = vsel %vm1070_vm2, %v2166_v0, 0.0 }
 0x395   : > { %v2365_v13 = vsel %vm1070_vm2, %v2170_v59, 0.0 }
 0x397   : > { %v2168_v58 = vpop.permute.xlu1 %2167 }
 0x398   : > { %v2174_v25 = vpop.permute.xlu0 %2173  ;;  %v2362_v53 = vsel %vm1070_vm2, %v2168_v58, 0.0 }
 0x39b   : > { %v2172_v21 = vpop.permute.xlu1 %2171 }
 0x39c   : > { %v2178_v55 = vpop.permute.xlu0 %2177  ;;  %v2368_v45 = vsel %vm1070_vm2, %v2172_v21, 0.0 }
 0x39f   : > { %v2176_v18 = vpop.permute.xlu1 %2175 }
 0x3a0   : > { %v2182_v33 = vpop.permute.xlu0 %2181  ;;  %v2374_v0 = vsel %vm1070_vm2, %v2176_v18, 0.0 }
 0x3a3   : > { %v2180_v4 = vpop.permute.xlu1 %2179 }
 0x3a4   : > { %v2186_v7 = vpop.permute.xlu0 %2185 }
 0x3a7   : > { %v2184_v30 = vpop.permute.xlu1 %2183 }
 0x3a8   : > { %v2190_v48 = vpop.permute.xlu0 %2189 }
 0x3ab   : > { %v2188_v31 = vpop.permute.xlu1 %2187 }
 0x3ac   : > { %v2194_v36 = vpop.permute.xlu0 %2193 }
 0x3af   : > { %v2192_v22 = vpop.permute.xlu1 %2191 }
 0x3b0   : > { %2354 = vadd.xlane.f32.xlu0 %v2353_v50  ;;  %v2198_v24 = vpop.permute.xlu0 %2197 }
 0x3b3   : > { %v2196_v39 = vpop.permute.xlu1 %2195 }
 0x3b4   : > { %2360 = vadd.xlane.f32.xlu0 %v2359_v3  ;;  %v2202_v26 = vpop.permute.xlu0 %2201  ;;  %v2371_v3 = vsel %vm1070_vm2, %v2174_v25, 0.0  ;;  %v2392_v25 = vsel %vm1070_vm2, %v2188_v31, 0.0 }
 0x3b7   : > { %2357 = vadd.xlane.f32.xlu1 %v2356_v17  ;;  %v2200_v1 = vpop.permute.xlu1 %2199  ;;  %v2380_v17 = vsel %vm1070_vm2, %v2180_v4, 0.0 }
 0x3b8   : > { %2363 = vadd.xlane.f32.xlu0 %v2362_v53  ;;  %v2206_v11 = vpop.permute.xlu0 %2205  ;;  %v2377_v53 = vsel %vm1070_vm2, %v2178_v55, 0.0  ;;  %v2398_v55 = vsel %vm1070_vm2, %v2192_v22, 0.0 }
 0x3bb   : > { %2369 = vadd.xlane.f32.xlu1 %v2368_v45  ;;  %v2204_v50 = vpop.permute.xlu1 %2203  ;;  %v2386_v45 = vsel %vm1070_vm2, %v2184_v30, 0.0 }
 0x3bc   : > { %2366 = vadd.xlane.f32.xlu0 %v2365_v13  ;;  %v2210_v63 = vpop.permute.xlu0 %2209  ;;  %v2383_v13 = vsel %vm1070_vm2, %v2182_v33, 0.0  ;;  %v2404_v33 = vsel %vm1070_vm2, %v2196_v39, 0.0 }
 0x3bf   : > { %2375 = vadd.xlane.f32.xlu1 %v2374_v0  ;;  %v2208_v5 = vpop.permute.xlu1 %2207  ;;  %v2389_v0 = vsel %vm1070_vm2, %v2186_v7, 0.0  ;;  %v2410_v7 = vsel %vm1070_vm2, %v2200_v1, 0.0 }
 0x3c0   : > { %2372 = vadd.xlane.f32.xlu0 %v2371_v3  ;;  %v2214_v58 = vpop.permute.xlu0 %2213 }
 0x3c3   : > { %2381 = vadd.xlane.f32.xlu1 %v2380_v17  ;;  %v2212_v21 = vpop.permute.xlu1 %2211  ;;  %v2395_v17 = vsel %vm1070_vm2, %v2190_v48, 0.0  ;;  %v2416_v48 = vsel %vm1070_vm2, %v2204_v50, 0.0  ;;  %v2431_v50 = vsel %vm1070_vm2, %v2214_v58, 0.0 }
 0x3c4   : > { %2378 = vadd.xlane.f32.xlu0 %v2377_v53  ;;  %v2218_v59 = vpop.permute.xlu0 %2217  ;;  %v2428_v1 = vsel %vm1070_vm2, %v2212_v21, 0.0 }
 0x3c7   : > { %2387 = vadd.xlane.f32.xlu1 %v2386_v45  ;;  %v2216_v18 = vpop.permute.xlu1 %2215  ;;  %v2401_v45 = vsel %vm1070_vm2, %v2194_v36, 0.0  ;;  %v2422_v36 = vsel %vm1070_vm2, %v2208_v5, 0.0 }
 0x3c8   : > { %2384 = vadd.xlane.f32.xlu0 %v2383_v13  ;;  %v2222_v3 = vpop.permute.xlu0 %2221  ;;  %v2407_v13 = vsel %vm1070_vm2, %v2198_v24, 0.0  ;;  %v2425_v24 = vsel %vm1070_vm2, %v2210_v63, 0.0 }
 0x3c9   : > { %v2443_v21 = vsel %vm1070_vm2, %v2222_v3, 0.0 }
 0x3cb   : > { %2393 = vadd.xlane.f32.xlu1 %v2392_v25  ;;  %v2220_v4 = vpop.permute.xlu1 %2219 }
 0x3cc   : > { %2390 = vadd.xlane.f32.xlu0 %v2389_v0  ;;  %v2226_v30 = vpop.permute.xlu0 %2225  ;;  %v2413_v0 = vsel %vm1070_vm2, %v2202_v26, 0.0  ;;  %v2434_v26 = vsel %vm1070_vm2, %v2216_v18, 0.0 }
 0x3cd   : > { %v2449_v18 = vsel %vm1070_vm2, %v2226_v30, 0.0 }
 0x3cf   : > { %2399 = vadd.xlane.f32.xlu1 %v2398_v55  ;;  %v2224_v53 = vpop.permute.xlu1 %2223 }
 0x3d0   : > { %2396 = vadd.xlane.f32.xlu0 %v2395_v17  ;;  %v2230_v25 = vpop.permute.xlu0 %2229  ;;  %v2419_v17 = vsel %vm1070_vm2, %v2206_v11, 0.0  ;;  %v2440_v11 = vsel %vm1070_vm2, %v2220_v4, 0.0  ;;  %v2446_v63 = vsel %vm1070_vm2, %v2224_v53, 0.0 }
 0x3d3   : > { %2405 = vadd.xlane.f32.xlu1 %v2404_v33  ;;  %v2228_v31 = vpop.permute.xlu1 %2227 }
 0x3d4   : > { %2402 = vadd.xlane.f32.xlu0 %v2401_v45  ;;  %v2234_v39 = vpop.permute.xlu0 %2233  ;;  %v2452_v58 = vsel %vm1070_vm2, %v2228_v31, 0.0 }
 0x3d5   : > { %v2461_v53 = vsel %vm1070_vm2, %v2234_v39, 0.0 }
 0x3d7   : > { %2411 = vadd.xlane.f32.xlu1 %v2410_v7  ;;  %v2232_v22 = vpop.permute.xlu1 %2231 }
 0x3d8   : > { %2408 = vadd.xlane.f32.xlu0 %v2407_v13  ;;  %v2238_v33 = vpop.permute.xlu0 %2237  ;;  %v2437_v13 = vsel %vm1070_vm2, %v2218_v59, 0.0  ;;  %v2458_v59 = vsel %vm1070_vm2, %v2232_v22, 0.0 }
 0x3d9   : > { %v2467_v31 = vsel %vm1070_vm2, %v2238_v33, 0.0 }
 0x3db   : > { %2417 = vadd.xlane.f32.xlu1 %v2416_v48  ;;  %v2236_v55 = vpop.permute.xlu1 %2235 }
 0x3dc   : > { %2414 = vadd.xlane.f32.xlu0 %v2413_v0  ;;  %v2242_v7 = vpop.permute.xlu0 %2241  ;;  %v2464_v3 = vsel %vm1070_vm2, %v2236_v55, 0.0 }
 0x3df   : > { %2423 = vadd.xlane.f32.xlu1 %v2422_v36  ;;  %v2240_v45 = vpop.permute.xlu1 %2239 }
 0x3e0   : > { %2420 = vadd.xlane.f32.xlu0 %v2419_v17  ;;  %v2246_v48 = vpop.permute.xlu0 %2245  ;;  %v2455_v17 = vsel %vm1070_vm2, %v2230_v25, 0.0  ;;  %v2470_v30 = vsel %vm1070_vm2, %v2240_v45, 0.0 }
 0x3e1   : > { %v2479_v55 = vsel %vm1070_vm2, %v2246_v48, 0.0 }
 0x3e3   : > { %2429 = vadd.xlane.f32.xlu1 %v2428_v1  ;;  %v2244_v5 = vpop.permute.xlu1 %2243 }
 0x3e4   : > { %2426 = vadd.xlane.f32.xlu0 %v2425_v24  ;;  %v2250_v36 = vpop.permute.xlu0 %2249  ;;  %v2476_v25 = vsel %vm1070_vm2, %v2244_v5, 0.0 }
 0x3e5   : > { %v2485_v45 = vsel %vm1070_vm2, %v2250_v36, 0.0 }
 0x3e7   : > { %2435 = vadd.xlane.f32.xlu1 %v2434_v26  ;;  %v2248_v0 = vpop.permute.xlu1 %2247 }
 0x3e8   : > { %2432 = vadd.xlane.f32.xlu0 %v2431_v50  ;;  %v2254_v1 = vpop.permute.xlu0 %2253  ;;  %v2473_v50 = vsel %vm1070_vm2, %v2242_v7, 0.0  ;;  %v2482_v39 = vsel %vm1070_vm2, %v2248_v0, 0.0 }
 0x3eb   : > { %2441 = vadd.xlane.f32.xlu1 %v2440_v11  ;;  %v2252_v4 = vpop.permute.xlu1 %2251 }
 0x3ec   : > { %2438 = vadd.xlane.f32.xlu0 %v2437_v13  ;;  %v2258_v26 = vpop.permute.xlu0 %2257  ;;  %v2488_v33 = vsel %vm1070_vm2, %v2252_v4, 0.0 }
 0x3ed   : > { %v2497_v0 = vsel %vm1070_vm2, %v2258_v26, 0.0 }
 0x3ef   : > { %2447 = vadd.xlane.f32.xlu1 %v2446_v63  ;;  %v2256_v24 = vpop.permute.xlu1 %2255 }
 0x3f0   : > { %2444 = vadd.xlane.f32.xlu0 %v2443_v21  ;;  %v2262_v11 = vpop.permute.xlu0 %2261  ;;  %v2494_v7 = vsel %vm1070_vm2, %v2256_v24, 0.0  ;;  %v2491_v21 = vsel %vm1070_vm2, %v2254_v1, 0.0 }
 0x3f1   : > { %v2503_v4 = vsel %vm1070_vm2, %v2262_v11, 0.0 }
 0x3f3   : > { %2453 = vadd.xlane.f32.xlu1 %v2452_v58  ;;  %v2260_v22 = vpop.permute.xlu1 %2259 }
 0x3f4   : > { %2450 = vadd.xlane.f32.xlu0 %v2449_v18  ;;  %v2266_v63 = vpop.permute.xlu0 %2265  ;;  %v2500_v48 = vsel %vm1070_vm2, %v2260_v22, 0.0 }
 0x3f7   : > { %2459 = vadd.xlane.f32.xlu1 %v2458_v59  ;;  %v2264_v13 = vpop.permute.xlu1 %2263 }
 0x3f8   : > { %2456 = vadd.xlane.f32.xlu0 %v2455_v17  ;;  %v2270_v58 = vpop.permute.xlu0 %2269  ;;  %v2506_v36 = vsel %vm1070_vm2, %v2264_v13, 0.0 }
 0x3f9   : > { %v2515_v24 = vsel %vm1070_vm2, %v2270_v58, 0.0 }
 0x3fb   : > { %2465 = vadd.xlane.f32.xlu1 %v2464_v3  ;;  %v2268_v5 = vpop.permute.xlu1 %2267 }
 0x3fc   : > { %2462 = vadd.xlane.f32.xlu0 %v2461_v53  ;;  %v2274_v59 = vpop.permute.xlu0 %2273  ;;  %v2512_v3 = vsel %vm1070_vm2, %v2268_v5, 0.0  ;;  %v2509_v53 = vsel %vm1070_vm2, %v2266_v63, 0.0 }
 0x3fd   : > { %v2521_v22 = vsel %vm1070_vm2, %v2274_v59, 0.0 }
 0x3ff   : > { %2471 = vadd.xlane.f32.xlu1 %v2470_v30  ;;  %v2272_v18 = vpop.permute.xlu1 %2271 }
 0x400   : > { %2468 = vadd.xlane.f32.xlu0 %v2467_v31  ;;  %v2518_v1 = vsel %vm1070_vm2, %v2272_v18, 0.0  ;;  %v2278_v30 = vpop.permute.xlu0 %2277 }
 0x403   : > { %2477 = vadd.xlane.f32.xlu1 %v2476_v25  ;;  %v2276_v17 = vpop.permute.xlu1 %2275 }
 0x404   : > { %2474 = vadd.xlane.f32.xlu0 %v2473_v50  ;;  %v2524_v26 = vsel %vm1070_vm2, %v2276_v17, 0.0  ;;  %v2282_v25 = vpop.permute.xlu0 %2281 }
 0x405   : > { %v2533_v13 = vsel %vm1070_vm2, %v2282_v25, 0.0 }
 0x407   : > { %2483 = vadd.xlane.f32.xlu1 %v2482_v39  ;;  %v2280_v31 = vpop.permute.xlu1 %2279 }
 0x408   : > { %2480 = vadd.xlane.f32.xlu0 %v2479_v55  ;;  %v2530_v39 = vsel %vm1070_vm2, %v2280_v31, 0.0  ;;  %v2527_v55 = vsel %vm1070_vm2, %v2278_v30, 0.0 }
 0x40b   : > { %2489 = vadd.xlane.f32.xlu1 %v2488_v33  ;;  %v2284_v50 = vpop.permute.xlu1 %2283  ;;  %v2286_v33 = vpop.permute.xlu0 %2285 }
 0x40c   : > { %2486 = vadd.xlane.f32.xlu0 %v2485_v45  ;;  %v2536_v11 = vsel %vm1070_vm2, %v2284_v50, 0.0  ;;  %v2539_v5 = vsel %vm1070_vm2, %v2286_v33, 0.0 }
 0x40f   : > { %2495 = vadd.xlane.f32.xlu1 %v2494_v7  ;;  %v2288_v45 = vpop.permute.xlu1 %2287 }
 0x410   : > { %2492 = vadd.xlane.f32.xlu0 %v2491_v21  ;;  %v2542_v63 = vsel %vm1070_vm2, %v2288_v45, 0.0 }
 0x413   : > { %2501 = vadd.xlane.f32.xlu1 %v2500_v48 }
 0x414   : > { %2498 = vadd.xlane.f32.xlu0 %v2497_v0 }
 0x417   : > { %2507 = vadd.xlane.f32.xlu1 %v2506_v36 }
 0x418   : > { %2504 = vadd.xlane.f32.xlu0 %v2503_v4 }
 0x41b   : > { %2513 = vadd.xlane.f32.xlu1 %v2512_v3 }
 0x41c   : > { %2510 = vadd.xlane.f32.xlu0 %v2509_v53 }
 0x41f   : > { %2519 = vadd.xlane.f32.xlu1 %v2518_v1 }
 0x420   : > { %2516 = vadd.xlane.f32.xlu0 %v2515_v24 }
 0x423   : > { %2525 = vadd.xlane.f32.xlu1 %v2524_v26 }
 0x424   : > { %2522 = vadd.xlane.f32.xlu0 %v2521_v22 }
 0x427   : > { %2531 = vadd.xlane.f32.xlu1 %v2530_v39 }
 0x428   : > { %2528 = vadd.xlane.f32.xlu0 %v2527_v55 }
 0x42b   : > { %2537 = vadd.xlane.f32.xlu1 %v2536_v11 }
 0x42c   : > { %2534 = vadd.xlane.f32.xlu0 %v2533_v13 }
 0x42f   : > { %2543 = vadd.xlane.f32.xlu1 %v2542_v63 }
 0x430   : > { %2540 = vadd.xlane.f32.xlu0 %v2539_v5 }
 0x439   : > { %v2355_v7 = vpop.xlane.xlu0 %2354 }
 0x43a   : > { %2545 = vst.msk [vmem:[%s6279_s26] sm:$0xff] %vm2032_vm4, %v2355_v7 }
 0x43d   : > { %v2361_v21 = vpop.xlane.xlu0 %2360 }
 0x43e   : > { %2547 = vst.msk [vmem:[%s6279_s26 + $0x10] sm:$0xff] %vm2032_vm4, %v2361_v21 }
 0x440   : > { %2611 = vrot.lane.b32.xlu1 %v5472_v8, %s5259_s8  ;;  %v2358_v48 = vpop.xlane.xlu1 %2357 }
 0x441   : > { %v2364_v0 = vpop.xlane.xlu0 %2363  ;;  %2546 = vst.msk [vmem:[%s6279_s26 + $0x8] sm:$0xff] %vm2032_vm4, %v2358_v48 }
 0x442   : > { %2548 = vst.msk [vmem:[%s6279_s26 + $0x18] sm:$0xff] %vm2032_vm4, %v2364_v0 }
 0x444   : > { %2613 = vrot.lane.b32.xlu1 %v5661_v27, %s5259_s8  ;;  %v2370_v58 = vpop.xlane.xlu1 %2369 }
 0x445   : > { %v2367_v18 = vpop.xlane.xlu0 %2366  ;;  %2550 = vst.msk [vmem:[%s6279_s26 + $0x28] sm:$0xff] %vm2032_vm4, %v2370_v58 }
 0x446   : > { %2549 = vst.msk [vmem:[%s6279_s26 + $0x20] sm:$0xff] %vm2032_vm4, %v2367_v18  ;;  %2609 = vrot.lane.b32.xlu0 %v5485_v16, %s5259_s8 }
 0x448   : > { %2615 = vrot.lane.b32.xlu1 %v5526_v34, %s5259_s8  ;;  %v2376_v36 = vpop.xlane.xlu1 %2375 }
 0x449   : > { %v2373_v4 = vpop.xlane.xlu0 %2372  ;;  %2552 = vst.msk [vmem:[%s6279_s26 + $0x38] sm:$0xff] %vm2032_vm4, %v2376_v36  ;;  %v9164_v36 = vld [vmem:[#allocation92_spill] sm:$0xff] }
 0x44a   : > { %2551 = vst.msk [vmem:[%s6279_s26 + $0x30] sm:$0xff] %vm2032_vm4, %v2373_v4  ;;  %2617 = vrot.lane.b32.xlu0 %v5699_v46, %s5259_s8 }
 0x44c   : > { %2619 = vrot.lane.b32.xlu1 %v5691_v41, %s5259_s8  ;;  %v2382_v59 = vpop.xlane.xlu1 %2381 }
 0x44d   : > { %v2379_v17 = vpop.xlane.xlu0 %2378  ;;  %2554 = vst.msk [vmem:[%s6279_s26 + $0x48] sm:$0xff] %vm2032_vm4, %v2382_v59 }
 0x44e   : > { %2553 = vst.msk [vmem:[%s6279_s26 + $0x40] sm:$0xff] %vm2032_vm4, %v2379_v17  ;;  %2621 = vrot.lane.b32.xlu0 %v5819_v35, %s5259_s8  ;;  %v9165_v17 = vld [vmem:[#allocation5_spill] sm:$0xff] }
 0x450   : > { %2623 = vrot.lane.b32.xlu1 %v5813_v51, %s5259_s8  ;;  %v2388_v3 = vpop.xlane.xlu1 %2387 }
 0x451   : > { %v2385_v53 = vpop.xlane.xlu0 %2384  ;;  %2556 = vst.msk [vmem:[%s6279_s26 + $0x58] sm:$0xff] %vm2032_vm4, %v2388_v3  ;;  %v9166_v3 = vld [vmem:[#allocation2_spill] sm:$0xff] }
 0x452   : > { %2555 = vst.msk [vmem:[%s6279_s26 + $0x50] sm:$0xff] %vm2032_vm4, %v2385_v53  ;;  %2625 = vrot.lane.b32.xlu0 %v5929_v12, %s5259_s8 }
 0x454   : > { %2627 = vrot.lane.b32.xlu1 %v5923_v49, %s5259_s8  ;;  %v2394_v1 = vpop.xlane.xlu1 %2393 }
 0x455   : > { %v2391_v24 = vpop.xlane.xlu0 %2390  ;;  %2558 = vst.msk [vmem:[%s6279_s26 + $0x68] sm:$0xff] %vm2032_vm4, %v2394_v1 }
 0x456   : > { %2557 = vst.msk [vmem:[%s6279_s26 + $0x60] sm:$0xff] %vm2032_vm4, %v2391_v24  ;;  %2629 = vrot.lane.b32.xlu0 %v6003_v9, %s5259_s8  ;;  %v9167_v24 = vld [vmem:[#allocation10_spill] sm:$0xff] }
 0x458   : > { %2631 = vrot.lane.b32.xlu1 %v5995_v20, %s5259_s8  ;;  %v2400_v30 = vpop.xlane.xlu1 %2399 }
 0x459   : > { %v2397_v31 = vpop.xlane.xlu0 %2396  ;;  %2560 = vst.msk [vmem:[%s6279_s26 + $0x78] sm:$0xff] %vm2032_vm4, %v2400_v30  ;;  %v9168_v30 = vld [vmem:[#allocation7_spill] sm:$0xff] }
 0x45a   : > { %2559 = vst.msk [vmem:[%s6279_s26 + $0x70] sm:$0xff] %vm2032_vm4, %v2397_v31  ;;  %2633 = vrot.lane.b32.xlu0 %v6075_v61, %s5259_s8 }
 0x45c   : > { %2635 = vrot.lane.b32.xlu1 %v6067_v2, %s5259_s8  ;;  %v2406_v26 = vpop.xlane.xlu1 %2405 }
 0x45d   : > { %v2403_v22 = vpop.xlane.xlu0 %2402  ;;  %2562 = vst.msk [vmem:[%s6279_s26 + $0x88] sm:$0xff] %vm2032_vm4, %v2406_v26 }
 0x45e   : > { %2561 = vst.msk [vmem:[%s6279_s26 + $0x80] sm:$0xff] %vm2032_vm4, %v2403_v22  ;;  %2637 = vrot.lane.b32.xlu0 %v6147_v43, %s5259_s8  ;;  %v9169_v22 = vld [vmem:[#allocation15_spill] sm:$0xff] }
 0x460   : > { %2639 = vrot.lane.b32.xlu1 %v6139_v19, %s5259_s8  ;;  %v2412_v25 = vpop.xlane.xlu1 %2411 }
 0x461   : > { %v2409_v50 = vpop.xlane.xlu0 %2408  ;;  %2564 = vst.msk [vmem:[%s6279_s26 + $0x98] sm:$0xff] %vm2032_vm4, %v2412_v25  ;;  %v9170_v25 = vld [vmem:[#allocation14_spill] sm:$0xff] }
 0x462   : > { %2563 = vst.msk [vmem:[%s6279_s26 + $0x90] sm:$0xff] %vm2032_vm4, %v2409_v50  ;;  %2641 = vrot.lane.b32.xlu0 %v6211_v10, %s5259_s8 }
 0x464   : > { %2643 = vrot.lane.b32.xlu1 %v6207_v62, %s5259_s8  ;;  %v2418_v39 = vpop.xlane.xlu1 %2417 }
 0x465   : > { %v2415_v55 = vpop.xlane.xlu0 %2414  ;;  %2566 = vst.msk [vmem:[%s6279_s26 + $0xa8] sm:$0xff] %vm2032_vm4, %v2418_v39 }
 0x466   : > { %2565 = vst.msk [vmem:[%s6279_s26 + $0xa0] sm:$0xff] %vm2032_vm4, %v2415_v55  ;;  %2645 = vrot.lane.b32.xlu0 %v6269_v37, %s5259_s8  ;;  %v9171_v55 = vld [vmem:[#allocation21_spill] sm:$0xff] }
 0x468   : > { %2647 = vrot.lane.b32.xlu1 %v6265_v54, %s5259_s8  ;;  %v2424_v11 = vpop.xlane.xlu1 %2423 }
 0x469   : > { %v2421_v13 = vpop.xlane.xlu0 %2420  ;;  %2568 = vst.msk [vmem:[%s6279_s26 + $0xb8] sm:$0xff] %vm2032_vm4, %v2424_v11  ;;  %v9172_v11 = vld [vmem:[#allocation20_spill] sm:$0xff] }
 0x46a   : > { %2567 = vst.msk [vmem:[%s6279_s26 + $0xb0] sm:$0xff] %vm2032_vm4, %v2421_v13  ;;  %2649 = vrot.lane.b32.xlu0 %v6339_v28, %s5259_s8 }
 0x46c   : > { %2651 = vrot.lane.b32.xlu1 %v6335_v52, %s5259_s8  ;;  %v2430_v33 = vpop.xlane.xlu1 %2429 }
 0x46d   : > { %v2427_v45 = vpop.xlane.xlu0 %2426  ;;  %2570 = vst.msk [vmem:[%s6279_s26 + $0xc8] sm:$0xff] %vm2032_vm4, %v2430_v33 }
 0x46e   : > { %2569 = vst.msk [vmem:[%s6279_s26 + $0xc0] sm:$0xff] %vm2032_vm4, %v2427_v45  ;;  %2653 = vrot.lane.b32.xlu0 %v6403_v60, %s5259_s8  ;;  %v9173_v45 = vld [vmem:[#allocation27_spill] sm:$0xff] }
 0x470   : > { %2655 = vrot.lane.b32.xlu1 %v6399_v6, %s5259_s8  ;;  %v2436_v63 = vpop.xlane.xlu1 %2435 }
 0x471   : > { %v2433_v5 = vpop.xlane.xlu0 %2432  ;;  %2572 = vst.msk [vmem:[%s6279_s26 + $0xd8] sm:$0xff] %vm2032_vm4, %v2436_v63  ;;  %v9174_v63 = vld [vmem:[#allocation26_spill] sm:$0xff] }
 0x472   : > { %2571 = vst.msk [vmem:[%s6279_s26 + $0xd0] sm:$0xff] %vm2032_vm4, %v2433_v5  ;;  %2657 = vrot.lane.b32.xlu0 %v6477_v56, %s5259_s8 }
 0x474   : > { %2659 = vrot.lane.b32.xlu1 %v6473_v42, %s5259_s8  ;;  %v2442_v7 = vpop.xlane.xlu1 %2441 }
 0x475   : > { %v2439_v21 = vpop.xlane.xlu0 %2438  ;;  %2574 = vst.msk [vmem:[%s6279_s26 + $0xe8] sm:$0xff] %vm2032_vm4, %v2442_v7 }
 0x476   : > { %2573 = vst.msk [vmem:[%s6279_s26 + $0xe0] sm:$0xff] %vm2032_vm4, %v2439_v21  ;;  %2661 = vrot.lane.b32.xlu0 %v6541_v15, %s5259_s8  ;;  %v9175_v21 = vld [vmem:[#allocation33_spill] sm:$0xff] }
 0x478   : > { %2663 = vrot.lane.b32.xlu1 %v6537_v32, %s5259_s8  ;;  %v2448_v48 = vpop.xlane.xlu1 %2447 }
 0x479   : > { %v2445_v0 = vpop.xlane.xlu0 %2444  ;;  %2576 = vst.msk [vmem:[%s6279_s26 + $0xf8] sm:$0xff] %vm2032_vm4, %v2448_v48  ;;  %v9176_v48 = vld [vmem:[#allocation32_spill] sm:$0xff] }
 0x47a   : > { %2575 = vst.msk [vmem:[%s6279_s26 + $0xf0] sm:$0xff] %vm2032_vm4, %v2445_v0  ;;  %2665 = vrot.lane.b32.xlu0 %v6605_v38, %s5259_s8 }
 0x47c   : > { %2667 = vrot.lane.b32.xlu1 %v6601_v29, %s5259_s8  ;;  %v2454_v58 = vpop.xlane.xlu1 %2453 }
 0x47d   : > { %v2451_v18 = vpop.xlane.xlu0 %2450  ;;  %2578 = vst.msk [vmem:[%s6279_s26 + $0x108] sm:$0xff] %vm2032_vm4, %v2454_v58 }
 0x47e   : > { %2577 = vst.msk [vmem:[%s6279_s26 + $0x100] sm:$0xff] %vm2032_vm4, %v2451_v18  ;;  %2669 = vrot.lane.b32.xlu0 %v6669_v14, %s5259_s8  ;;  %v9177_v18 = vld [vmem:[#allocation39_spill] sm:$0xff] }
 0x480   : > { %2671 = vrot.lane.b32.xlu1 %v9164_v36, %s5259_s8  ;;  %v2460_v4 = vpop.xlane.xlu1 %2459 }
 0x481   : > { %v2457_v59 = vpop.xlane.xlu0 %2456  ;;  %2580 = vst.msk [vmem:[%s6279_s26 + $0x118] sm:$0xff] %vm2032_vm4, %v2460_v4  ;;  %v9178_v4 = vld [vmem:[#allocation38_spill] sm:$0xff] }
 0x482   : > { %2579 = vst.msk [vmem:[%s6279_s26 + $0x110] sm:$0xff] %vm2032_vm4, %v2457_v59  ;;  %2673 = vrot.lane.b32.xlu0 %v9165_v17, %s5259_s8 }
 0x484   : > { %2675 = vrot.lane.b32.xlu1 %v9166_v3, %s5259_s8  ;;  %v2466_v53 = vpop.xlane.xlu1 %2465 }
 0x485   : > { %v2463_v1 = vpop.xlane.xlu0 %2462  ;;  %2582 = vst.msk [vmem:[%s6279_s26 + $0x128] sm:$0xff] %vm2032_vm4, %v2466_v53 }
 0x486   : > { %2581 = vst.msk [vmem:[%s6279_s26 + $0x120] sm:$0xff] %vm2032_vm4, %v2463_v1  ;;  %2677 = vrot.lane.b32.xlu0 %v9167_v24, %s5259_s8  ;;  %v9179_v1 = vld [vmem:[#allocation45_spill] sm:$0xff] }
 0x488   : > { %2679 = vrot.lane.b32.xlu1 %v9168_v30, %s5259_s8  ;;  %v2472_v31 = vpop.xlane.xlu1 %2471 }
 0x489   : > { %v2469_v26 = vpop.xlane.xlu0 %2468  ;;  %2584 = vst.msk [vmem:[%s6279_s26 + $0x138] sm:$0xff] %vm2032_vm4, %v2472_v31  ;;  %v9180_v31 = vld [vmem:[#allocation44_spill] sm:$0xff] }
 0x48a   : > { %2583 = vst.msk [vmem:[%s6279_s26 + $0x130] sm:$0xff] %vm2032_vm4, %v2469_v26  ;;  %2681 = vrot.lane.b32.xlu0 %v9169_v22, %s5259_s8 }
 0x48c   : > { %2683 = vrot.lane.b32.xlu1 %v9170_v25, %s5259_s8  ;;  %v2478_v50 = vpop.xlane.xlu1 %2477 }
 0x48d   : > { %v2475_v39 = vpop.xlane.xlu0 %2474  ;;  %2586 = vst.msk [vmem:[%s6279_s26 + $0x148] sm:$0xff] %vm2032_vm4, %v2478_v50 }
 0x48e   : > { %2585 = vst.msk [vmem:[%s6279_s26 + $0x140] sm:$0xff] %vm2032_vm4, %v2475_v39  ;;  %2685 = vrot.lane.b32.xlu0 %v9171_v55, %s5259_s8  ;;  %v9181_v39 = vld [vmem:[#allocation51_spill] sm:$0xff] }
 0x490   : > { %2687 = vrot.lane.b32.xlu1 %v9172_v11, %s5259_s8  ;;  %v2484_v13 = vpop.xlane.xlu1 %2483 }
 0x491   : > { %v2481_v33 = vpop.xlane.xlu0 %2480  ;;  %2588 = vst.msk [vmem:[%s6279_s26 + $0x158] sm:$0xff] %vm2032_vm4, %v2484_v13  ;;  %v9182_v13 = vld [vmem:[#allocation50_spill] sm:$0xff] }
 0x492   : > { %2587 = vst.msk [vmem:[%s6279_s26 + $0x150] sm:$0xff] %vm2032_vm4, %v2481_v33  ;;  %2689 = vrot.lane.b32.xlu0 %v9173_v45, %s5259_s8 }
 0x494   : > { %2691 = vrot.lane.b32.xlu1 %v9174_v63, %s5259_s8  ;;  %v2490_v5 = vpop.xlane.xlu1 %2489 }
 0x495   : > { %v2487_v7 = vpop.xlane.xlu0 %2486  ;;  %2590 = vst.msk [vmem:[%s6279_s26 + $0x168] sm:$0xff] %vm2032_vm4, %v2490_v5 }
 0x496   : > { %2589 = vst.msk [vmem:[%s6279_s26 + $0x160] sm:$0xff] %vm2032_vm4, %v2487_v7  ;;  %2693 = vrot.lane.b32.xlu0 %v9175_v21, %s5259_s8  ;;  %v9183_v7 = vld [vmem:[#allocation57_spill] sm:$0xff] }
 0x498   : > { %2695 = vrot.lane.b32.xlu1 %v9176_v48, %s5259_s8  ;;  %v2496_v0 = vpop.xlane.xlu1 %2495 }
 0x499   : > { %v2493_v58 = vpop.xlane.xlu0 %2492  ;;  %2592 = vst.msk [vmem:[%s6279_s26 + $0x178] sm:$0xff] %vm2032_vm4, %v2496_v0  ;;  %v9184_v0 = vld [vmem:[#allocation56_spill] sm:$0xff] }
 0x49a   : > { %2591 = vst.msk [vmem:[%s6279_s26 + $0x170] sm:$0xff] %vm2032_vm4, %v2493_v58  ;;  %2697 = vrot.lane.b32.xlu0 %v9177_v18, %s5259_s8 }
 0x49c   : > { %2699 = vrot.lane.b32.xlu1 %v9178_v4, %s5259_s8  ;;  %v2502_v59 = vpop.xlane.xlu1 %2501 }
 0x49d   : > { %v2499_v53 = vpop.xlane.xlu0 %2498  ;;  %2594 = vst.msk [vmem:[%s6279_s26 + $0x188] sm:$0xff] %vm2032_vm4, %v2502_v59 }
 0x49e   : > { %2593 = vst.msk [vmem:[%s6279_s26 + $0x180] sm:$0xff] %vm2032_vm4, %v2499_v53  ;;  %2701 = vrot.lane.b32.xlu0 %v9179_v1, %s5259_s8  ;;  %v9185_v53 = vld [vmem:[#allocation63_spill] sm:$0xff] }
 0x4a0   : > { %2703 = vrot.lane.b32.xlu1 %v9180_v31, %s5259_s8  ;;  %v2508_v26 = vpop.xlane.xlu1 %2507 }
 0x4a1   : > { %v2505_v50 = vpop.xlane.xlu0 %2504  ;;  %2596 = vst.msk [vmem:[%s6279_s26 + $0x198] sm:$0xff] %vm2032_vm4, %v2508_v26  ;;  %v9186_v26 = vld [vmem:[#allocation62_spill] sm:$0xff] }
 0x4a2   : > { %2595 = vst.msk [vmem:[%s6279_s26 + $0x190] sm:$0xff] %vm2032_vm4, %v2505_v50  ;;  %2705 = vrot.lane.b32.xlu0 %v9181_v39, %s5259_s8 }
 0x4a4   : > { %2707 = vrot.lane.b32.xlu1 %v9182_v13, %s5259_s8  ;;  %v2514_v33 = vpop.xlane.xlu1 %2513 }
 0x4a5   : > { %v2511_v5 = vpop.xlane.xlu0 %2510  ;;  %2598 = vst.msk [vmem:[%s6279_s26 + $0x1a8] sm:$0xff] %vm2032_vm4, %v2514_v33 }
 0x4a6   : > { %2597 = vst.msk [vmem:[%s6279_s26 + $0x1a0] sm:$0xff] %vm2032_vm4, %v2511_v5  ;;  %2709 = vrot.lane.b32.xlu0 %v9183_v7, %s5259_s8  ;;  %v9187_v5 = vld [vmem:[#allocation69_spill] sm:$0xff]  ;;  %v9195_v7 = vld [vmem:[#allocation94_spill] sm:$0xff] }
 0x4a8   : > { %2711 = vrot.lane.b32.xlu1 %v9184_v0, %s5259_s8  ;;  %v2520_v58 = vpop.xlane.xlu1 %2519 }
 0x4a9   : > { %v2517_v59 = vpop.xlane.xlu0 %2516  ;;  %2600 = vst.msk [vmem:[%s6279_s26 + $0x1b8] sm:$0xff] %vm2032_vm4, %v2520_v58  ;;  %v9188_v58 = vld [vmem:[#allocation68_spill] sm:$0xff] }
 0x4aa   : > { %2599 = vst.msk [vmem:[%s6279_s26 + $0x1b0] sm:$0xff] %vm2032_vm4, %v2517_v59  ;;  %2713 = vrot.lane.b32.xlu0 %v9185_v53, %s5259_s8 }
 0x4ac   : > { %2715 = vrot.lane.b32.xlu1 %v9186_v26, %s5259_s8  ;;  %v2526_v50 = vpop.xlane.xlu1 %2525  ;;  %v9189_v26 = vld [vmem:[#allocation75_spill] sm:$0xff] }
 0x4ad   : > { %v2523_v33 = vpop.xlane.xlu0 %2522  ;;  %2602 = vst.msk [vmem:[%s6279_s26 + $0x1c8] sm:$0xff] %vm2032_vm4, %v2526_v50  ;;  %v9190_v50 = vld [vmem:[#allocation74_spill] sm:$0xff] }
 0x4ae   : > { %2601 = vst.msk [vmem:[%s6279_s26 + $0x1c0] sm:$0xff] %vm2032_vm4, %v2523_v33  ;;  %2717 = vrot.lane.b32.xlu0 %v9187_v5, %s5259_s8  ;;  %v9192_v5 = vld [vmem:[#allocation80_spill] sm:$0xff] }
 0x4b0   : > { %2719 = vrot.lane.b32.xlu1 %v9188_v58, %s5259_s8  ;;  %v2532_v59 = vpop.xlane.xlu1 %2531  ;;  %v9191_v58 = vld [vmem:[#allocation81_spill] sm:$0xff] }
 0x4b1   : > { %v2529_v53 = vpop.xlane.xlu0 %2528  ;;  %2604 = vst.msk [vmem:[%s6279_s26 + $0x1d8] sm:$0xff] %vm2032_vm4, %v2532_v59 }
 0x4b2   : > { %2603 = vst.msk [vmem:[%s6279_s26 + $0x1d0] sm:$0xff] %vm2032_vm4, %v2529_v53  ;;  %2721 = vrot.lane.b32.xlu0 %v9189_v26, %s5259_s8  ;;  %v9194_v26 = vld [vmem:[#allocation86_spill] sm:$0xff] }
 0x4b4   : > { %2723 = vrot.lane.b32.xlu1 %v9190_v50, %s5259_s8  ;;  %v2538_v33 = vpop.xlane.xlu1 %2537  ;;  %v9193_v50 = vld [vmem:[#allocation87_spill] sm:$0xff] }
 0x4b5   : > { %v2535_v0 = vpop.xlane.xlu0 %2534  ;;  %2606 = vst.msk [vmem:[%s6279_s26 + $0x1e8] sm:$0xff] %vm2032_vm4, %v2538_v33 }
 0x4b6   : > { %2605 = vst.msk [vmem:[%s6279_s26 + $0x1e0] sm:$0xff] %vm2032_vm4, %v2535_v0  ;;  %2725 = vrot.lane.b32.xlu0 %v9191_v58, %s5259_s8  ;;  %v9196_v58 = vld [vmem:[#allocation93_spill] sm:$0xff] }
 0x4b8   : > { %2727 = vrot.lane.b32.xlu1 %v9192_v5, %s5259_s8  ;;  %v2544_v59 = vpop.xlane.xlu1 %2543 }
 0x4b9   : > { %v2541_v53 = vpop.xlane.xlu0 %2540  ;;  %2608 = vst.msk [vmem:[%s6279_s26 + $0x1f8] sm:$0xff] %vm2032_vm4, %v2544_v59 }
 0x4ba   : > { %2607 = vst.msk [vmem:[%s6279_s26 + $0x1f0] sm:$0xff] %vm2032_vm4, %v2541_v53  ;;  %2729 = vrot.lane.b32.xlu0 %v9193_v50, %s5259_s8 }
 0x4bc   : > { %2731 = vrot.lane.b32.xlu1 %v9194_v26, %s5259_s8  ;;  %v2612_v33 = vpop.permute.xlu1 %2611 }
 0x4bd   : > { %v2610_v0 = vpop.permute.xlu0 %2609  ;;  %v2804_v22 = vsel %vm1070_vm2, %v2612_v33, 0.0 }
 0x4be   : > { %2733 = vrot.lane.b32.xlu0 %v9195_v7, %s5259_s8  ;;  %v2801_v45 = vsel %vm1070_vm2, %v2610_v0, 0.0 }
 0x4c0   : > { %2735 = vrot.lane.b32.xlu1 %v9196_v58, %s5259_s8  ;;  %v2614_v5 = vpop.permute.xlu1 %2613 }
 0x4c1   : > { %v2618_v13 = vpop.permute.xlu0 %2617  ;;  %v2807_v58 = vsel %vm1070_vm2, %v2614_v5, 0.0 }
 0x4c2   : > { %v2813_v0 = vsel %vm1070_vm2, %v2618_v13, 0.0 }
 0x4c4   : > { %v2616_v39 = vpop.permute.xlu1 %2615 }
 0x4c5   : > { %v2622_v59 = vpop.permute.xlu0 %2621  ;;  %v2810_v30 = vsel %vm1070_vm2, %v2616_v39, 0.0 }
 0x4c8   : > { %v2620_v31 = vpop.permute.xlu1 %2619 }
 0x4c9   : > { %v2626_v53 = vpop.permute.xlu0 %2625  ;;  %v2816_v17 = vsel %vm1070_vm2, %v2620_v31, 0.0 }
 0x4cc   : > { %v2624_v1 = vpop.permute.xlu1 %2623 }
 0x4cd   : > { %v2630_v4 = vpop.permute.xlu0 %2629  ;;  %v2822_v5 = vsel %vm1070_vm2, %v2624_v1, 0.0 }
 0x4d0   : > { %v2628_v50 = vpop.permute.xlu1 %2627 }
 0x4d1   : > { %v2634_v18 = vpop.permute.xlu0 %2633 }
 0x4d4   : > { %v2632_v48 = vpop.permute.xlu1 %2631 }
 0x4d5   : > { %v2638_v26 = vpop.permute.xlu0 %2637 }
 0x4d8   : > { %v2636_v21 = vpop.permute.xlu1 %2635 }
 0x4d9   : > { %v2642_v63 = vpop.permute.xlu0 %2641 }
 0x4dc   : > { %v2640_v7 = vpop.permute.xlu1 %2639 }
 0x4dd   : > { %2802 = vadd.xlane.f32.xlu0 %v2801_v45  ;;  %v2646_v11 = vpop.permute.xlu0 %2645 }
 0x4e0   : > { %v2644_v55 = vpop.permute.xlu1 %2643 }
 0x4e1   : > { %2808 = vadd.xlane.f32.xlu0 %v2807_v58  ;;  %v2650_v25 = vpop.permute.xlu0 %2649  ;;  %v2819_v58 = vsel %vm1070_vm2, %v2622_v59, 0.0  ;;  %v2840_v59 = vsel %vm1070_vm2, %v2636_v21, 0.0 }
 0x4e4   : > { %2805 = vadd.xlane.f32.xlu1 %v2804_v22  ;;  %v2648_v24 = vpop.permute.xlu1 %2647  ;;  %v2828_v22 = vsel %vm1070_vm2, %v2628_v50, 0.0 }
 0x4e5   : > { %2811 = vadd.xlane.f32.xlu0 %v2810_v30  ;;  %v2654_v3 = vpop.permute.xlu0 %2653  ;;  %v2825_v30 = vsel %vm1070_vm2, %v2626_v53, 0.0  ;;  %v2846_v53 = vsel %vm1070_vm2, %v2640_v7, 0.0 }
 0x4e8   : > { %2817 = vadd.xlane.f32.xlu1 %v2816_v17  ;;  %v2652_v45 = vpop.permute.xlu1 %2651  ;;  %v2834_v17 = vsel %vm1070_vm2, %v2632_v48, 0.0 }
 0x4e9   : > { %2814 = vadd.xlane.f32.xlu0 %v2813_v0  ;;  %v2658_v36 = vpop.permute.xlu0 %2657  ;;  %v2831_v0 = vsel %vm1070_vm2, %v2630_v4, 0.0  ;;  %v2852_v4 = vsel %vm1070_vm2, %v2644_v55, 0.0 }
 0x4ec   : > { %2823 = vadd.xlane.f32.xlu1 %v2822_v5  ;;  %v2656_v33 = vpop.permute.xlu1 %2655  ;;  %v2837_v5 = vsel %vm1070_vm2, %v2634_v18, 0.0  ;;  %v2858_v18 = vsel %vm1070_vm2, %v2648_v24, 0.0 }
 0x4ed   : > { %2820 = vadd.xlane.f32.xlu0 %v2819_v58  ;;  %v2662_v39 = vpop.permute.xlu0 %2661 }
 0x4f0   : > { %2829 = vadd.xlane.f32.xlu1 %v2828_v22  ;;  %v2660_v31 = vpop.permute.xlu1 %2659  ;;  %v2843_v22 = vsel %vm1070_vm2, %v2638_v26, 0.0  ;;  %v2864_v26 = vsel %vm1070_vm2, %v2652_v45, 0.0  ;;  %v2879_v45 = vsel %vm1070_vm2, %v2662_v39, 0.0 }
 0x4f1   : > { %2826 = vadd.xlane.f32.xlu0 %v2825_v30  ;;  %v2666_v13 = vpop.permute.xlu0 %2665  ;;  %v2876_v24 = vsel %vm1070_vm2, %v2660_v31, 0.0 }
 0x4f4   : > { %2835 = vadd.xlane.f32.xlu1 %v2834_v17  ;;  %v2664_v1 = vpop.permute.xlu1 %2663  ;;  %v2849_v17 = vsel %vm1070_vm2, %v2642_v63, 0.0  ;;  %v2870_v63 = vsel %vm1070_vm2, %v2656_v33, 0.0 }
 0x4f5   : > { %2832 = vadd.xlane.f32.xlu0 %v2831_v0  ;;  %v2670_v58 = vpop.permute.xlu0 %2669  ;;  %v2855_v0 = vsel %vm1070_vm2, %v2646_v11, 0.0  ;;  %v2873_v11 = vsel %vm1070_vm2, %v2658_v36, 0.0 }
 0x4f6   : > { %v2891_v31 = vsel %vm1070_vm2, %v2670_v58, 0.0 }
 0x4f8   : > { %2841 = vadd.xlane.f32.xlu1 %v2840_v59  ;;  %v2668_v50 = vpop.permute.xlu1 %2667 }
 0x4f9   : > { %2838 = vadd.xlane.f32.xlu0 %v2837_v5  ;;  %v2674_v48 = vpop.permute.xlu0 %2673  ;;  %v2861_v5 = vsel %vm1070_vm2, %v2650_v25, 0.0  ;;  %v2882_v25 = vsel %vm1070_vm2, %v2664_v1, 0.0 }
 0x4fa   : > { %v2897_v1 = vsel %vm1070_vm2, %v2674_v48, 0.0 }
 0x4fc   : > { %2847 = vadd.xlane.f32.xlu1 %v2846_v53  ;;  %v2672_v30 = vpop.permute.xlu1 %2671 }
 0x4fd   : > { %2844 = vadd.xlane.f32.xlu0 %v2843_v22  ;;  %v2678_v59 = vpop.permute.xlu0 %2677  ;;  %v2867_v22 = vsel %vm1070_vm2, %v2654_v3, 0.0  ;;  %v2888_v3 = vsel %vm1070_vm2, %v2668_v50, 0.0  ;;  %v2894_v36 = vsel %vm1070_vm2, %v2672_v30, 0.0 }
 0x500   : > { %2853 = vadd.xlane.f32.xlu1 %v2852_v4  ;;  %v2676_v21 = vpop.permute.xlu1 %2675 }
 0x501   : > { %2850 = vadd.xlane.f32.xlu0 %v2849_v17  ;;  %v2682_v55 = vpop.permute.xlu0 %2681  ;;  %v2900_v39 = vsel %vm1070_vm2, %v2676_v21, 0.0 }
 0x502   : > { %v2909_v30 = vsel %vm1070_vm2, %v2682_v55, 0.0 }
 0x504   : > { %2859 = vadd.xlane.f32.xlu1 %v2858_v18  ;;  %v2680_v7 = vpop.permute.xlu1 %2679 }
 0x505   : > { %2856 = vadd.xlane.f32.xlu0 %v2855_v0  ;;  %v2686_v4 = vpop.permute.xlu0 %2685  ;;  %v2885_v0 = vsel %vm1070_vm2, %v2666_v13, 0.0  ;;  %v2906_v13 = vsel %vm1070_vm2, %v2680_v7, 0.0 }
 0x506   : > { %v2915_v21 = vsel %vm1070_vm2, %v2686_v4, 0.0 }
 0x508   : > { %2865 = vadd.xlane.f32.xlu1 %v2864_v26  ;;  %v2684_v53 = vpop.permute.xlu1 %2683 }
 0x509   : > { %2862 = vadd.xlane.f32.xlu0 %v2861_v5  ;;  %v2690_v18 = vpop.permute.xlu0 %2689  ;;  %v2912_v58 = vsel %vm1070_vm2, %v2684_v53, 0.0 }
 0x50c   : > { %2871 = vadd.xlane.f32.xlu1 %v2870_v63  ;;  %v2688_v17 = vpop.permute.xlu1 %2687 }
 0x50d   : > { %2868 = vadd.xlane.f32.xlu0 %v2867_v22  ;;  %v2694_v26 = vpop.permute.xlu0 %2693  ;;  %v2903_v22 = vsel %vm1070_vm2, %v2678_v59, 0.0  ;;  %v2918_v48 = vsel %vm1070_vm2, %v2688_v17, 0.0 }
 0x50e   : > { %v2927_v53 = vsel %vm1070_vm2, %v2694_v26, 0.0 }
 0x510   : > { %2877 = vadd.xlane.f32.xlu1 %v2876_v24  ;;  %v2692_v33 = vpop.permute.xlu1 %2691 }
 0x511   : > { %2874 = vadd.xlane.f32.xlu0 %v2873_v11  ;;  %v2698_v63 = vpop.permute.xlu0 %2697  ;;  %v2924_v59 = vsel %vm1070_vm2, %v2692_v33, 0.0 }
 0x512   : > { %v2933_v17 = vsel %vm1070_vm2, %v2698_v63, 0.0 }
 0x514   : > { %2883 = vadd.xlane.f32.xlu1 %v2882_v25  ;;  %v2696_v5 = vpop.permute.xlu1 %2695 }
 0x515   : > { %2880 = vadd.xlane.f32.xlu0 %v2879_v45  ;;  %v2702_v24 = vpop.permute.xlu0 %2701  ;;  %v2921_v45 = vsel %vm1070_vm2, %v2690_v18, 0.0  ;;  %v2930_v55 = vsel %vm1070_vm2, %v2696_v5, 0.0 }
 0x518   : > { %2889 = vadd.xlane.f32.xlu1 %v2888_v3  ;;  %v2700_v50 = vpop.permute.xlu1 %2699 }
 0x519   : > { %2886 = vadd.xlane.f32.xlu0 %v2885_v0  ;;  %v2706_v25 = vpop.permute.xlu0 %2705  ;;  %v2936_v4 = vsel %vm1070_vm2, %v2700_v50, 0.0 }
 0x51a   : > { %v2945_v5 = vsel %vm1070_vm2, %v2706_v25, 0.0 }
 0x51c   : > { %2895 = vadd.xlane.f32.xlu1 %v2894_v36  ;;  %v2704_v11 = vpop.permute.xlu1 %2703 }
 0x51d   : > { %2892 = vadd.xlane.f32.xlu0 %v2891_v31  ;;  %v2710_v3 = vpop.permute.xlu0 %2709  ;;  %v2942_v18 = vsel %vm1070_vm2, %v2704_v11, 0.0  ;;  %v2939_v31 = vsel %vm1070_vm2, %v2702_v24, 0.0 }
 0x51e   : > { %v2951_v50 = vsel %vm1070_vm2, %v2710_v3, 0.0 }
 0x520   : > { %2901 = vadd.xlane.f32.xlu1 %v2900_v39  ;;  %v2708_v7 = vpop.permute.xlu1 %2707 }
 0x521   : > { %2898 = vadd.xlane.f32.xlu0 %v2897_v1  ;;  %v2714_v36 = vpop.permute.xlu0 %2713  ;;  %v2948_v26 = vsel %vm1070_vm2, %v2708_v7, 0.0 }
 0x524   : > { %2907 = vadd.xlane.f32.xlu1 %v2906_v13  ;;  %v2712_v0 = vpop.permute.xlu1 %2711 }
 0x525   : > { %2904 = vadd.xlane.f32.xlu0 %v2903_v22  ;;  %v2718_v39 = vpop.permute.xlu0 %2717  ;;  %v2954_v63 = vsel %vm1070_vm2, %v2712_v0, 0.0 }
 0x526   : > { %v2963_v11 = vsel %vm1070_vm2, %v2718_v39, 0.0 }
 0x528   : > { %2913 = vadd.xlane.f32.xlu1 %v2912_v58  ;;  %v2716_v33 = vpop.permute.xlu1 %2715 }
 0x529   : > { %2910 = vadd.xlane.f32.xlu0 %v2909_v30  ;;  %v2722_v13 = vpop.permute.xlu0 %2721  ;;  %v2960_v58 = vsel %vm1070_vm2, %v2716_v33, 0.0  ;;  %v2957_v30 = vsel %vm1070_vm2, %v2714_v36, 0.0 }
 0x52a   : > { %v2969_v7 = vsel %vm1070_vm2, %v2722_v13, 0.0  ;;  %v9197_v13 = vld [vmem:[#allocation16_spill] sm:$0xff] }
 0x52c   : > { %2919 = vadd.xlane.f32.xlu1 %v2918_v48  ;;  %v2720_v1 = vpop.permute.xlu1 %2719 }
 0x52d   : > { %2916 = vadd.xlane.f32.xlu0 %v2915_v21  ;;  %v2966_v24 = vsel %vm1070_vm2, %v2720_v1, 0.0  ;;  %v2726_v48 = vpop.permute.xlu0 %2725 }
 0x530   : > { %2925 = vadd.xlane.f32.xlu1 %v2924_v59  ;;  %v2724_v22 = vpop.permute.xlu1 %2723 }
 0x531   : > { %2922 = vadd.xlane.f32.xlu0 %v2921_v45  ;;  %v2972_v25 = vsel %vm1070_vm2, %v2724_v22, 0.0  ;;  %v2730_v59 = vpop.permute.xlu0 %2729 }
 0x532   : > { %v2981_v0 = vsel %vm1070_vm2, %v2730_v59, 0.0 }
 0x534   : > { %2931 = vadd.xlane.f32.xlu1 %v2930_v55  ;;  %v2728_v21 = vpop.permute.xlu1 %2727 }
 0x535   : > { %2928 = vadd.xlane.f32.xlu0 %v2927_v53  ;;  %v2978_v55 = vsel %vm1070_vm2, %v2728_v21, 0.0  ;;  %v2975_v53 = vsel %vm1070_vm2, %v2726_v48, 0.0  ;;  %v9200_v21 = vld [vmem:[#allocation29_spill] sm:$0xff] }
 0x538   : > { %2937 = vadd.xlane.f32.xlu1 %v2936_v4  ;;  %v2732_v45 = vpop.permute.xlu1 %2731  ;;  %v2734_v4 = vpop.permute.xlu0 %2733 }
 0x539   : > { %2934 = vadd.xlane.f32.xlu0 %v2933_v17  ;;  %v2984_v3 = vsel %vm1070_vm2, %v2732_v45, 0.0  ;;  %v2987_v33 = vsel %vm1070_vm2, %v2734_v4, 0.0  ;;  %v9202_v45 = vld [vmem:[#allocation35_spill] sm:$0xff]  ;;  %v9205_v4 = vld [vmem:[#allocation40_spill] sm:$0xff] }
 0x53c   : > { %2943 = vadd.xlane.f32.xlu1 %v2942_v18  ;;  %v2736_v17 = vpop.permute.xlu1 %2735 }
 0x53d   : > { %2940 = vadd.xlane.f32.xlu0 %v2939_v31  ;;  %v2990_v36 = vsel %vm1070_vm2, %v2736_v17, 0.0 }
 0x540   : > { %2949 = vadd.xlane.f32.xlu1 %v2948_v26 }
 0x541   : > { %2946 = vadd.xlane.f32.xlu0 %v2945_v5 }
 0x544   : > { %2955 = vadd.xlane.f32.xlu1 %v2954_v63 }
 0x545   : > { %2952 = vadd.xlane.f32.xlu0 %v2951_v50 }
 0x548   : > { %2961 = vadd.xlane.f32.xlu1 %v2960_v58 }
 0x549   : > { %2958 = vadd.xlane.f32.xlu0 %v2957_v30  ;;  %v9198_v30 = vld [vmem:[#allocation23_spill] sm:$0xff] }
 0x54c   : > { %2967 = vadd.xlane.f32.xlu1 %v2966_v24  ;;  %v9199_v24 = vld [vmem:[#allocation22_spill] sm:$0xff] }
 0x54d   : > { %2964 = vadd.xlane.f32.xlu0 %v2963_v11 }
 0x550   : > { %2973 = vadd.xlane.f32.xlu1 %v2972_v25  ;;  %v9201_v25 = vld [vmem:[#allocation28_spill] sm:$0xff] }
 0x551   : > { %2970 = vadd.xlane.f32.xlu0 %v2969_v7 }
 0x554   : > { %2979 = vadd.xlane.f32.xlu1 %v2978_v55  ;;  %v9203_v55 = vld [vmem:[#allocation34_spill] sm:$0xff] }
 0x555   : > { %2976 = vadd.xlane.f32.xlu0 %v2975_v53 }
 0x558   : > { %2985 = vadd.xlane.f32.xlu1 %v2984_v3 }
 0x559   : > { %2982 = vadd.xlane.f32.xlu0 %v2981_v0  ;;  %v9204_v0 = vld [vmem:[#allocation41_spill] sm:$0xff] }
 0x55c   : > { %2991 = vadd.xlane.f32.xlu1 %v2990_v36 }
 0x55d   : > { %2988 = vadd.xlane.f32.xlu0 %v2987_v33  ;;  %v9206_v33 = vld [vmem:[#allocation47_spill] sm:$0xff] }
 0x566   : > { %v2803_v18 = vpop.xlane.xlu0 %2802 }
 0x567   : > { %2994 = vst.msk [vmem:[%s6257_s23] sm:$0xff] %vm2993_vm5, %v2803_v18  ;;  %v9207_v18 = vld [vmem:[#allocation46_spill] sm:$0xff] }
 0x56a   : > { %v2809_v31 = vpop.xlane.xlu0 %2808 }
 0x56b   : > { %2996 = vst.msk [vmem:[%s6257_s23 + $0x10] sm:$0xff] %vm2993_vm5, %v2809_v31 }
 0x56d   : > { %3060 = vrot.lane.b32.xlu1 %v9105_v47, %s5259_s8  ;;  %v2806_v26 = vpop.xlane.xlu1 %2805 }
 0x56e   : > { %v2812_v5 = vpop.xlane.xlu0 %2811  ;;  %2995 = vst.msk [vmem:[%s6257_s23 + $0x8] sm:$0xff] %vm2993_vm5, %v2806_v26 }
 0x56f   : > { %2997 = vst.msk [vmem:[%s6257_s23 + $0x18] sm:$0xff] %vm2993_vm5, %v2812_v5  ;;  %v9208_v5 = vld [vmem:[#allocation53_spill] sm:$0xff] }
 0x571   : > { %3062 = vrot.lane.b32.xlu1 %v9106_v57, %s5259_s8  ;;  %v2818_v39 = vpop.xlane.xlu1 %2817 }
 0x572   : > { %v2815_v1 = vpop.xlane.xlu0 %2814  ;;  %2999 = vst.msk [vmem:[%s6257_s23 + $0x28] sm:$0xff] %vm2993_vm5, %v2818_v39  ;;  %v9209_v39 = vld [vmem:[#allocation52_spill] sm:$0xff] }
 0x573   : > { %2998 = vst.msk [vmem:[%s6257_s23 + $0x20] sm:$0xff] %vm2993_vm5, %v2815_v1  ;;  %3058 = vrot.lane.b32.xlu0 %v9107_v44, %s5259_s8 }
 0x575   : > { %3064 = vrot.lane.b32.xlu1 %v9108_v23, %s5259_s8  ;;  %v2824_v63 = vpop.xlane.xlu1 %2823 }
 0x576   : > { %v2821_v50 = vpop.xlane.xlu0 %2820  ;;  %3001 = vst.msk [vmem:[%s6257_s23 + $0x38] sm:$0xff] %vm2993_vm5, %v2824_v63 }
 0x577   : > { %3000 = vst.msk [vmem:[%s6257_s23 + $0x30] sm:$0xff] %vm2993_vm5, %v2821_v50  ;;  %3066 = vrot.lane.b32.xlu0 %v9109_v40, %s5259_s8  ;;  %v9210_v50 = vld [vmem:[#allocation59_spill] sm:$0xff] }
 0x579   : > { %3068 = vrot.lane.b32.xlu1 %v9197_v13, %s5259_s8  ;;  %v2830_v22 = vpop.xlane.xlu1 %2829 }
 0x57a   : > { %v2827_v58 = vpop.xlane.xlu0 %2826  ;;  %3003 = vst.msk [vmem:[%s6257_s23 + $0x48] sm:$0xff] %vm2993_vm5, %v2830_v22  ;;  %v9211_v22 = vld [vmem:[#allocation58_spill] sm:$0xff] }
 0x57b   : > { %3002 = vst.msk [vmem:[%s6257_s23 + $0x40] sm:$0xff] %vm2993_vm5, %v2827_v58  ;;  %3070 = vrot.lane.b32.xlu0 %v9198_v30, %s5259_s8 }
 0x57d   : > { %3072 = vrot.lane.b32.xlu1 %v9199_v24, %s5259_s8  ;;  %v2836_v11 = vpop.xlane.xlu1 %2835 }
 0x57e   : > { %v2833_v48 = vpop.xlane.xlu0 %2832  ;;  %3005 = vst.msk [vmem:[%s6257_s23 + $0x58] sm:$0xff] %vm2993_vm5, %v2836_v11 }
 0x57f   : > { %3004 = vst.msk [vmem:[%s6257_s23 + $0x50] sm:$0xff] %vm2993_vm5, %v2833_v48  ;;  %3074 = vrot.lane.b32.xlu0 %v9200_v21, %s5259_s8  ;;  %v9212_v48 = vld [vmem:[#allocation65_spill] sm:$0xff] }
 0x581   : > { %3076 = vrot.lane.b32.xlu1 %v9201_v25, %s5259_s8  ;;  %v2842_v7 = vpop.xlane.xlu1 %2841 }
 0x582   : > { %v2839_v59 = vpop.xlane.xlu0 %2838  ;;  %3007 = vst.msk [vmem:[%s6257_s23 + $0x68] sm:$0xff] %vm2993_vm5, %v2842_v7  ;;  %v9213_v7 = vld [vmem:[#allocation64_spill] sm:$0xff] }
 0x583   : > { %3006 = vst.msk [vmem:[%s6257_s23 + $0x60] sm:$0xff] %vm2993_vm5, %v2839_v59  ;;  %3078 = vrot.lane.b32.xlu0 %v9202_v45, %s5259_s8 }
 0x585   : > { %3080 = vrot.lane.b32.xlu1 %v9203_v55, %s5259_s8  ;;  %v2848_v53 = vpop.xlane.xlu1 %2847 }
 0x586   : > { %v2845_v3 = vpop.xlane.xlu0 %2844  ;;  %3009 = vst.msk [vmem:[%s6257_s23 + $0x78] sm:$0xff] %vm2993_vm5, %v2848_v53 }
 0x587   : > { %3008 = vst.msk [vmem:[%s6257_s23 + $0x70] sm:$0xff] %vm2993_vm5, %v2845_v3  ;;  %3082 = vrot.lane.b32.xlu0 %v9204_v0, %s5259_s8  ;;  %v9214_v3 = vld [vmem:[#allocation71_spill] sm:$0xff] }
 0x589   : > { %3084 = vrot.lane.b32.xlu1 %v9205_v4, %s5259_s8  ;;  %v2854_v17 = vpop.xlane.xlu1 %2853 }
 0x58a   : > { %v2851_v36 = vpop.xlane.xlu0 %2850  ;;  %3011 = vst.msk [vmem:[%s6257_s23 + $0x88] sm:$0xff] %vm2993_vm5, %v2854_v17  ;;  %v9215_v17 = vld [vmem:[#allocation70_spill] sm:$0xff] }
 0x58b   : > { %3010 = vst.msk [vmem:[%s6257_s23 + $0x80] sm:$0xff] %vm2993_vm5, %v2851_v36  ;;  %3086 = vrot.lane.b32.xlu0 %v9206_v33, %s5259_s8 }
 0x58d   : > { %3088 = vrot.lane.b32.xlu1 %v9207_v18, %s5259_s8  ;;  %v2860_v31 = vpop.xlane.xlu1 %2859 }
 0x58e   : > { %v2857_v26 = vpop.xlane.xlu0 %2856  ;;  %3013 = vst.msk [vmem:[%s6257_s23 + $0x98] sm:$0xff] %vm2993_vm5, %v2860_v31 }
 0x58f   : > { %3012 = vst.msk [vmem:[%s6257_s23 + $0x90] sm:$0xff] %vm2993_vm5, %v2857_v26  ;;  %3090 = vrot.lane.b32.xlu0 %v9208_v5, %s5259_s8  ;;  %v9216_v26 = vld [vmem:[#allocation77_spill] sm:$0xff] }
 0x591   : > { %3092 = vrot.lane.b32.xlu1 %v9209_v39, %s5259_s8  ;;  %v2866_v1 = vpop.xlane.xlu1 %2865 }
 0x592   : > { %v2863_v63 = vpop.xlane.xlu0 %2862  ;;  %3015 = vst.msk [vmem:[%s6257_s23 + $0xa8] sm:$0xff] %vm2993_vm5, %v2866_v1  ;;  %v9217_v1 = vld [vmem:[#allocation76_spill] sm:$0xff] }
 0x593   : > { %3014 = vst.msk [vmem:[%s6257_s23 + $0xa0] sm:$0xff] %vm2993_vm5, %v2863_v63  ;;  %3094 = vrot.lane.b32.xlu0 %v9210_v50, %s5259_s8 }
 0x595   : > { %3096 = vrot.lane.b32.xlu1 %v9211_v22, %s5259_s8  ;;  %v2872_v58 = vpop.xlane.xlu1 %2871 }
 0x596   : > { %v2869_v11 = vpop.xlane.xlu0 %2868  ;;  %3017 = vst.msk [vmem:[%s6257_s23 + $0xb8] sm:$0xff] %vm2993_vm5, %v2872_v58 }
 0x597   : > { %3016 = vst.msk [vmem:[%s6257_s23 + $0xb0] sm:$0xff] %vm2993_vm5, %v2869_v11  ;;  %3098 = vrot.lane.b32.xlu0 %v9212_v48, %s5259_s8  ;;  %v9218_v11 = vld [vmem:[#allocation83_spill] sm:$0xff] }
 0x599   : > { %3100 = vrot.lane.b32.xlu1 %v9213_v7, %s5259_s8  ;;  %v2878_v59 = vpop.xlane.xlu1 %2877 }
 0x59a   : > { %v2875_v53 = vpop.xlane.xlu0 %2874  ;;  %3019 = vst.msk [vmem:[%s6257_s23 + $0xc8] sm:$0xff] %vm2993_vm5, %v2878_v59  ;;  %v9219_v59 = vld [vmem:[#allocation82_spill] sm:$0xff] }
 0x59b   : > { %3018 = vst.msk [vmem:[%s6257_s23 + $0xc0] sm:$0xff] %vm2993_vm5, %v2875_v53  ;;  %3102 = vrot.lane.b32.xlu0 %v9214_v3, %s5259_s8 }
 0x59d   : > { %3104 = vrot.lane.b32.xlu1 %v9215_v17, %s5259_s8  ;;  %v2884_v36 = vpop.xlane.xlu1 %2883 }
 0x59e   : > { %v2881_v31 = vpop.xlane.xlu0 %2880  ;;  %3021 = vst.msk [vmem:[%s6257_s23 + $0xd8] sm:$0xff] %vm2993_vm5, %v2884_v36 }
 0x59f   : > { %3020 = vst.msk [vmem:[%s6257_s23 + $0xd0] sm:$0xff] %vm2993_vm5, %v2881_v31  ;;  %3106 = vrot.lane.b32.xlu0 %v9216_v26, %s5259_s8  ;;  %v9220_v31 = vld [vmem:[#allocation89_spill] sm:$0xff]  ;;  %v9254_v26 = vld [vmem:[#allocation98_spill] sm:$0xff] }
 0x5a1   : > { %3108 = vrot.lane.b32.xlu1 %v9217_v1, %s5259_s8  ;;  %v2890_v63 = vpop.xlane.xlu1 %2889 }
 0x5a2   : > { %v2887_v58 = vpop.xlane.xlu0 %2886  ;;  %3023 = vst.msk [vmem:[%s6257_s23 + $0xe8] sm:$0xff] %vm2993_vm5, %v2890_v63  ;;  %v9221_v63 = vld [vmem:[#allocation88_spill] sm:$0xff] }
 0x5a3   : > { %3022 = vst.msk [vmem:[%s6257_s23 + $0xe0] sm:$0xff] %vm2993_vm5, %v2887_v58  ;;  %3110 = vrot.lane.b32.xlu0 %v9218_v11, %s5259_s8 }
 0x5a5   : > { %3112 = vrot.lane.b32.xlu1 %v9219_v59, %s5259_s8  ;;  %v2896_v53 = vpop.xlane.xlu1 %2895  ;;  %v9222_v59 = vld [vmem:[#allocation96_spill] sm:$0xff] }
 0x5a6   : > { %v2893_v36 = vpop.xlane.xlu0 %2892  ;;  %3025 = vst.msk [vmem:[%s6257_s23 + $0xf8] sm:$0xff] %vm2993_vm5, %v2896_v53  ;;  %v9223_v53 = vld [vmem:[#allocation95_spill] sm:$0xff] }
 0x5a7   : > { %3024 = vst.msk [vmem:[%s6257_s23 + $0xf0] sm:$0xff] %vm2993_vm5, %v2893_v36  ;;  %3114 = vrot.lane.b32.xlu0 %v9220_v31, %s5259_s8 }
 0x5a9   : > { %3116 = vrot.lane.b32.xlu1 %v9221_v63, %s5259_s8  ;;  %v2902_v58 = vpop.xlane.xlu1 %2901  ;;  %v9224_v63 = vld [vmem:[#allocation8_spill] sm:$0xff] }
 0x5aa   : > { %v2899_v11 = vpop.xlane.xlu0 %2898  ;;  %3027 = vst.msk [vmem:[%s6257_s23 + $0x108] sm:$0xff] %vm2993_vm5, %v2902_v58  ;;  %v9225_v58 = vld [vmem:[#allocation4_spill] sm:$0xff] }
 0x5ab   : > { %3026 = vst.msk [vmem:[%s6257_s23 + $0x100] sm:$0xff] %vm2993_vm5, %v2899_v11  ;;  %3118 = vrot.lane.b32.xlu0 %v9222_v59, %s5259_s8 }
 0x5ad   : > { %3120 = vrot.lane.b32.xlu1 %v9223_v53, %s5259_s8  ;;  %v2908_v36 = vpop.xlane.xlu1 %2907  ;;  %v9226_v53 = vld [vmem:[#allocation13_spill] sm:$0xff] }
 0x5ae   : > { %v2905_v31 = vpop.xlane.xlu0 %2904  ;;  %3029 = vst.msk [vmem:[%s6257_s23 + $0x118] sm:$0xff] %vm2993_vm5, %v2908_v36  ;;  %v9227_v36 = vld [vmem:[#allocation12_spill] sm:$0xff] }
 0x5af   : > { %3028 = vst.msk [vmem:[%s6257_s23 + $0x110] sm:$0xff] %vm2993_vm5, %v2905_v31  ;;  %3122 = vrot.lane.b32.xlu0 %v9224_v63, %s5259_s8 }
 0x5b1   : > { %3124 = vrot.lane.b32.xlu1 %v9225_v58, %s5259_s8  ;;  %v2914_v11 = vpop.xlane.xlu1 %2913  ;;  %v9228_v58 = vld [vmem:[#allocation19_spill] sm:$0xff] }
 0x5b2   : > { %v2911_v59 = vpop.xlane.xlu0 %2910  ;;  %3031 = vst.msk [vmem:[%s6257_s23 + $0x128] sm:$0xff] %vm2993_vm5, %v2914_v11  ;;  %v9229_v11 = vld [vmem:[#allocation18_spill] sm:$0xff] }
 0x5b3   : > { %3030 = vst.msk [vmem:[%s6257_s23 + $0x120] sm:$0xff] %vm2993_vm5, %v2911_v59  ;;  %3126 = vrot.lane.b32.xlu0 %v9226_v53, %s5259_s8 }
 0x5b5   : > { %3128 = vrot.lane.b32.xlu1 %v9227_v36, %s5259_s8  ;;  %v2920_v31 = vpop.xlane.xlu1 %2919  ;;  %v9230_v36 = vld [vmem:[#allocation25_spill] sm:$0xff] }
 0x5b6   : > { %v2917_v63 = vpop.xlane.xlu0 %2916  ;;  %3033 = vst.msk [vmem:[%s6257_s23 + $0x138] sm:$0xff] %vm2993_vm5, %v2920_v31  ;;  %v9231_v31 = vld [vmem:[#allocation24_spill] sm:$0xff] }
 0x5b7   : > { %3032 = vst.msk [vmem:[%s6257_s23 + $0x130] sm:$0xff] %vm2993_vm5, %v2917_v63  ;;  %3130 = vrot.lane.b32.xlu0 %v9228_v58, %s5259_s8 }
 0x5b9   : > { %3132 = vrot.lane.b32.xlu1 %v9229_v11, %s5259_s8  ;;  %v2926_v59 = vpop.xlane.xlu1 %2925  ;;  %v9232_v11 = vld [vmem:[#allocation31_spill] sm:$0xff] }
 0x5ba   : > { %v2923_v53 = vpop.xlane.xlu0 %2922  ;;  %3035 = vst.msk [vmem:[%s6257_s23 + $0x148] sm:$0xff] %vm2993_vm5, %v2926_v59  ;;  %v9233_v59 = vld [vmem:[#allocation30_spill] sm:$0xff] }
 0x5bb   : > { %3034 = vst.msk [vmem:[%s6257_s23 + $0x140] sm:$0xff] %vm2993_vm5, %v2923_v53  ;;  %3134 = vrot.lane.b32.xlu0 %v9230_v36, %s5259_s8 }
 0x5bd   : > { %3136 = vrot.lane.b32.xlu1 %v9231_v31, %s5259_s8  ;;  %v2932_v63 = vpop.xlane.xlu1 %2931  ;;  %v9234_v31 = vld [vmem:[#allocation37_spill] sm:$0xff] }
 0x5be   : > { %v2929_v58 = vpop.xlane.xlu0 %2928  ;;  %3037 = vst.msk [vmem:[%s6257_s23 + $0x158] sm:$0xff] %vm2993_vm5, %v2932_v63  ;;  %v9235_v63 = vld [vmem:[#allocation36_spill] sm:$0xff] }
 0x5bf   : > { %3036 = vst.msk [vmem:[%s6257_s23 + $0x150] sm:$0xff] %vm2993_vm5, %v2929_v58  ;;  %3138 = vrot.lane.b32.xlu0 %v9232_v11, %s5259_s8 }
 0x5c1   : > { %3140 = vrot.lane.b32.xlu1 %v9233_v59, %s5259_s8  ;;  %v2938_v53 = vpop.xlane.xlu1 %2937  ;;  %v9236_v59 = vld [vmem:[#allocation43_spill] sm:$0xff] }
 0x5c2   : > { %v2935_v36 = vpop.xlane.xlu0 %2934  ;;  %3039 = vst.msk [vmem:[%s6257_s23 + $0x168] sm:$0xff] %vm2993_vm5, %v2938_v53  ;;  %v9237_v53 = vld [vmem:[#allocation42_spill] sm:$0xff] }
 0x5c3   : > { %3038 = vst.msk [vmem:[%s6257_s23 + $0x160] sm:$0xff] %vm2993_vm5, %v2935_v36  ;;  %3142 = vrot.lane.b32.xlu0 %v9234_v31, %s5259_s8 }
 0x5c5   : > { %3144 = vrot.lane.b32.xlu1 %v9235_v63, %s5259_s8  ;;  %v2944_v58 = vpop.xlane.xlu1 %2943  ;;  %v9238_v63 = vld [vmem:[#allocation49_spill] sm:$0xff] }
 0x5c6   : > { %v2941_v11 = vpop.xlane.xlu0 %2940  ;;  %3041 = vst.msk [vmem:[%s6257_s23 + $0x178] sm:$0xff] %vm2993_vm5, %v2944_v58  ;;  %v9239_v58 = vld [vmem:[#allocation48_spill] sm:$0xff] }
 0x5c7   : > { %3040 = vst.msk [vmem:[%s6257_s23 + $0x170] sm:$0xff] %vm2993_vm5, %v2941_v11  ;;  %3146 = vrot.lane.b32.xlu0 %v9236_v59, %s5259_s8 }
 0x5c9   : > { %3148 = vrot.lane.b32.xlu1 %v9237_v53, %s5259_s8  ;;  %v2950_v36 = vpop.xlane.xlu1 %2949  ;;  %v9240_v53 = vld [vmem:[#allocation55_spill] sm:$0xff] }
 0x5ca   : > { %v2947_v31 = vpop.xlane.xlu0 %2946  ;;  %3043 = vst.msk [vmem:[%s6257_s23 + $0x188] sm:$0xff] %vm2993_vm5, %v2950_v36  ;;  %v9241_v36 = vld [vmem:[#allocation54_spill] sm:$0xff] }
 0x5cb   : > { %3042 = vst.msk [vmem:[%s6257_s23 + $0x180] sm:$0xff] %vm2993_vm5, %v2947_v31  ;;  %3150 = vrot.lane.b32.xlu0 %v9238_v63, %s5259_s8 }
 0x5cd   : > { %3152 = vrot.lane.b32.xlu1 %v9239_v58, %s5259_s8  ;;  %v2956_v11 = vpop.xlane.xlu1 %2955  ;;  %v9242_v58 = vld [vmem:[#allocation61_spill] sm:$0xff] }
 0x5ce   : > { %v2953_v59 = vpop.xlane.xlu0 %2952  ;;  %3045 = vst.msk [vmem:[%s6257_s23 + $0x198] sm:$0xff] %vm2993_vm5, %v2956_v11  ;;  %v9243_v11 = vld [vmem:[#allocation60_spill] sm:$0xff] }
 0x5cf   : > { %3044 = vst.msk [vmem:[%s6257_s23 + $0x190] sm:$0xff] %vm2993_vm5, %v2953_v59  ;;  %3154 = vrot.lane.b32.xlu0 %v9240_v53, %s5259_s8 }
 0x5d1   : > { %3156 = vrot.lane.b32.xlu1 %v9241_v36, %s5259_s8  ;;  %v2962_v31 = vpop.xlane.xlu1 %2961  ;;  %v9244_v36 = vld [vmem:[#allocation67_spill] sm:$0xff] }
 0x5d2   : > { %v2959_v63 = vpop.xlane.xlu0 %2958  ;;  %3047 = vst.msk [vmem:[%s6257_s23 + $0x1a8] sm:$0xff] %vm2993_vm5, %v2962_v31  ;;  %v9245_v31 = vld [vmem:[#allocation66_spill] sm:$0xff] }
 0x5d3   : > { %3046 = vst.msk [vmem:[%s6257_s23 + $0x1a0] sm:$0xff] %vm2993_vm5, %v2959_v63  ;;  %3158 = vrot.lane.b32.xlu0 %v9242_v58, %s5259_s8 }
 0x5d5   : > { %3160 = vrot.lane.b32.xlu1 %v9243_v11, %s5259_s8  ;;  %v2968_v59 = vpop.xlane.xlu1 %2967  ;;  %v9246_v11 = vld [vmem:[#allocation73_spill] sm:$0xff] }
 0x5d6   : > { %v2965_v53 = vpop.xlane.xlu0 %2964  ;;  %3049 = vst.msk [vmem:[%s6257_s23 + $0x1b8] sm:$0xff] %vm2993_vm5, %v2968_v59  ;;  %v9247_v59 = vld [vmem:[#allocation72_spill] sm:$0xff] }
 0x5d7   : > { %3048 = vst.msk [vmem:[%s6257_s23 + $0x1b0] sm:$0xff] %vm2993_vm5, %v2965_v53  ;;  %3162 = vrot.lane.b32.xlu0 %v9244_v36, %s5259_s8 }
 0x5d9   : > { %3164 = vrot.lane.b32.xlu1 %v9245_v31, %s5259_s8  ;;  %v2974_v63 = vpop.xlane.xlu1 %2973  ;;  %v9248_v31 = vld [vmem:[#allocation79_spill] sm:$0xff] }
 0x5da   : > { %v2971_v58 = vpop.xlane.xlu0 %2970  ;;  %3051 = vst.msk [vmem:[%s6257_s23 + $0x1c8] sm:$0xff] %vm2993_vm5, %v2974_v63  ;;  %v9249_v63 = vld [vmem:[#allocation78_spill] sm:$0xff] }
 0x5db   : > { %3050 = vst.msk [vmem:[%s6257_s23 + $0x1c0] sm:$0xff] %vm2993_vm5, %v2971_v58  ;;  %3166 = vrot.lane.b32.xlu0 %v9246_v11, %s5259_s8  ;;  %v9251_v11 = vld [vmem:[#allocation84_spill] sm:$0xff] }
 0x5dd   : > { %3168 = vrot.lane.b32.xlu1 %v9247_v59, %s5259_s8  ;;  %v2980_v53 = vpop.xlane.xlu1 %2979  ;;  %v9250_v59 = vld [vmem:[#allocation85_spill] sm:$0xff] }
 0x5de   : > { %v2977_v36 = vpop.xlane.xlu0 %2976  ;;  %3053 = vst.msk [vmem:[%s6257_s23 + $0x1d8] sm:$0xff] %vm2993_vm5, %v2980_v53 }
 0x5df   : > { %3052 = vst.msk [vmem:[%s6257_s23 + $0x1d0] sm:$0xff] %vm2993_vm5, %v2977_v36  ;;  %3170 = vrot.lane.b32.xlu0 %v9248_v31, %s5259_s8  ;;  %v9253_v31 = vld [vmem:[#allocation90_spill] sm:$0xff] }
 0x5e1   : > { %3172 = vrot.lane.b32.xlu1 %v9249_v63, %s5259_s8  ;;  %v2986_v58 = vpop.xlane.xlu1 %2985  ;;  %v9252_v63 = vld [vmem:[#allocation91_spill] sm:$0xff] }
 0x5e2   : > { %v2983_v1 = vpop.xlane.xlu0 %2982  ;;  %3055 = vst.msk [vmem:[%s6257_s23 + $0x1e8] sm:$0xff] %vm2993_vm5, %v2986_v58 }
 0x5e3   : > { %3054 = vst.msk [vmem:[%s6257_s23 + $0x1e0] sm:$0xff] %vm2993_vm5, %v2983_v1  ;;  %3174 = vrot.lane.b32.xlu0 %v9250_v59, %s5259_s8  ;;  %v9255_v59 = vld [vmem:[#allocation97_spill] sm:$0xff] }
 0x5e5   : > { %3176 = vrot.lane.b32.xlu1 %v9251_v11, %s5259_s8  ;;  %v2992_v53 = vpop.xlane.xlu1 %2991 }
 0x5e6   : > { %v2989_v36 = vpop.xlane.xlu0 %2988  ;;  %3057 = vst.msk [vmem:[%s6257_s23 + $0x1f8] sm:$0xff] %vm2993_vm5, %v2992_v53 }
 0x5e7   : > { %3056 = vst.msk [vmem:[%s6257_s23 + $0x1f0] sm:$0xff] %vm2993_vm5, %v2989_v36  ;;  %3178 = vrot.lane.b32.xlu0 %v9252_v63, %s5259_s8 }
 0x5e9   : > { %3180 = vrot.lane.b32.xlu1 %v9253_v31, %s5259_s8  ;;  %v3061_v58 = vpop.permute.xlu1 %3060 }
 0x5ea   : > { %v3059_v1 = vpop.permute.xlu0 %3058  ;;  %v3253_v45 = vsel %vm1070_vm2, %v3061_v58, 0.0 }
 0x5eb   : > { %3182 = vrot.lane.b32.xlu0 %v9254_v26, %s5259_s8  ;;  %v3250_v33 = vsel %vm1070_vm2, %v3059_v1, 0.0 }
 0x5ed   : > { %3184 = vrot.lane.b32.xlu1 %v9255_v59, %s5259_s8  ;;  %v3063_v11 = vpop.permute.xlu1 %3062 }
 0x5ee   : > { %v3067_v17 = vpop.permute.xlu0 %3066  ;;  %v3256_v59 = vsel %vm1070_vm2, %v3063_v11, 0.0 }
 0x5ef   : > { %v3262_v1 = vsel %vm1070_vm2, %v3067_v17, 0.0 }
 0x5f1   : > { %v3065_v3 = vpop.permute.xlu1 %3064 }
 0x5f2   : > { %v3071_v53 = vpop.permute.xlu0 %3070  ;;  %v3259_v25 = vsel %vm1070_vm2, %v3065_v3, 0.0 }
 0x5f5   : > { %v3069_v7 = vpop.permute.xlu1 %3068 }
 0x5f6   : > { %v3075_v36 = vpop.permute.xlu0 %3074  ;;  %v3265_v30 = vsel %vm1070_vm2, %v3069_v7, 0.0 }
 0x5f9   : > { %v3073_v48 = vpop.permute.xlu1 %3072 }
 0x5fa   : > { %v3079_v22 = vpop.permute.xlu0 %3078  ;;  %v3271_v11 = vsel %vm1070_vm2, %v3073_v48, 0.0 }
 0x5fd   : > { %v3077_v63 = vpop.permute.xlu1 %3076 }
 0x5fe   : > { %v3083_v50 = vpop.permute.xlu0 %3082 }
 0x601   : > { %v3081_v39 = vpop.permute.xlu1 %3080 }
 0x602   : > { %v3087_v31 = vpop.permute.xlu0 %3086 }
 0x605   : > { %v3085_v5 = vpop.permute.xlu1 %3084 }
 0x606   : > { %v3091_v18 = vpop.permute.xlu0 %3090 }
 0x609   : > { %v3089_v26 = vpop.permute.xlu1 %3088 }
 0x60a   : > { %3251 = vadd.xlane.f32.xlu0 %v3250_v33  ;;  %v3095_v4 = vpop.permute.xlu0 %3094 }
 0x60d   : > { %v3093_v0 = vpop.permute.xlu1 %3092 }
 0x60e   : > { %3257 = vadd.xlane.f32.xlu0 %v3256_v59  ;;  %v3099_v55 = vpop.permute.xlu0 %3098  ;;  %v3268_v59 = vsel %vm1070_vm2, %v3071_v53, 0.0  ;;  %v3289_v53 = vsel %vm1070_vm2, %v3085_v5, 0.0 }
 0x611   : > { %3254 = vadd.xlane.f32.xlu1 %v3253_v45  ;;  %v3097_v21 = vpop.permute.xlu1 %3096  ;;  %v3277_v45 = vsel %vm1070_vm2, %v3077_v63, 0.0 }
 0x612   : > { %3260 = vadd.xlane.f32.xlu0 %v3259_v25  ;;  %v3103_v24 = vpop.permute.xlu0 %3102  ;;  %v3274_v25 = vsel %vm1070_vm2, %v3075_v36, 0.0  ;;  %v3295_v36 = vsel %vm1070_vm2, %v3089_v26, 0.0 }
 0x615   : > { %3266 = vadd.xlane.f32.xlu1 %v3265_v30  ;;  %v3101_v33 = vpop.permute.xlu1 %3100  ;;  %v3283_v30 = vsel %vm1070_vm2, %v3081_v39, 0.0 }
 0x616   : > { %3263 = vadd.xlane.f32.xlu0 %v3262_v1  ;;  %v3107_v13 = vpop.permute.xlu0 %3106  ;;  %v3280_v1 = vsel %vm1070_vm2, %v3079_v22, 0.0  ;;  %v3301_v22 = vsel %vm1070_vm2, %v3093_v0, 0.0 }
 0x619   : > { %3272 = vadd.xlane.f32.xlu1 %v3271_v11  ;;  %v3105_v58 = vpop.permute.xlu1 %3104  ;;  %v3286_v11 = vsel %vm1070_vm2, %v3083_v50, 0.0  ;;  %v3307_v50 = vsel %vm1070_vm2, %v3097_v21, 0.0 }
 0x61a   : > { %3269 = vadd.xlane.f32.xlu0 %v3268_v59  ;;  %v3111_v3 = vpop.permute.xlu0 %3110 }
 0x61d   : > { %3278 = vadd.xlane.f32.xlu1 %v3277_v45  ;;  %v3109_v7 = vpop.permute.xlu1 %3108  ;;  %v3292_v45 = vsel %vm1070_vm2, %v3087_v31, 0.0  ;;  %v3313_v31 = vsel %vm1070_vm2, %v3101_v33, 0.0  ;;  %v3328_v33 = vsel %vm1070_vm2, %v3111_v3, 0.0 }
 0x61e   : > { %3275 = vadd.xlane.f32.xlu0 %v3274_v25  ;;  %v3115_v17 = vpop.permute.xlu0 %3114  ;;  %v3325_v21 = vsel %vm1070_vm2, %v3109_v7, 0.0 }
 0x621   : > { %3284 = vadd.xlane.f32.xlu1 %v3283_v30  ;;  %v3113_v48 = vpop.permute.xlu1 %3112  ;;  %v3298_v30 = vsel %vm1070_vm2, %v3091_v18, 0.0  ;;  %v3319_v18 = vsel %vm1070_vm2, %v3105_v58, 0.0 }
 0x622   : > { %3281 = vadd.xlane.f32.xlu0 %v3280_v1  ;;  %v3119_v59 = vpop.permute.xlu0 %3118  ;;  %v3304_v1 = vsel %vm1070_vm2, %v3095_v4, 0.0  ;;  %v3322_v4 = vsel %vm1070_vm2, %v3107_v13, 0.0 }
 0x623   : > { %v3340_v7 = vsel %vm1070_vm2, %v3119_v59, 0.0 }
 0x625   : > { %3290 = vadd.xlane.f32.xlu1 %v3289_v53  ;;  %v3117_v63 = vpop.permute.xlu1 %3116 }
 0x626   : > { %3287 = vadd.xlane.f32.xlu0 %v3286_v11  ;;  %v3123_v39 = vpop.permute.xlu0 %3122  ;;  %v3310_v11 = vsel %vm1070_vm2, %v3099_v55, 0.0  ;;  %v3331_v55 = vsel %vm1070_vm2, %v3113_v48, 0.0 }
 0x627   : > { %v3346_v48 = vsel %vm1070_vm2, %v3123_v39, 0.0 }
 0x629   : > { %3296 = vadd.xlane.f32.xlu1 %v3295_v36  ;;  %v3121_v25 = vpop.permute.xlu1 %3120 }
 0x62a   : > { %3293 = vadd.xlane.f32.xlu0 %v3292_v45  ;;  %v3127_v53 = vpop.permute.xlu0 %3126  ;;  %v3316_v45 = vsel %vm1070_vm2, %v3103_v24, 0.0  ;;  %v3337_v24 = vsel %vm1070_vm2, %v3117_v63, 0.0  ;;  %v3343_v13 = vsel %vm1070_vm2, %v3121_v25, 0.0 }
 0x62d   : > { %3302 = vadd.xlane.f32.xlu1 %v3301_v22  ;;  %v3125_v5 = vpop.permute.xlu1 %3124 }
 0x62e   : > { %3299 = vadd.xlane.f32.xlu0 %v3298_v30  ;;  %v3131_v0 = vpop.permute.xlu0 %3130  ;;  %v3349_v3 = vsel %vm1070_vm2, %v3125_v5, 0.0 }
 0x62f   : > { %v3358_v25 = vsel %vm1070_vm2, %v3131_v0, 0.0 }
 0x631   : > { %3308 = vadd.xlane.f32.xlu1 %v3307_v50  ;;  %v3129_v26 = vpop.permute.xlu1 %3128 }
 0x632   : > { %3305 = vadd.xlane.f32.xlu0 %v3304_v1  ;;  %v3135_v22 = vpop.permute.xlu0 %3134  ;;  %v3334_v1 = vsel %vm1070_vm2, %v3115_v17, 0.0  ;;  %v3355_v17 = vsel %vm1070_vm2, %v3129_v26, 0.0 }
 0x633   : > { %v3364_v5 = vsel %vm1070_vm2, %v3135_v22, 0.0 }
 0x635   : > { %3314 = vadd.xlane.f32.xlu1 %v3313_v31  ;;  %v3133_v36 = vpop.permute.xlu1 %3132 }
 0x636   : > { %3311 = vadd.xlane.f32.xlu0 %v3310_v11  ;;  %v3139_v50 = vpop.permute.xlu0 %3138  ;;  %v3361_v59 = vsel %vm1070_vm2, %v3133_v36, 0.0 }
 0x639   : > { %3320 = vadd.xlane.f32.xlu1 %v3319_v18  ;;  %v3137_v30 = vpop.permute.xlu1 %3136 }
 0x63a   : > { %3317 = vadd.xlane.f32.xlu0 %v3316_v45  ;;  %v3143_v31 = vpop.permute.xlu0 %3142  ;;  %v3352_v45 = vsel %vm1070_vm2, %v3127_v53, 0.0  ;;  %v3367_v39 = vsel %vm1070_vm2, %v3137_v30, 0.0 }
 0x63b   : > { %v3376_v36 = vsel %vm1070_vm2, %v3143_v31, 0.0 }
 0x63d   : > { %3326 = vadd.xlane.f32.xlu1 %v3325_v21  ;;  %v3141_v58 = vpop.permute.xlu1 %3140 }
 0x63e   : > { %3323 = vadd.xlane.f32.xlu0 %v3322_v4  ;;  %v3147_v18 = vpop.permute.xlu0 %3146  ;;  %v3373_v53 = vsel %vm1070_vm2, %v3141_v58, 0.0 }
 0x63f   : > { %v3382_v30 = vsel %vm1070_vm2, %v3147_v18, 0.0 }
 0x641   : > { %3332 = vadd.xlane.f32.xlu1 %v3331_v55  ;;  %v3145_v11 = vpop.permute.xlu1 %3144 }
 0x642   : > { %3329 = vadd.xlane.f32.xlu0 %v3328_v33  ;;  %v3151_v21 = vpop.permute.xlu0 %3150  ;;  %v3370_v33 = vsel %vm1070_vm2, %v3139_v50, 0.0  ;;  %v3379_v0 = vsel %vm1070_vm2, %v3145_v11, 0.0 }
 0x645   : > { %3338 = vadd.xlane.f32.xlu1 %v3337_v24  ;;  %v3149_v63 = vpop.permute.xlu1 %3148 }
 0x646   : > { %3335 = vadd.xlane.f32.xlu0 %v3334_v1  ;;  %v3155_v55 = vpop.permute.xlu0 %3154  ;;  %v3385_v22 = vsel %vm1070_vm2, %v3149_v63, 0.0 }
 0x647   : > { %v3394_v11 = vsel %vm1070_vm2, %v3155_v55, 0.0 }
 0x649   : > { %3344 = vadd.xlane.f32.xlu1 %v3343_v13  ;;  %v3153_v4 = vpop.permute.xlu1 %3152 }
 0x64a   : > { %3341 = vadd.xlane.f32.xlu0 %v3340_v7  ;;  %v3159_v24 = vpop.permute.xlu0 %3158  ;;  %v3391_v50 = vsel %vm1070_vm2, %v3153_v4, 0.0  ;;  %v3388_v7 = vsel %vm1070_vm2, %v3151_v21, 0.0 }
 0x64b   : > { %v3400_v63 = vsel %vm1070_vm2, %v3159_v24, 0.0 }
 0x64d   : > { %3350 = vadd.xlane.f32.xlu1 %v3349_v3  ;;  %v3157_v26 = vpop.permute.xlu1 %3156 }
 0x64e   : > { %3347 = vadd.xlane.f32.xlu0 %v3346_v48  ;;  %v3163_v13 = vpop.permute.xlu0 %3162  ;;  %v3397_v31 = vsel %vm1070_vm2, %v3157_v26, 0.0 }
 0x651   : > { %3356 = vadd.xlane.f32.xlu1 %v3355_v17  ;;  %v3161_v1 = vpop.permute.xlu1 %3160 }
 0x652   : > { %3353 = vadd.xlane.f32.xlu0 %v3352_v45  ;;  %v3167_v3 = vpop.permute.xlu0 %3166  ;;  %v3403_v18 = vsel %vm1070_vm2, %v3161_v1, 0.0 }
 0x653   : > { %v3412_v4 = vsel %vm1070_vm2, %v3167_v3, 0.0 }
 0x655   : > { %3362 = vadd.xlane.f32.xlu1 %v3361_v59  ;;  %v3165_v58 = vpop.permute.xlu1 %3164 }
 0x656   : > { %3359 = vadd.xlane.f32.xlu0 %v3358_v25  ;;  %v3171_v17 = vpop.permute.xlu0 %3170  ;;  %v3409_v59 = vsel %vm1070_vm2, %v3165_v58, 0.0  ;;  %v3406_v25 = vsel %vm1070_vm2, %v3163_v13, 0.0 }
 0x657   : > { %v3418_v26 = vsel %vm1070_vm2, %v3171_v17, 0.0  ;;  %v9258_v17 = vld [vmem:[#allocation2_spill] sm:$0xff] }
 0x659   : > { %3368 = vadd.xlane.f32.xlu1 %v3367_v39  ;;  %v3169_v48 = vpop.permute.xlu1 %3168 }
 0x65a   : > { %3365 = vadd.xlane.f32.xlu0 %v3364_v5  ;;  %v3415_v21 = vsel %vm1070_vm2, %v3169_v48, 0.0  ;;  %v3175_v39 = vpop.permute.xlu0 %3174 }
 0x65d   : > { %3374 = vadd.xlane.f32.xlu1 %v3373_v53  ;;  %v3173_v45 = vpop.permute.xlu1 %3172 }
 0x65e   : > { %3371 = vadd.xlane.f32.xlu0 %v3370_v33  ;;  %v3421_v55 = vsel %vm1070_vm2, %v3173_v45, 0.0  ;;  %v3179_v53 = vpop.permute.xlu0 %3178 }
 0x65f   : > { %v3430_v1 = vsel %vm1070_vm2, %v3179_v53, 0.0  ;;  %v9263_v53 = vld [vmem:[#allocation21_spill] sm:$0xff] }
 0x661   : > { %3380 = vadd.xlane.f32.xlu1 %v3379_v0  ;;  %v3177_v5 = vpop.permute.xlu1 %3176 }
 0x662   : > { %3377 = vadd.xlane.f32.xlu0 %v3376_v36  ;;  %v3427_v0 = vsel %vm1070_vm2, %v3177_v5, 0.0  ;;  %v3424_v36 = vsel %vm1070_vm2, %v3175_v39, 0.0  ;;  %v9261_v39 = vld [vmem:[#allocation15_spill] sm:$0xff]  ;;  %v9262_v5 = vld [vmem:[#allocation14_spill] sm:$0xff] }
 0x665   : > { %3386 = vadd.xlane.f32.xlu1 %v3385_v22  ;;  %v3181_v33 = vpop.permute.xlu1 %3180  ;;  %v3183_v22 = vpop.permute.xlu0 %3182 }
 0x666   : > { %3383 = vadd.xlane.f32.xlu0 %v3382_v30  ;;  %v3433_v24 = vsel %vm1070_vm2, %v3181_v33, 0.0  ;;  %v3436_v58 = vsel %vm1070_vm2, %v3183_v22, 0.0  ;;  %v9264_v33 = vld [vmem:[#allocation20_spill] sm:$0xff] }
 0x669   : > { %3392 = vadd.xlane.f32.xlu1 %v3391_v50  ;;  %v3185_v30 = vpop.permute.xlu1 %3184 }
 0x66a   : > { %3389 = vadd.xlane.f32.xlu0 %v3388_v7  ;;  %v3439_v13 = vsel %vm1070_vm2, %v3185_v30, 0.0 }
 0x66d   : > { %3398 = vadd.xlane.f32.xlu1 %v3397_v31 }
 0x66e   : > { %3395 = vadd.xlane.f32.xlu0 %v3394_v11 }
 0x671   : > { %3404 = vadd.xlane.f32.xlu1 %v3403_v18 }
 0x672   : > { %3401 = vadd.xlane.f32.xlu0 %v3400_v63 }
 0x675   : > { %3410 = vadd.xlane.f32.xlu1 %v3409_v59  ;;  %v9259_v59 = vld [vmem:[#allocation10_spill] sm:$0xff] }
 0x676   : > { %3407 = vadd.xlane.f32.xlu0 %v3406_v25  ;;  %v9260_v25 = vld [vmem:[#allocation7_spill] sm:$0xff] }
 0x679   : > { %3416 = vadd.xlane.f32.xlu1 %v3415_v21 }
 0x67a   : > { %3413 = vadd.xlane.f32.xlu0 %v3412_v4 }
 0x67d   : > { %3422 = vadd.xlane.f32.xlu1 %v3421_v55 }
 0x67e   : > { %3419 = vadd.xlane.f32.xlu0 %v3418_v26 }
 0x681   : > { %3428 = vadd.xlane.f32.xlu1 %v3427_v0 }
 0x682   : > { %3425 = vadd.xlane.f32.xlu0 %v3424_v36 }
 0x685   : > { %3434 = vadd.xlane.f32.xlu1 %v3433_v24  ;;  %v9265_v24 = vld [vmem:[#allocation27_spill] sm:$0xff] }
 0x686   : > { %3431 = vadd.xlane.f32.xlu0 %v3430_v1  ;;  %v9266_v1 = vld [vmem:[#allocation26_spill] sm:$0xff] }
 0x689   : > { %3440 = vadd.xlane.f32.xlu1 %v3439_v13  ;;  %v9267_v13 = vld [vmem:[#allocation33_spill] sm:$0xff] }
 0x68a   : > { %3437 = vadd.xlane.f32.xlu0 %v3436_v58  ;;  %v9268_v58 = vld [vmem:[#allocation32_spill] sm:$0xff] }
 0x693   : > { %v3252_v50 = vpop.xlane.xlu0 %3251 }
 0x694   : > { %3442 = vst.msk [vmem:[%s6279_s26] sm:$0xff] %vm2993_vm5, %v3252_v50 }
 0x697   : > { %v3258_v7 = vpop.xlane.xlu0 %3257 }
 0x698   : > { %3444 = vst.msk [vmem:[%s6279_s26 + $0x10] sm:$0xff] %vm2993_vm5, %v3258_v7 }
 0x69a   : > { %3508 = vrot.lane.b32.xlu1 %v5472_v8, %s5260_s9  ;;  %v3255_v31 = vpop.xlane.xlu1 %3254 }
 0x69b   : > { %v3261_v11 = vpop.xlane.xlu0 %3260  ;;  %3443 = vst.msk [vmem:[%s6279_s26 + $0x8] sm:$0xff] %vm2993_vm5, %v3255_v31  ;;  %v9269_v31 = vld [vmem:[#allocation39_spill] sm:$0xff] }
 0x69c   : > { %3445 = vst.msk [vmem:[%s6279_s26 + $0x18] sm:$0xff] %vm2993_vm5, %v3261_v11  ;;  %v9270_v11 = vld [vmem:[#allocation38_spill] sm:$0xff] }
 0x69e   : > { %3510 = vrot.lane.b32.xlu1 %v5661_v27, %s5260_s9  ;;  %v3267_v3 = vpop.xlane.xlu1 %3266 }
 0x69f   : > { %v3264_v48 = vpop.xlane.xlu0 %3263  ;;  %3447 = vst.msk [vmem:[%s6279_s26 + $0x28] sm:$0xff] %vm2993_vm5, %v3267_v3 }
 0x6a0   : > { %3446 = vst.msk [vmem:[%s6279_s26 + $0x20] sm:$0xff] %vm2993_vm5, %v3264_v48  ;;  %3506 = vrot.lane.b32.xlu0 %v5485_v16, %s5260_s9 }
 0x6a2   : > { %3512 = vrot.lane.b32.xlu1 %v5526_v34, %s5260_s9  ;;  %v3273_v8 = vpop.xlane.xlu1 %3272 }
 0x6a3   : > { %v3270_v18 = vpop.xlane.xlu0 %3269  ;;  %3449 = vst.msk [vmem:[%s6279_s26 + $0x38] sm:$0xff] %vm2993_vm5, %v3273_v8  ;;  %v9271_v8 = vld [vmem:[#allocation45_spill] sm:$0xff] }
 0x6a4   : > { %3448 = vst.msk [vmem:[%s6279_s26 + $0x30] sm:$0xff] %vm2993_vm5, %v3270_v18  ;;  %3514 = vrot.lane.b32.xlu0 %v5699_v46, %s5260_s9  ;;  %v9272_v18 = vld [vmem:[#allocation44_spill] sm:$0xff] }
 0x6a6   : > { %3516 = vrot.lane.b32.xlu1 %v5691_v41, %s5260_s9  ;;  %v3279_v16 = vpop.xlane.xlu1 %3278 }
 0x6a7   : > { %v3276_v27 = vpop.xlane.xlu0 %3275  ;;  %3451 = vst.msk [vmem:[%s6279_s26 + $0x48] sm:$0xff] %vm2993_vm5, %v3279_v16 }
 0x6a8   : > { %3450 = vst.msk [vmem:[%s6279_s26 + $0x40] sm:$0xff] %vm2993_vm5, %v3276_v27  ;;  %3518 = vrot.lane.b32.xlu0 %v5819_v35, %s5260_s9 }
 0x6aa   : > { %3520 = vrot.lane.b32.xlu1 %v5813_v51, %s5260_s9  ;;  %v3285_v34 = vpop.xlane.xlu1 %3284 }
 0x6ab   : > { %v3282_v46 = vpop.xlane.xlu0 %3281  ;;  %3453 = vst.msk [vmem:[%s6279_s26 + $0x58] sm:$0xff] %vm2993_vm5, %v3285_v34  ;;  %v9273_v34 = vld [vmem:[#allocation51_spill] sm:$0xff] }
 0x6ac   : > { %3452 = vst.msk [vmem:[%s6279_s26 + $0x50] sm:$0xff] %vm2993_vm5, %v3282_v46  ;;  %3522 = vrot.lane.b32.xlu0 %v5929_v12, %s5260_s9  ;;  %v9274_v46 = vld [vmem:[#allocation50_spill] sm:$0xff] }
 0x6ae   : > { %3524 = vrot.lane.b32.xlu1 %v5923_v49, %s5260_s9  ;;  %v3291_v41 = vpop.xlane.xlu1 %3290 }
 0x6af   : > { %v3288_v35 = vpop.xlane.xlu0 %3287  ;;  %3455 = vst.msk [vmem:[%s6279_s26 + $0x68] sm:$0xff] %vm2993_vm5, %v3291_v41 }
 0x6b0   : > { %3454 = vst.msk [vmem:[%s6279_s26 + $0x60] sm:$0xff] %vm2993_vm5, %v3288_v35  ;;  %3526 = vrot.lane.b32.xlu0 %v6003_v9, %s5260_s9 }
 0x6b2   : > { %3528 = vrot.lane.b32.xlu1 %v5995_v20, %s5260_s9  ;;  %v3297_v51 = vpop.xlane.xlu1 %3296 }
 0x6b3   : > { %v3294_v12 = vpop.xlane.xlu0 %3293  ;;  %3457 = vst.msk [vmem:[%s6279_s26 + $0x78] sm:$0xff] %vm2993_vm5, %v3297_v51  ;;  %v9275_v51 = vld [vmem:[#allocation57_spill] sm:$0xff] }
 0x6b4   : > { %3456 = vst.msk [vmem:[%s6279_s26 + $0x70] sm:$0xff] %vm2993_vm5, %v3294_v12  ;;  %3530 = vrot.lane.b32.xlu0 %v6075_v61, %s5260_s9  ;;  %v9276_v12 = vld [vmem:[#allocation56_spill] sm:$0xff] }
 0x6b6   : > { %3532 = vrot.lane.b32.xlu1 %v6067_v2, %s5260_s9  ;;  %v3303_v9 = vpop.xlane.xlu1 %3302 }
 0x6b7   : > { %v3300_v49 = vpop.xlane.xlu0 %3299  ;;  %3459 = vst.msk [vmem:[%s6279_s26 + $0x88] sm:$0xff] %vm2993_vm5, %v3303_v9 }
 0x6b8   : > { %3458 = vst.msk [vmem:[%s6279_s26 + $0x80] sm:$0xff] %vm2993_vm5, %v3300_v49  ;;  %3534 = vrot.lane.b32.xlu0 %v6147_v43, %s5260_s9 }
 0x6ba   : > { %3536 = vrot.lane.b32.xlu1 %v6139_v19, %s5260_s9  ;;  %v3309_v20 = vpop.xlane.xlu1 %3308 }
 0x6bb   : > { %v3306_v61 = vpop.xlane.xlu0 %3305  ;;  %3461 = vst.msk [vmem:[%s6279_s26 + $0x98] sm:$0xff] %vm2993_vm5, %v3309_v20  ;;  %v9277_v20 = vld [vmem:[#allocation63_spill] sm:$0xff] }
 0x6bc   : > { %3460 = vst.msk [vmem:[%s6279_s26 + $0x90] sm:$0xff] %vm2993_vm5, %v3306_v61  ;;  %3538 = vrot.lane.b32.xlu0 %v6211_v10, %s5260_s9  ;;  %v9278_v61 = vld [vmem:[#allocation62_spill] sm:$0xff] }
 0x6be   : > { %3540 = vrot.lane.b32.xlu1 %v6207_v62, %s5260_s9  ;;  %v3315_v2 = vpop.xlane.xlu1 %3314 }
 0x6bf   : > { %v3312_v43 = vpop.xlane.xlu0 %3311  ;;  %3463 = vst.msk [vmem:[%s6279_s26 + $0xa8] sm:$0xff] %vm2993_vm5, %v3315_v2 }
 0x6c0   : > { %3462 = vst.msk [vmem:[%s6279_s26 + $0xa0] sm:$0xff] %vm2993_vm5, %v3312_v43  ;;  %3542 = vrot.lane.b32.xlu0 %v6269_v37, %s5260_s9 }
 0x6c2   : > { %3544 = vrot.lane.b32.xlu1 %v6265_v54, %s5260_s9  ;;  %v3321_v19 = vpop.xlane.xlu1 %3320 }
 0x6c3   : > { %v3318_v10 = vpop.xlane.xlu0 %3317  ;;  %3465 = vst.msk [vmem:[%s6279_s26 + $0xb8] sm:$0xff] %vm2993_vm5, %v3321_v19  ;;  %v9279_v19 = vld [vmem:[#allocation69_spill] sm:$0xff] }
 0x6c4   : > { %3464 = vst.msk [vmem:[%s6279_s26 + $0xb0] sm:$0xff] %vm2993_vm5, %v3318_v10  ;;  %3546 = vrot.lane.b32.xlu0 %v6339_v28, %s5260_s9  ;;  %v9280_v10 = vld [vmem:[#allocation68_spill] sm:$0xff] }
 0x6c6   : > { %3548 = vrot.lane.b32.xlu1 %v6335_v52, %s5260_s9  ;;  %v3327_v62 = vpop.xlane.xlu1 %3326 }
 0x6c7   : > { %v3324_v37 = vpop.xlane.xlu0 %3323  ;;  %3467 = vst.msk [vmem:[%s6279_s26 + $0xc8] sm:$0xff] %vm2993_vm5, %v3327_v62 }
 0x6c8   : > { %3466 = vst.msk [vmem:[%s6279_s26 + $0xc0] sm:$0xff] %vm2993_vm5, %v3324_v37  ;;  %3550 = vrot.lane.b32.xlu0 %v6403_v60, %s5260_s9 }
 0x6ca   : > { %3552 = vrot.lane.b32.xlu1 %v6399_v6, %s5260_s9  ;;  %v3333_v54 = vpop.xlane.xlu1 %3332 }
 0x6cb   : > { %v3330_v28 = vpop.xlane.xlu0 %3329  ;;  %3469 = vst.msk [vmem:[%s6279_s26 + $0xd8] sm:$0xff] %vm2993_vm5, %v3333_v54  ;;  %v9281_v54 = vld [vmem:[#allocation75_spill] sm:$0xff] }
 0x6cc   : > { %3468 = vst.msk [vmem:[%s6279_s26 + $0xd0] sm:$0xff] %vm2993_vm5, %v3330_v28  ;;  %3554 = vrot.lane.b32.xlu0 %v6477_v56, %s5260_s9  ;;  %v9282_v28 = vld [vmem:[#allocation74_spill] sm:$0xff] }
 0x6ce   : > { %3556 = vrot.lane.b32.xlu1 %v6473_v42, %s5260_s9  ;;  %v3339_v52 = vpop.xlane.xlu1 %3338 }
 0x6cf   : > { %v3336_v60 = vpop.xlane.xlu0 %3335  ;;  %3471 = vst.msk [vmem:[%s6279_s26 + $0xe8] sm:$0xff] %vm2993_vm5, %v3339_v52 }
 0x6d0   : > { %3470 = vst.msk [vmem:[%s6279_s26 + $0xe0] sm:$0xff] %vm2993_vm5, %v3336_v60  ;;  %3558 = vrot.lane.b32.xlu0 %v6541_v15, %s5260_s9 }
 0x6d2   : > { %3560 = vrot.lane.b32.xlu1 %v6537_v32, %s5260_s9  ;;  %v3345_v6 = vpop.xlane.xlu1 %3344  ;;  %v9256_v32 = vld [vmem:[#allocation92_spill] sm:$0xff] }
 0x6d3   : > { %v3342_v56 = vpop.xlane.xlu0 %3341  ;;  %3473 = vst.msk [vmem:[%s6279_s26 + $0xf8] sm:$0xff] %vm2993_vm5, %v3345_v6  ;;  %v9283_v6 = vld [vmem:[#allocation81_spill] sm:$0xff] }
 0x6d4   : > { %3472 = vst.msk [vmem:[%s6279_s26 + $0xf0] sm:$0xff] %vm2993_vm5, %v3342_v56  ;;  %3562 = vrot.lane.b32.xlu0 %v6605_v38, %s5260_s9  ;;  %v9284_v56 = vld [vmem:[#allocation80_spill] sm:$0xff] }
 0x6d6   : > { %3564 = vrot.lane.b32.xlu1 %v6601_v29, %s5260_s9  ;;  %v3351_v42 = vpop.xlane.xlu1 %3350  ;;  %v9257_v29 = vld [vmem:[#allocation5_spill] sm:$0xff] }
 0x6d7   : > { %v3348_v15 = vpop.xlane.xlu0 %3347  ;;  %3475 = vst.msk [vmem:[%s6279_s26 + $0x108] sm:$0xff] %vm2993_vm5, %v3351_v42 }
 0x6d8   : > { %3474 = vst.msk [vmem:[%s6279_s26 + $0x100] sm:$0xff] %vm2993_vm5, %v3348_v15  ;;  %3566 = vrot.lane.b32.xlu0 %v6669_v14, %s5260_s9 }
 0x6da   : > { %3568 = vrot.lane.b32.xlu1 %v9256_v32, %s5260_s9  ;;  %v3357_v38 = vpop.xlane.xlu1 %3356  ;;  %v9285_v32 = vld [vmem:[#allocation87_spill] sm:$0xff] }
 0x6db   : > { %v3354_v63 = vpop.xlane.xlu0 %3353  ;;  %3477 = vst.msk [vmem:[%s6279_s26 + $0x118] sm:$0xff] %vm2993_vm5, %v3357_v38  ;;  %v9286_v38 = vld [vmem:[#allocation86_spill] sm:$0xff] }
 0x6dc   : > { %3476 = vst.msk [vmem:[%s6279_s26 + $0x110] sm:$0xff] %vm2993_vm5, %v3354_v63  ;;  %3570 = vrot.lane.b32.xlu0 %v9257_v29, %s5260_s9 }
 0x6de   : > { %3572 = vrot.lane.b32.xlu1 %v9258_v17, %s5260_s9  ;;  %v3363_v14 = vpop.xlane.xlu1 %3362  ;;  %v9287_v17 = vld [vmem:[#allocation94_spill] sm:$0xff] }
 0x6df   : > { %v3360_v45 = vpop.xlane.xlu0 %3359  ;;  %3479 = vst.msk [vmem:[%s6279_s26 + $0x128] sm:$0xff] %vm2993_vm5, %v3363_v14  ;;  %v9288_v14 = vld [vmem:[#allocation93_spill] sm:$0xff] }
 0x6e0   : > { %3478 = vst.msk [vmem:[%s6279_s26 + $0x120] sm:$0xff] %vm2993_vm5, %v3360_v45  ;;  %3574 = vrot.lane.b32.xlu0 %v9259_v59, %s5260_s9 }
 0x6e2   : > { %3576 = vrot.lane.b32.xlu1 %v9260_v25, %s5260_s9  ;;  %v3369_v21 = vpop.xlane.xlu1 %3368 }
 0x6e3   : > { %v3366_v4 = vpop.xlane.xlu0 %3365  ;;  %3481 = vst.msk [vmem:[%s6279_s26 + $0x138] sm:$0xff] %vm2993_vm5, %v3369_v21 }
 0x6e4   : > { %3480 = vst.msk [vmem:[%s6279_s26 + $0x130] sm:$0xff] %vm2993_vm5, %v3366_v4  ;;  %3578 = vrot.lane.b32.xlu0 %v9261_v39, %s5260_s9 }
 0x6e6   : > { %3580 = vrot.lane.b32.xlu1 %v9262_v5, %s5260_s9  ;;  %v3375_v55 = vpop.xlane.xlu1 %3374 }
 0x6e7   : > { %v3372_v26 = vpop.xlane.xlu0 %3371  ;;  %3483 = vst.msk [vmem:[%s6279_s26 + $0x148] sm:$0xff] %vm2993_vm5, %v3375_v55 }
 0x6e8   : > { %3482 = vst.msk [vmem:[%s6279_s26 + $0x140] sm:$0xff] %vm2993_vm5, %v3372_v26  ;;  %3582 = vrot.lane.b32.xlu0 %v9263_v53, %s5260_s9 }
 0x6ea   : > { %3584 = vrot.lane.b32.xlu1 %v9264_v33, %s5260_s9  ;;  %v3381_v0 = vpop.xlane.xlu1 %3380 }
 0x6eb   : > { %v3378_v36 = vpop.xlane.xlu0 %3377  ;;  %3485 = vst.msk [vmem:[%s6279_s26 + $0x158] sm:$0xff] %vm2993_vm5, %v3381_v0 }
 0x6ec   : > { %3484 = vst.msk [vmem:[%s6279_s26 + $0x150] sm:$0xff] %vm2993_vm5, %v3378_v36  ;;  %3586 = vrot.lane.b32.xlu0 %v9265_v24, %s5260_s9 }
 0x6ee   : > { %3588 = vrot.lane.b32.xlu1 %v9266_v1, %s5260_s9  ;;  %v3387_v22 = vpop.xlane.xlu1 %3386 }
 0x6ef   : > { %v3384_v30 = vpop.xlane.xlu0 %3383  ;;  %3487 = vst.msk [vmem:[%s6279_s26 + $0x168] sm:$0xff] %vm2993_vm5, %v3387_v22 }
 0x6f0   : > { %3486 = vst.msk [vmem:[%s6279_s26 + $0x160] sm:$0xff] %vm2993_vm5, %v3384_v30  ;;  %3590 = vrot.lane.b32.xlu0 %v9267_v13, %s5260_s9 }
 0x6f2   : > { %3592 = vrot.lane.b32.xlu1 %v9268_v58, %s5260_s9  ;;  %v3393_v50 = vpop.xlane.xlu1 %3392 }
 0x6f3   : > { %v3390_v7 = vpop.xlane.xlu0 %3389  ;;  %3489 = vst.msk [vmem:[%s6279_s26 + $0x178] sm:$0xff] %vm2993_vm5, %v3393_v50 }
 0x6f4   : > { %3488 = vst.msk [vmem:[%s6279_s26 + $0x170] sm:$0xff] %vm2993_vm5, %v3390_v7  ;;  %3594 = vrot.lane.b32.xlu0 %v9269_v31, %s5260_s9 }
 0x6f6   : > { %3596 = vrot.lane.b32.xlu1 %v9270_v11, %s5260_s9  ;;  %v3399_v3 = vpop.xlane.xlu1 %3398 }
 0x6f7   : > { %v3396_v48 = vpop.xlane.xlu0 %3395  ;;  %3491 = vst.msk [vmem:[%s6279_s26 + $0x188] sm:$0xff] %vm2993_vm5, %v3399_v3 }
 0x6f8   : > { %3490 = vst.msk [vmem:[%s6279_s26 + $0x180] sm:$0xff] %vm2993_vm5, %v3396_v48  ;;  %3598 = vrot.lane.b32.xlu0 %v9271_v8, %s5260_s9 }
 0x6fa   : > { %3600 = vrot.lane.b32.xlu1 %v9272_v18, %s5260_s9  ;;  %v3405_v16 = vpop.xlane.xlu1 %3404 }
 0x6fb   : > { %v3402_v27 = vpop.xlane.xlu0 %3401  ;;  %3493 = vst.msk [vmem:[%s6279_s26 + $0x198] sm:$0xff] %vm2993_vm5, %v3405_v16 }
 0x6fc   : > { %3492 = vst.msk [vmem:[%s6279_s26 + $0x190] sm:$0xff] %vm2993_vm5, %v3402_v27  ;;  %3602 = vrot.lane.b32.xlu0 %v9273_v34, %s5260_s9 }
 0x6fe   : > { %3604 = vrot.lane.b32.xlu1 %v9274_v46, %s5260_s9  ;;  %v3411_v41 = vpop.xlane.xlu1 %3410 }
 0x6ff   : > { %v3408_v35 = vpop.xlane.xlu0 %3407  ;;  %3495 = vst.msk [vmem:[%s6279_s26 + $0x1a8] sm:$0xff] %vm2993_vm5, %v3411_v41 }
 0x700   : > { %3494 = vst.msk [vmem:[%s6279_s26 + $0x1a0] sm:$0xff] %vm2993_vm5, %v3408_v35  ;;  %3606 = vrot.lane.b32.xlu0 %v9275_v51, %s5260_s9 }
 0x702   : > { %3608 = vrot.lane.b32.xlu1 %v9276_v12, %s5260_s9  ;;  %v3417_v9 = vpop.xlane.xlu1 %3416 }
 0x703   : > { %v3414_v49 = vpop.xlane.xlu0 %3413  ;;  %3497 = vst.msk [vmem:[%s6279_s26 + $0x1b8] sm:$0xff] %vm2993_vm5, %v3417_v9 }
 0x704   : > { %3496 = vst.msk [vmem:[%s6279_s26 + $0x1b0] sm:$0xff] %vm2993_vm5, %v3414_v49  ;;  %3610 = vrot.lane.b32.xlu0 %v9277_v20, %s5260_s9 }
 0x706   : > { %3612 = vrot.lane.b32.xlu1 %v9278_v61, %s5260_s9  ;;  %v3423_v2 = vpop.xlane.xlu1 %3422 }
 0x707   : > { %v3420_v43 = vpop.xlane.xlu0 %3419  ;;  %3499 = vst.msk [vmem:[%s6279_s26 + $0x1c8] sm:$0xff] %vm2993_vm5, %v3423_v2 }
 0x708   : > { %3498 = vst.msk [vmem:[%s6279_s26 + $0x1c0] sm:$0xff] %vm2993_vm5, %v3420_v43  ;;  %3614 = vrot.lane.b32.xlu0 %v9279_v19, %s5260_s9 }
 0x70a   : > { %3616 = vrot.lane.b32.xlu1 %v9280_v10, %s5260_s9  ;;  %v3429_v62 = vpop.xlane.xlu1 %3428 }
 0x70b   : > { %v3426_v37 = vpop.xlane.xlu0 %3425  ;;  %3501 = vst.msk [vmem:[%s6279_s26 + $0x1d8] sm:$0xff] %vm2993_vm5, %v3429_v62 }
 0x70c   : > { %3500 = vst.msk [vmem:[%s6279_s26 + $0x1d0] sm:$0xff] %vm2993_vm5, %v3426_v37  ;;  %3618 = vrot.lane.b32.xlu0 %v9281_v54, %s5260_s9 }
 0x70e   : > { %3620 = vrot.lane.b32.xlu1 %v9282_v28, %s5260_s9  ;;  %v3435_v52 = vpop.xlane.xlu1 %3434 }
 0x70f   : > { %v3432_v60 = vpop.xlane.xlu0 %3431  ;;  %3503 = vst.msk [vmem:[%s6279_s26 + $0x1e8] sm:$0xff] %vm2993_vm5, %v3435_v52 }
 0x710   : > { %3502 = vst.msk [vmem:[%s6279_s26 + $0x1e0] sm:$0xff] %vm2993_vm5, %v3432_v60  ;;  %3622 = vrot.lane.b32.xlu0 %v9283_v6, %s5260_s9 }
 0x712   : > { %3624 = vrot.lane.b32.xlu1 %v9284_v56, %s5260_s9  ;;  %v3441_v42 = vpop.xlane.xlu1 %3440 }
 0x713   : > { %v3438_v15 = vpop.xlane.xlu0 %3437  ;;  %3505 = vst.msk [vmem:[%s6279_s26 + $0x1f8] sm:$0xff] %vm2993_vm5, %v3441_v42 }
 0x714   : > { %3504 = vst.msk [vmem:[%s6279_s26 + $0x1f0] sm:$0xff] %vm2993_vm5, %v3438_v15  ;;  %3626 = vrot.lane.b32.xlu0 %v9285_v32, %s5260_s9 }
 0x716   : > { %3628 = vrot.lane.b32.xlu1 %v9286_v38, %s5260_s9  ;;  %v3509_v63 = vpop.permute.xlu1 %3508 }
 0x717   : > { %v3507_v29 = vpop.permute.xlu0 %3506  ;;  %v3701_v7 = vsel %vm1070_vm2, %v3509_v63, 0.0 }
 0x718   : > { %3630 = vrot.lane.b32.xlu0 %v9287_v17, %s5260_s9  ;;  %v3698_v1 = vsel %vm1070_vm2, %v3507_v29, 0.0 }
 0x71a   : > { %3632 = vrot.lane.b32.xlu1 %v9288_v14, %s5260_s9  ;;  %v3511_v45 = vpop.permute.xlu1 %3510 }
 0x71b   : > { %v3515_v59 = vpop.permute.xlu0 %3514  ;;  %v3704_v13 = vsel %vm1070_vm2, %v3511_v45, 0.0 }
 0x71c   : > { %v3710_v8 = vsel %vm1070_vm2, %v3515_v59, 0.0 }
 0x71e   : > { %v3513_v25 = vpop.permute.xlu1 %3512 }
 0x71f   : > { %v3519_v21 = vpop.permute.xlu0 %3518  ;;  %v3707_v31 = vsel %vm1070_vm2, %v3513_v25, 0.0 }
 0x720   : > { %v3716_v34 = vsel %vm1070_vm2, %v3519_v21, 0.0 }
 0x722   : > { %v3517_v4 = vpop.permute.xlu1 %3516 }
 0x723   : > { %v3523_v39 = vpop.permute.xlu0 %3522  ;;  %v3713_v48 = vsel %vm1070_vm2, %v3517_v4, 0.0 }
 0x724   : > { %v3722_v51 = vsel %vm1070_vm2, %v3523_v39, 0.0 }
 0x726   : > { %v3521_v5 = vpop.permute.xlu1 %3520 }
 0x727   : > { %v3527_v55 = vpop.permute.xlu0 %3526  ;;  %v3719_v27 = vsel %vm1070_vm2, %v3521_v5, 0.0 }
 0x728   : > { %v3728_v20 = vsel %vm1070_vm2, %v3527_v55, 0.0 }
 0x72a   : > { %v3525_v26 = vpop.permute.xlu1 %3524 }
 0x72b   : > { %v3531_v53 = vpop.permute.xlu0 %3530  ;;  %v3725_v35 = vsel %vm1070_vm2, %v3525_v26, 0.0 }
 0x72c   : > { %v3734_v43 = vsel %vm1070_vm2, %v3531_v53, 0.0 }
 0x72e   : > { %v3529_v33 = vpop.permute.xlu1 %3528 }
 0x72f   : > { %v3535_v0 = vpop.permute.xlu0 %3534  ;;  %v3731_v49 = vsel %vm1070_vm2, %v3529_v33, 0.0 }
 0x730   : > { %v3740_v37 = vsel %vm1070_vm2, %v3535_v0, 0.0 }
 0x732   : > { %v3533_v36 = vpop.permute.xlu1 %3532 }
 0x733   : > { %v3539_v24 = vpop.permute.xlu0 %3538  ;;  %v3737_v2 = vsel %vm1070_vm2, %v3533_v36, 0.0 }
 0x734   : > { %v3746_v60 = vsel %vm1070_vm2, %v3539_v24, 0.0 }
 0x736   : > { %v3537_v22 = vpop.permute.xlu1 %3536 }
 0x737   : > { %3699 = vadd.xlane.f32.xlu0 %v3698_v1  ;;  %v3543_v30 = vpop.permute.xlu0 %3542  ;;  %v3743_v62 = vsel %vm1070_vm2, %v3537_v22, 0.0 }
 0x738   : > { %v3752_v42 = vsel %vm1070_vm2, %v3543_v30, 0.0 }
 0x73a   : > { %v3541_v58 = vpop.permute.xlu1 %3540 }
 0x73b   : > { %3705 = vadd.xlane.f32.xlu0 %v3704_v13  ;;  %v3547_v50 = vpop.permute.xlu0 %3546  ;;  %v3749_v52 = vsel %vm1070_vm2, %v3541_v58, 0.0 }
 0x73c   : > { %v3758_v63 = vsel %vm1070_vm2, %v3547_v50, 0.0 }
 0x73e   : > { %3702 = vadd.xlane.f32.xlu1 %v3701_v7  ;;  %v3545_v11 = vpop.permute.xlu1 %3544 }
 0x73f   : > { %3708 = vadd.xlane.f32.xlu0 %v3707_v31  ;;  %v3551_v3 = vpop.permute.xlu0 %3550  ;;  %v3755_v56 = vsel %vm1070_vm2, %v3545_v11, 0.0 }
 0x740   : > { %v3764_v45 = vsel %vm1070_vm2, %v3551_v3, 0.0 }
 0x742   : > { %3714 = vadd.xlane.f32.xlu1 %v3713_v48  ;;  %v3549_v18 = vpop.permute.xlu1 %3548 }
 0x743   : > { %3711 = vadd.xlane.f32.xlu0 %v3710_v8  ;;  %v3555_v16 = vpop.permute.xlu0 %3554  ;;  %v3761_v38 = vsel %vm1070_vm2, %v3549_v18, 0.0 }
 0x744   : > { %v3770_v25 = vsel %vm1070_vm2, %v3555_v16, 0.0 }
 0x746   : > { %3720 = vadd.xlane.f32.xlu1 %v3719_v27  ;;  %v3553_v46 = vpop.permute.xlu1 %3552 }
 0x747   : > { %3717 = vadd.xlane.f32.xlu0 %v3716_v34  ;;  %v3559_v41 = vpop.permute.xlu0 %3558  ;;  %v3767_v14 = vsel %vm1070_vm2, %v3553_v46, 0.0 }
 0x748   : > { %v3776_v5 = vsel %vm1070_vm2, %v3559_v41, 0.0 }
 0x74a   : > { %3726 = vadd.xlane.f32.xlu1 %v3725_v35  ;;  %v3557_v12 = vpop.permute.xlu1 %3556 }
 0x74b   : > { %3723 = vadd.xlane.f32.xlu0 %v3722_v51  ;;  %v3563_v9 = vpop.permute.xlu0 %3562  ;;  %v3773_v59 = vsel %vm1070_vm2, %v3557_v12, 0.0 }
 0x74c   : > { %v3782_v33 = vsel %vm1070_vm2, %v3563_v9, 0.0 }
 0x74e   : > { %3732 = vadd.xlane.f32.xlu1 %v3731_v49  ;;  %v3561_v61 = vpop.permute.xlu1 %3560 }
 0x74f   : > { %3729 = vadd.xlane.f32.xlu0 %v3728_v20  ;;  %v3567_v19 = vpop.permute.xlu0 %3566  ;;  %v3779_v39 = vsel %vm1070_vm2, %v3561_v61, 0.0 }
 0x750   : > { %v3788_v36 = vsel %vm1070_vm2, %v3567_v19, 0.0 }
 0x752   : > { %3738 = vadd.xlane.f32.xlu1 %v3737_v2  ;;  %v3565_v10 = vpop.permute.xlu1 %3564 }
 0x753   : > { %3735 = vadd.xlane.f32.xlu0 %v3734_v43  ;;  %v3571_v28 = vpop.permute.xlu0 %3570  ;;  %v3785_v53 = vsel %vm1070_vm2, %v3565_v10, 0.0 }
 0x754   : > { %v3794_v30 = vsel %vm1070_vm2, %v3571_v28, 0.0 }
 0x756   : > { %3744 = vadd.xlane.f32.xlu1 %v3743_v62  ;;  %v3569_v54 = vpop.permute.xlu1 %3568 }
 0x757   : > { %3741 = vadd.xlane.f32.xlu0 %v3740_v37  ;;  %v3575_v15 = vpop.permute.xlu0 %3574  ;;  %v3791_v0 = vsel %vm1070_vm2, %v3569_v54, 0.0 }
 0x758   : > { %v3800_v7 = vsel %vm1070_vm2, %v3575_v15, 0.0 }
 0x75a   : > { %3750 = vadd.xlane.f32.xlu1 %v3749_v52  ;;  %v3573_v6 = vpop.permute.xlu1 %3572 }
 0x75b   : > { %3747 = vadd.xlane.f32.xlu0 %v3746_v60  ;;  %v3579_v29 = vpop.permute.xlu0 %3578  ;;  %v3797_v22 = vsel %vm1070_vm2, %v3573_v6, 0.0 }
 0x75c   : > { %v3806_v11 = vsel %vm1070_vm2, %v3579_v29, 0.0 }
 0x75e   : > { %3756 = vadd.xlane.f32.xlu1 %v3755_v56  ;;  %v3577_v32 = vpop.permute.xlu1 %3576 }
 0x75f   : > { %3753 = vadd.xlane.f32.xlu0 %v3752_v42  ;;  %v3583_v21 = vpop.permute.xlu0 %3582  ;;  %v3803_v50 = vsel %vm1070_vm2, %v3577_v32, 0.0 }
 0x760   : > { %v3812_v18 = vsel %vm1070_vm2, %v3583_v21, 0.0 }
 0x762   : > { %3762 = vadd.xlane.f32.xlu1 %v3761_v38  ;;  %v3581_v17 = vpop.permute.xlu1 %3580 }
 0x763   : > { %3759 = vadd.xlane.f32.xlu0 %v3758_v63  ;;  %v3587_v55 = vpop.permute.xlu0 %3586  ;;  %v3809_v31 = vsel %vm1070_vm2, %v3581_v17, 0.0 }
 0x764   : > { %v3818_v46 = vsel %vm1070_vm2, %v3587_v55, 0.0 }
 0x766   : > { %3768 = vadd.xlane.f32.xlu1 %v3767_v14  ;;  %v3585_v4 = vpop.permute.xlu1 %3584 }
 0x767   : > { %3765 = vadd.xlane.f32.xlu0 %v3764_v45  ;;  %v3591_v24 = vpop.permute.xlu0 %3590  ;;  %v3815_v8 = vsel %vm1070_vm2, %v3585_v4, 0.0 }
 0x768   : > { %v3824_v35 = vsel %vm1070_vm2, %v3591_v24, 0.0 }
 0x76a   : > { %3774 = vadd.xlane.f32.xlu1 %v3773_v59  ;;  %v3589_v26 = vpop.permute.xlu1 %3588 }
 0x76b   : > { %3771 = vadd.xlane.f32.xlu0 %v3770_v25  ;;  %v3595_v13 = vpop.permute.xlu0 %3594  ;;  %v3821_v34 = vsel %vm1070_vm2, %v3589_v26, 0.0 }
 0x76c   : > { %v3830_v49 = vsel %vm1070_vm2, %v3595_v13, 0.0 }
 0x76e   : > { %3780 = vadd.xlane.f32.xlu1 %v3779_v39  ;;  %v3593_v1 = vpop.permute.xlu1 %3592 }
 0x76f   : > { %3777 = vadd.xlane.f32.xlu0 %v3776_v5  ;;  %v3599_v3 = vpop.permute.xlu0 %3598  ;;  %v3827_v41 = vsel %vm1070_vm2, %v3593_v1, 0.0 }
 0x770   : > { %v3836_v43 = vsel %vm1070_vm2, %v3599_v3, 0.0  ;;  %v9295_v3 = vld [vmem:[#allocation34_spill] sm:$0xff] }
 0x772   : > { %3786 = vadd.xlane.f32.xlu1 %v3785_v53  ;;  %v3597_v58 = vpop.permute.xlu1 %3596 }
 0x773   : > { %3783 = vadd.xlane.f32.xlu0 %v3782_v33  ;;  %v3603_v16 = vpop.permute.xlu0 %3602  ;;  %v3833_v9 = vsel %vm1070_vm2, %v3597_v58, 0.0  ;;  %v9292_v58 = vld [vmem:[#allocation29_spill] sm:$0xff] }
 0x774   : > { %v3842_v10 = vsel %vm1070_vm2, %v3603_v16, 0.0  ;;  %v9297_v16 = vld [vmem:[#allocation40_spill] sm:$0xff] }
 0x776   : > { %3792 = vadd.xlane.f32.xlu1 %v3791_v0  ;;  %v3601_v48 = vpop.permute.xlu1 %3600 }
 0x777   : > { %3789 = vadd.xlane.f32.xlu0 %v3788_v36  ;;  %v3607_v51 = vpop.permute.xlu0 %3606  ;;  %v3839_v2 = vsel %vm1070_vm2, %v3601_v48, 0.0 }
 0x778   : > { %v3848_v28 = vsel %vm1070_vm2, %v3607_v51, 0.0 }
 0x77a   : > { %3798 = vadd.xlane.f32.xlu1 %v3797_v22  ;;  %v3605_v27 = vpop.permute.xlu1 %3604 }
 0x77b   : > { %3795 = vadd.xlane.f32.xlu0 %v3794_v30  ;;  %v3611_v20 = vpop.permute.xlu0 %3610  ;;  %v3845_v19 = vsel %vm1070_vm2, %v3605_v27, 0.0  ;;  %v9291_v30 = vld [vmem:[#allocation22_spill] sm:$0xff] }
 0x77c   : > { %v3854_v56 = vsel %vm1070_vm2, %v3611_v20, 0.0 }
 0x77e   : > { %3804 = vadd.xlane.f32.xlu1 %v3803_v50  ;;  %v3609_v12 = vpop.permute.xlu1 %3608  ;;  %v9293_v50 = vld [vmem:[#allocation28_spill] sm:$0xff] }
 0x77f   : > { %3801 = vadd.xlane.f32.xlu0 %v3800_v7  ;;  %v3615_v62 = vpop.permute.xlu0 %3614  ;;  %v3851_v54 = vsel %vm1070_vm2, %v3609_v12, 0.0  ;;  %v9300_v12 = vld [vmem:[#allocation53_spill] sm:$0xff] }
 0x780   : > { %v3860_v15 = vsel %vm1070_vm2, %v3615_v62, 0.0  ;;  %v9305_v62 = vld [vmem:[#allocation64_spill] sm:$0xff] }
 0x782   : > { %3810 = vadd.xlane.f32.xlu1 %v3809_v31  ;;  %v3613_v61 = vpop.permute.xlu1 %3612 }
 0x783   : > { %3807 = vadd.xlane.f32.xlu0 %v3806_v11  ;;  %v3619_v52 = vpop.permute.xlu0 %3618  ;;  %v3857_v6 = vsel %vm1070_vm2, %v3613_v61, 0.0  ;;  %v9294_v11 = vld [vmem:[#allocation35_spill] sm:$0xff] }
 0x784   : > { %v3866_v29 = vsel %vm1070_vm2, %v3619_v52, 0.0  ;;  %v9302_v61 = vld [vmem:[#allocation59_spill] sm:$0xff]  ;;  %v9307_v52 = vld [vmem:[#allocation70_spill] sm:$0xff] }
 0x786   : > { %3816 = vadd.xlane.f32.xlu1 %v3815_v8  ;;  %v3617_v37 = vpop.permute.xlu1 %3616 }
 0x787   : > { %3813 = vadd.xlane.f32.xlu0 %v3812_v18  ;;  %v3863_v42 = vsel %vm1070_vm2, %v3617_v37, 0.0  ;;  %v3623_v32 = vpop.permute.xlu0 %3622  ;;  %v9296_v18 = vld [vmem:[#allocation41_spill] sm:$0xff] }
 0x788   : > { %v3872_v59 = vsel %vm1070_vm2, %v3623_v32, 0.0 }
 0x78a   : > { %3822 = vadd.xlane.f32.xlu1 %v3821_v34  ;;  %v3621_v60 = vpop.permute.xlu1 %3620 }
 0x78b   : > { %3819 = vadd.xlane.f32.xlu0 %v3818_v46  ;;  %v3869_v63 = vsel %vm1070_vm2, %v3621_v60, 0.0  ;;  %v3627_v17 = vpop.permute.xlu0 %3626  ;;  %v9298_v46 = vld [vmem:[#allocation47_spill] sm:$0xff] }
 0x78c   : > { %v3878_v21 = vsel %vm1070_vm2, %v3627_v17, 0.0 }
 0x78e   : > { %3828 = vadd.xlane.f32.xlu1 %v3827_v41  ;;  %v3625_v38 = vpop.permute.xlu1 %3624  ;;  %v9299_v41 = vld [vmem:[#allocation46_spill] sm:$0xff] }
 0x78f   : > { %3825 = vadd.xlane.f32.xlu0 %v3824_v35  ;;  %v3875_v45 = vsel %vm1070_vm2, %v3625_v38, 0.0  ;;  %v3631_v4 = vpop.permute.xlu0 %3630  ;;  %v9310_v38 = vld [vmem:[#allocation83_spill] sm:$0xff] }
 0x790   : > { %v3884_v55 = vsel %vm1070_vm2, %v3631_v4, 0.0  ;;  %v9315_v4 = vld [vmem:[#allocation95_spill] sm:$0xff] }
 0x792   : > { %3834 = vadd.xlane.f32.xlu1 %v3833_v9  ;;  %v3629_v14 = vpop.permute.xlu1 %3628  ;;  %v9301_v9 = vld [vmem:[#allocation52_spill] sm:$0xff] }
 0x793   : > { %3831 = vadd.xlane.f32.xlu0 %v3830_v49  ;;  %v3881_v25 = vsel %vm1070_vm2, %v3629_v14, 0.0  ;;  %v9312_v14 = vld [vmem:[#allocation89_spill] sm:$0xff] }
 0x796   : > { %3840 = vadd.xlane.f32.xlu1 %v3839_v2  ;;  %v3633_v39 = vpop.permute.xlu1 %3632  ;;  %v9303_v2 = vld [vmem:[#allocation58_spill] sm:$0xff] }
 0x797   : > { %3837 = vadd.xlane.f32.xlu0 %v3836_v43  ;;  %v3887_v5 = vsel %vm1070_vm2, %v3633_v39, 0.0 }
 0x79a   : > { %3846 = vadd.xlane.f32.xlu1 %v3845_v19 }
 0x79b   : > { %3843 = vadd.xlane.f32.xlu0 %v3842_v10  ;;  %v9304_v10 = vld [vmem:[#allocation65_spill] sm:$0xff] }
 0x79e   : > { %3852 = vadd.xlane.f32.xlu1 %v3851_v54 }
 0x79f   : > { %3849 = vadd.xlane.f32.xlu0 %v3848_v28  ;;  %v9306_v28 = vld [vmem:[#allocation71_spill] sm:$0xff] }
 0x7a2   : > { %3858 = vadd.xlane.f32.xlu1 %v3857_v6 }
 0x7a3   : > { %3855 = vadd.xlane.f32.xlu0 %v3854_v56  ;;  %v9308_v56 = vld [vmem:[#allocation77_spill] sm:$0xff] }
 0x7a6   : > { %3864 = vadd.xlane.f32.xlu1 %v3863_v42  ;;  %v9309_v42 = vld [vmem:[#allocation76_spill] sm:$0xff] }
 0x7a7   : > { %3861 = vadd.xlane.f32.xlu0 %v3860_v15 }
 0x7aa   : > { %3870 = vadd.xlane.f32.xlu1 %v3869_v63  ;;  %v9311_v63 = vld [vmem:[#allocation82_spill] sm:$0xff] }
 0x7ab   : > { %3867 = vadd.xlane.f32.xlu0 %v3866_v29 }
 0x7ae   : > { %3876 = vadd.xlane.f32.xlu1 %v3875_v45  ;;  %v9313_v45 = vld [vmem:[#allocation88_spill] sm:$0xff] }
 0x7af   : > { %3873 = vadd.xlane.f32.xlu0 %v3872_v59 }
 0x7b2   : > { %3882 = vadd.xlane.f32.xlu1 %v3881_v25 }
 0x7b3   : > { %3879 = vadd.xlane.f32.xlu0 %v3878_v21  ;;  %v9314_v21 = vld [vmem:[#allocation96_spill] sm:$0xff] }
 0x7b6   : > { %3888 = vadd.xlane.f32.xlu1 %v3887_v5 }
 0x7b7   : > { %3885 = vadd.xlane.f32.xlu0 %v3884_v55  ;;  %v9316_v55 = vld [vmem:[#allocation8_spill] sm:$0xff] }
 0x7c0   : > { %v3700_v26 = vpop.xlane.xlu0 %3699 }
 0x7c1   : > { %3891 = vst.msk [vmem:[%s6257_s23] sm:$0xff] %vm3890_vm6, %v3700_v26  ;;  %v9317_v26 = vld [vmem:[#allocation4_spill] sm:$0xff] }
 0x7c4   : > { %v3706_v53 = vpop.xlane.xlu0 %3705 }
 0x7c5   : > { %3893 = vst.msk [vmem:[%s6257_s23 + $0x10] sm:$0xff] %vm3890_vm6, %v3706_v53 }
 0x7c7   : > { %3957 = vrot.lane.b32.xlu1 %v9105_v47, %s5260_s9  ;;  %v3703_v33 = vpop.xlane.xlu1 %3702 }
 0x7c8   : > { %v3709_v0 = vpop.xlane.xlu0 %3708  ;;  %3892 = vst.msk [vmem:[%s6257_s23 + $0x8] sm:$0xff] %vm3890_vm6, %v3703_v33 }
 0x7c9   : > { %3894 = vst.msk [vmem:[%s6257_s23 + $0x18] sm:$0xff] %vm3890_vm6, %v3709_v0  ;;  %v9318_v0 = vld [vmem:[#allocation13_spill] sm:$0xff] }
 0x7cb   : > { %3959 = vrot.lane.b32.xlu1 %v9106_v57, %s5260_s9  ;;  %v3715_v36 = vpop.xlane.xlu1 %3714  ;;  %v9289_v57 = vld [vmem:[#allocation16_spill] sm:$0xff] }
 0x7cc   : > { %v3712_v24 = vpop.xlane.xlu0 %3711  ;;  %3896 = vst.msk [vmem:[%s6257_s23 + $0x28] sm:$0xff] %vm3890_vm6, %v3715_v36  ;;  %v9319_v36 = vld [vmem:[#allocation12_spill] sm:$0xff] }
 0x7cd   : > { %3895 = vst.msk [vmem:[%s6257_s23 + $0x20] sm:$0xff] %vm3890_vm6, %v3712_v24  ;;  %3955 = vrot.lane.b32.xlu0 %v9107_v44, %s5260_s9 }
 0x7cf   : > { %3961 = vrot.lane.b32.xlu1 %v9108_v23, %s5260_s9  ;;  %v3721_v47 = vpop.xlane.xlu1 %3720  ;;  %v9290_v23 = vld [vmem:[#allocation23_spill] sm:$0xff] }
 0x7d0   : > { %v3718_v1 = vpop.xlane.xlu0 %3717  ;;  %3898 = vst.msk [vmem:[%s6257_s23 + $0x38] sm:$0xff] %vm3890_vm6, %v3721_v47 }
 0x7d1   : > { %3897 = vst.msk [vmem:[%s6257_s23 + $0x30] sm:$0xff] %vm3890_vm6, %v3718_v1  ;;  %3963 = vrot.lane.b32.xlu0 %v9109_v40, %s5260_s9  ;;  %v9320_v1 = vld [vmem:[#allocation19_spill] sm:$0xff] }
 0x7d3   : > { %3965 = vrot.lane.b32.xlu1 %v9289_v57, %s5260_s9  ;;  %v3727_v44 = vpop.xlane.xlu1 %3726  ;;  %v9321_v57 = vld [vmem:[#allocation18_spill] sm:$0xff] }
 0x7d4   : > { %v3724_v22 = vpop.xlane.xlu0 %3723  ;;  %3900 = vst.msk [vmem:[%s6257_s23 + $0x48] sm:$0xff] %vm3890_vm6, %v3727_v44 }
 0x7d5   : > { %3899 = vst.msk [vmem:[%s6257_s23 + $0x40] sm:$0xff] %vm3890_vm6, %v3724_v22  ;;  %3967 = vrot.lane.b32.xlu0 %v9290_v23, %s5260_s9  ;;  %v9322_v23 = vld [vmem:[#allocation25_spill] sm:$0xff] }
 0x7d7   : > { %3969 = vrot.lane.b32.xlu1 %v9291_v30, %s5260_s9  ;;  %v3733_v40 = vpop.xlane.xlu1 %3732  ;;  %v9323_v30 = vld [vmem:[#allocation24_spill] sm:$0xff] }
 0x7d8   : > { %v3730_v13 = vpop.xlane.xlu0 %3729  ;;  %3902 = vst.msk [vmem:[%s6257_s23 + $0x58] sm:$0xff] %vm3890_vm6, %v3733_v40 }
 0x7d9   : > { %3901 = vst.msk [vmem:[%s6257_s23 + $0x50] sm:$0xff] %vm3890_vm6, %v3730_v13  ;;  %3971 = vrot.lane.b32.xlu0 %v9292_v58, %s5260_s9  ;;  %v9324_v58 = vld [vmem:[#allocation31_spill] sm:$0xff] }
 0x7db   : > { %3973 = vrot.lane.b32.xlu1 %v9293_v50, %s5260_s9  ;;  %v3739_v7 = vpop.xlane.xlu1 %3738  ;;  %v9325_v50 = vld [vmem:[#allocation30_spill] sm:$0xff] }
 0x7dc   : > { %v3736_v31 = vpop.xlane.xlu0 %3735  ;;  %3904 = vst.msk [vmem:[%s6257_s23 + $0x68] sm:$0xff] %vm3890_vm6, %v3739_v7 }
 0x7dd   : > { %3903 = vst.msk [vmem:[%s6257_s23 + $0x60] sm:$0xff] %vm3890_vm6, %v3736_v31  ;;  %3975 = vrot.lane.b32.xlu0 %v9294_v11, %s5260_s9  ;;  %v9326_v11 = vld [vmem:[#allocation37_spill] sm:$0xff] }
 0x7df   : > { %3977 = vrot.lane.b32.xlu1 %v9295_v3, %s5260_s9  ;;  %v3745_v48 = vpop.xlane.xlu1 %3744  ;;  %v9327_v3 = vld [vmem:[#allocation36_spill] sm:$0xff] }
 0x7e0   : > { %v3742_v8 = vpop.xlane.xlu0 %3741  ;;  %3906 = vst.msk [vmem:[%s6257_s23 + $0x78] sm:$0xff] %vm3890_vm6, %v3745_v48 }
 0x7e1   : > { %3905 = vst.msk [vmem:[%s6257_s23 + $0x70] sm:$0xff] %vm3890_vm6, %v3742_v8  ;;  %3979 = vrot.lane.b32.xlu0 %v9296_v18, %s5260_s9  ;;  %v9328_v18 = vld [vmem:[#allocation43_spill] sm:$0xff] }
 0x7e3   : > { %3981 = vrot.lane.b32.xlu1 %v9297_v16, %s5260_s9  ;;  %v3751_v27 = vpop.xlane.xlu1 %3750  ;;  %v9329_v16 = vld [vmem:[#allocation42_spill] sm:$0xff] }
 0x7e4   : > { %v3748_v34 = vpop.xlane.xlu0 %3747  ;;  %3908 = vst.msk [vmem:[%s6257_s23 + $0x88] sm:$0xff] %vm3890_vm6, %v3751_v27 }
 0x7e5   : > { %3907 = vst.msk [vmem:[%s6257_s23 + $0x80] sm:$0xff] %vm3890_vm6, %v3748_v34  ;;  %3983 = vrot.lane.b32.xlu0 %v9298_v46, %s5260_s9  ;;  %v9330_v46 = vld [vmem:[#allocation49_spill] sm:$0xff] }
 0x7e7   : > { %3985 = vrot.lane.b32.xlu1 %v9299_v41, %s5260_s9  ;;  %v3757_v35 = vpop.xlane.xlu1 %3756  ;;  %v9331_v41 = vld [vmem:[#allocation48_spill] sm:$0xff] }
 0x7e8   : > { %v3754_v51 = vpop.xlane.xlu0 %3753  ;;  %3910 = vst.msk [vmem:[%s6257_s23 + $0x98] sm:$0xff] %vm3890_vm6, %v3757_v35 }
 0x7e9   : > { %3909 = vst.msk [vmem:[%s6257_s23 + $0x90] sm:$0xff] %vm3890_vm6, %v3754_v51  ;;  %3987 = vrot.lane.b32.xlu0 %v9300_v12, %s5260_s9  ;;  %v9332_v12 = vld [vmem:[#allocation55_spill] sm:$0xff] }
 0x7eb   : > { %3989 = vrot.lane.b32.xlu1 %v9301_v9, %s5260_s9  ;;  %v3763_v49 = vpop.xlane.xlu1 %3762  ;;  %v9333_v9 = vld [vmem:[#allocation54_spill] sm:$0xff] }
 0x7ec   : > { %v3760_v20 = vpop.xlane.xlu0 %3759  ;;  %3912 = vst.msk [vmem:[%s6257_s23 + $0xa8] sm:$0xff] %vm3890_vm6, %v3763_v49 }
 0x7ed   : > { %3911 = vst.msk [vmem:[%s6257_s23 + $0xa0] sm:$0xff] %vm3890_vm6, %v3760_v20  ;;  %3991 = vrot.lane.b32.xlu0 %v9302_v61, %s5260_s9  ;;  %v9334_v61 = vld [vmem:[#allocation61_spill] sm:$0xff] }
 0x7ef   : > { %3993 = vrot.lane.b32.xlu1 %v9303_v2, %s5260_s9  ;;  %v3769_v43 = vpop.xlane.xlu1 %3768  ;;  %v9335_v2 = vld [vmem:[#allocation60_spill] sm:$0xff] }
 0x7f0   : > { %v3766_v19 = vpop.xlane.xlu0 %3765  ;;  %3914 = vst.msk [vmem:[%s6257_s23 + $0xb8] sm:$0xff] %vm3890_vm6, %v3769_v43 }
 0x7f1   : > { %3913 = vst.msk [vmem:[%s6257_s23 + $0xb0] sm:$0xff] %vm3890_vm6, %v3766_v19  ;;  %3995 = vrot.lane.b32.xlu0 %v9304_v10, %s5260_s9  ;;  %v9336_v10 = vld [vmem:[#allocation67_spill] sm:$0xff] }
 0x7f3   : > { %3997 = vrot.lane.b32.xlu1 %v9305_v62, %s5260_s9  ;;  %v3775_v37 = vpop.xlane.xlu1 %3774  ;;  %v9337_v62 = vld [vmem:[#allocation66_spill] sm:$0xff] }
 0x7f4   : > { %v3772_v54 = vpop.xlane.xlu0 %3771  ;;  %3916 = vst.msk [vmem:[%s6257_s23 + $0xc8] sm:$0xff] %vm3890_vm6, %v3775_v37 }
 0x7f5   : > { %3915 = vst.msk [vmem:[%s6257_s23 + $0xc0] sm:$0xff] %vm3890_vm6, %v3772_v54  ;;  %3999 = vrot.lane.b32.xlu0 %v9306_v28, %s5260_s9  ;;  %v9338_v28 = vld [vmem:[#allocation73_spill] sm:$0xff] }
 0x7f7   : > { %4001 = vrot.lane.b32.xlu1 %v9307_v52, %s5260_s9  ;;  %v3781_v60 = vpop.xlane.xlu1 %3780  ;;  %v9339_v52 = vld [vmem:[#allocation72_spill] sm:$0xff] }
 0x7f8   : > { %v3778_v6 = vpop.xlane.xlu0 %3777  ;;  %3918 = vst.msk [vmem:[%s6257_s23 + $0xd8] sm:$0xff] %vm3890_vm6, %v3781_v60 }
 0x7f9   : > { %3917 = vst.msk [vmem:[%s6257_s23 + $0xd0] sm:$0xff] %vm3890_vm6, %v3778_v6  ;;  %4003 = vrot.lane.b32.xlu0 %v9308_v56, %s5260_s9  ;;  %v9340_v56 = vld [vmem:[#allocation79_spill] sm:$0xff] }
 0x7fb   : > { %4005 = vrot.lane.b32.xlu1 %v9309_v42, %s5260_s9  ;;  %v3787_v15 = vpop.xlane.xlu1 %3786  ;;  %v9341_v42 = vld [vmem:[#allocation78_spill] sm:$0xff] }
 0x7fc   : > { %v3784_v32 = vpop.xlane.xlu0 %3783  ;;  %3920 = vst.msk [vmem:[%s6257_s23 + $0xe8] sm:$0xff] %vm3890_vm6, %v3787_v15 }
 0x7fd   : > { %3919 = vst.msk [vmem:[%s6257_s23 + $0xe0] sm:$0xff] %vm3890_vm6, %v3784_v32  ;;  %4007 = vrot.lane.b32.xlu0 %v9310_v38, %s5260_s9  ;;  %v9342_v38 = vld [vmem:[#allocation85_spill] sm:$0xff] }
 0x7ff   : > { %4009 = vrot.lane.b32.xlu1 %v9311_v63, %s5260_s9  ;;  %v3793_v29 = vpop.xlane.xlu1 %3792  ;;  %v9343_v63 = vld [vmem:[#allocation84_spill] sm:$0xff] }
 0x800   : > { %v3790_v17 = vpop.xlane.xlu0 %3789  ;;  %3922 = vst.msk [vmem:[%s6257_s23 + $0xf8] sm:$0xff] %vm3890_vm6, %v3793_v29 }
 0x801   : > { %3921 = vst.msk [vmem:[%s6257_s23 + $0xf0] sm:$0xff] %vm3890_vm6, %v3790_v17  ;;  %4011 = vrot.lane.b32.xlu0 %v9312_v14, %s5260_s9  ;;  %v9344_v14 = vld [vmem:[#allocation91_spill] sm:$0xff] }
 0x803   : > { %4013 = vrot.lane.b32.xlu1 %v9313_v45, %s5260_s9  ;;  %v3799_v59 = vpop.xlane.xlu1 %3798  ;;  %v9345_v45 = vld [vmem:[#allocation90_spill] sm:$0xff] }
 0x804   : > { %v3796_v25 = vpop.xlane.xlu0 %3795  ;;  %3924 = vst.msk [vmem:[%s6257_s23 + $0x108] sm:$0xff] %vm3890_vm6, %v3799_v59 }
 0x805   : > { %3923 = vst.msk [vmem:[%s6257_s23 + $0x100] sm:$0xff] %vm3890_vm6, %v3796_v25  ;;  %4015 = vrot.lane.b32.xlu0 %v9314_v21, %s5260_s9  ;;  %v9346_v21 = vld [vmem:[#allocation98_spill] sm:$0xff] }
 0x807   : > { %4017 = vrot.lane.b32.xlu1 %v9315_v4, %s5260_s9  ;;  %v3805_v39 = vpop.xlane.xlu1 %3804  ;;  %v9347_v4 = vld [vmem:[#allocation97_spill] sm:$0xff] }
 0x808   : > { %v3802_v5 = vpop.xlane.xlu0 %3801  ;;  %3926 = vst.msk [vmem:[%s6257_s23 + $0x118] sm:$0xff] %vm3890_vm6, %v3805_v39 }
 0x809   : > { %3925 = vst.msk [vmem:[%s6257_s23 + $0x110] sm:$0xff] %vm3890_vm6, %v3802_v5  ;;  %4019 = vrot.lane.b32.xlu0 %v9316_v55, %s5260_s9 }
 0x80b   : > { %4021 = vrot.lane.b32.xlu1 %v9317_v26, %s5260_s9  ;;  %v3811_v53 = vpop.xlane.xlu1 %3810 }
 0x80c   : > { %v3808_v33 = vpop.xlane.xlu0 %3807  ;;  %3928 = vst.msk [vmem:[%s6257_s23 + $0x128] sm:$0xff] %vm3890_vm6, %v3811_v53 }
 0x80d   : > { %3927 = vst.msk [vmem:[%s6257_s23 + $0x120] sm:$0xff] %vm3890_vm6, %v3808_v33  ;;  %4023 = vrot.lane.b32.xlu0 %v9318_v0, %s5260_s9 }
 0x80f   : > { %4025 = vrot.lane.b32.xlu1 %v9319_v36, %s5260_s9  ;;  %v3817_v24 = vpop.xlane.xlu1 %3816 }
 0x810   : > { %v3814_v47 = vpop.xlane.xlu0 %3813  ;;  %3930 = vst.msk [vmem:[%s6257_s23 + $0x138] sm:$0xff] %vm3890_vm6, %v3817_v24 }
 0x811   : > { %3929 = vst.msk [vmem:[%s6257_s23 + $0x130] sm:$0xff] %vm3890_vm6, %v3814_v47  ;;  %4027 = vrot.lane.b32.xlu0 %v9320_v1, %s5260_s9 }
 0x813   : > { %4029 = vrot.lane.b32.xlu1 %v9321_v57, %s5260_s9  ;;  %v3823_v44 = vpop.xlane.xlu1 %3822 }
 0x814   : > { %v3820_v22 = vpop.xlane.xlu0 %3819  ;;  %3932 = vst.msk [vmem:[%s6257_s23 + $0x148] sm:$0xff] %vm3890_vm6, %v3823_v44 }
 0x815   : > { %3931 = vst.msk [vmem:[%s6257_s23 + $0x140] sm:$0xff] %vm3890_vm6, %v3820_v22  ;;  %4031 = vrot.lane.b32.xlu0 %v9322_v23, %s5260_s9 }
 0x817   : > { %4033 = vrot.lane.b32.xlu1 %v9323_v30, %s5260_s9  ;;  %v3829_v40 = vpop.xlane.xlu1 %3828 }
 0x818   : > { %v3826_v13 = vpop.xlane.xlu0 %3825  ;;  %3934 = vst.msk [vmem:[%s6257_s23 + $0x158] sm:$0xff] %vm3890_vm6, %v3829_v40 }
 0x819   : > { %3933 = vst.msk [vmem:[%s6257_s23 + $0x150] sm:$0xff] %vm3890_vm6, %v3826_v13  ;;  %4035 = vrot.lane.b32.xlu0 %v9324_v58, %s5260_s9 }
 0x81b   : > { %4037 = vrot.lane.b32.xlu1 %v9325_v50, %s5260_s9  ;;  %v3835_v7 = vpop.xlane.xlu1 %3834 }
 0x81c   : > { %v3832_v31 = vpop.xlane.xlu0 %3831  ;;  %3936 = vst.msk [vmem:[%s6257_s23 + $0x168] sm:$0xff] %vm3890_vm6, %v3835_v7 }
 0x81d   : > { %3935 = vst.msk [vmem:[%s6257_s23 + $0x160] sm:$0xff] %vm3890_vm6, %v3832_v31  ;;  %4039 = vrot.lane.b32.xlu0 %v9326_v11, %s5260_s9 }
 0x81f   : > { %4041 = vrot.lane.b32.xlu1 %v9327_v3, %s5260_s9  ;;  %v3841_v48 = vpop.xlane.xlu1 %3840 }
 0x820   : > { %v3838_v8 = vpop.xlane.xlu0 %3837  ;;  %3938 = vst.msk [vmem:[%s6257_s23 + $0x178] sm:$0xff] %vm3890_vm6, %v3841_v48 }
 0x821   : > { %3937 = vst.msk [vmem:[%s6257_s23 + $0x170] sm:$0xff] %vm3890_vm6, %v3838_v8  ;;  %4043 = vrot.lane.b32.xlu0 %v9328_v18, %s5260_s9 }
 0x823   : > { %4045 = vrot.lane.b32.xlu1 %v9329_v16, %s5260_s9  ;;  %v3847_v27 = vpop.xlane.xlu1 %3846 }
 0x824   : > { %v3844_v34 = vpop.xlane.xlu0 %3843  ;;  %3940 = vst.msk [vmem:[%s6257_s23 + $0x188] sm:$0xff] %vm3890_vm6, %v3847_v27 }
 0x825   : > { %3939 = vst.msk [vmem:[%s6257_s23 + $0x180] sm:$0xff] %vm3890_vm6, %v3844_v34  ;;  %4047 = vrot.lane.b32.xlu0 %v9330_v46, %s5260_s9 }
 0x827   : > { %4049 = vrot.lane.b32.xlu1 %v9331_v41, %s5260_s9  ;;  %v3853_v35 = vpop.xlane.xlu1 %3852 }
 0x828   : > { %v3850_v51 = vpop.xlane.xlu0 %3849  ;;  %3942 = vst.msk [vmem:[%s6257_s23 + $0x198] sm:$0xff] %vm3890_vm6, %v3853_v35 }
 0x829   : > { %3941 = vst.msk [vmem:[%s6257_s23 + $0x190] sm:$0xff] %vm3890_vm6, %v3850_v51  ;;  %4051 = vrot.lane.b32.xlu0 %v9332_v12, %s5260_s9 }
 0x82b   : > { %4053 = vrot.lane.b32.xlu1 %v9333_v9, %s5260_s9  ;;  %v3859_v49 = vpop.xlane.xlu1 %3858 }
 0x82c   : > { %v3856_v20 = vpop.xlane.xlu0 %3855  ;;  %3944 = vst.msk [vmem:[%s6257_s23 + $0x1a8] sm:$0xff] %vm3890_vm6, %v3859_v49 }
 0x82d   : > { %3943 = vst.msk [vmem:[%s6257_s23 + $0x1a0] sm:$0xff] %vm3890_vm6, %v3856_v20  ;;  %4055 = vrot.lane.b32.xlu0 %v9334_v61, %s5260_s9 }
 0x82f   : > { %4057 = vrot.lane.b32.xlu1 %v9335_v2, %s5260_s9  ;;  %v3865_v43 = vpop.xlane.xlu1 %3864 }
 0x830   : > { %v3862_v19 = vpop.xlane.xlu0 %3861  ;;  %3946 = vst.msk [vmem:[%s6257_s23 + $0x1b8] sm:$0xff] %vm3890_vm6, %v3865_v43 }
 0x831   : > { %3945 = vst.msk [vmem:[%s6257_s23 + $0x1b0] sm:$0xff] %vm3890_vm6, %v3862_v19  ;;  %4059 = vrot.lane.b32.xlu0 %v9336_v10, %s5260_s9 }
 0x833   : > { %4061 = vrot.lane.b32.xlu1 %v9337_v62, %s5260_s9  ;;  %v3871_v37 = vpop.xlane.xlu1 %3870 }
 0x834   : > { %v3868_v54 = vpop.xlane.xlu0 %3867  ;;  %3948 = vst.msk [vmem:[%s6257_s23 + $0x1c8] sm:$0xff] %vm3890_vm6, %v3871_v37 }
 0x835   : > { %3947 = vst.msk [vmem:[%s6257_s23 + $0x1c0] sm:$0xff] %vm3890_vm6, %v3868_v54  ;;  %4063 = vrot.lane.b32.xlu0 %v9338_v28, %s5260_s9 }
 0x837   : > { %4065 = vrot.lane.b32.xlu1 %v9339_v52, %s5260_s9  ;;  %v3877_v60 = vpop.xlane.xlu1 %3876 }
 0x838   : > { %v3874_v6 = vpop.xlane.xlu0 %3873  ;;  %3950 = vst.msk [vmem:[%s6257_s23 + $0x1d8] sm:$0xff] %vm3890_vm6, %v3877_v60 }
 0x839   : > { %3949 = vst.msk [vmem:[%s6257_s23 + $0x1d0] sm:$0xff] %vm3890_vm6, %v3874_v6  ;;  %4067 = vrot.lane.b32.xlu0 %v9340_v56, %s5260_s9 }
 0x83b   : > { %4069 = vrot.lane.b32.xlu1 %v9341_v42, %s5260_s9  ;;  %v3883_v15 = vpop.xlane.xlu1 %3882 }
 0x83c   : > { %v3880_v32 = vpop.xlane.xlu0 %3879  ;;  %3952 = vst.msk [vmem:[%s6257_s23 + $0x1e8] sm:$0xff] %vm3890_vm6, %v3883_v15 }
 0x83d   : > { %3951 = vst.msk [vmem:[%s6257_s23 + $0x1e0] sm:$0xff] %vm3890_vm6, %v3880_v32  ;;  %4071 = vrot.lane.b32.xlu0 %v9342_v38, %s5260_s9 }
 0x83f   : > { %4073 = vrot.lane.b32.xlu1 %v9343_v63, %s5260_s9  ;;  %v3889_v29 = vpop.xlane.xlu1 %3888 }
 0x840   : > { %v3886_v17 = vpop.xlane.xlu0 %3885  ;;  %3954 = vst.msk [vmem:[%s6257_s23 + $0x1f8] sm:$0xff] %vm3890_vm6, %v3889_v29 }
 0x841   : > { %3953 = vst.msk [vmem:[%s6257_s23 + $0x1f0] sm:$0xff] %vm3890_vm6, %v3886_v17  ;;  %4075 = vrot.lane.b32.xlu0 %v9344_v14, %s5260_s9 }
 0x843   : > { %4077 = vrot.lane.b32.xlu1 %v9345_v45, %s5260_s9  ;;  %v3958_v59 = vpop.permute.xlu1 %3957 }
 0x844   : > { %v3956_v25 = vpop.permute.xlu0 %3955  ;;  %v4150_v7 = vsel %vm1070_vm2, %v3958_v59, 0.0 }
 0x845   : > { %4079 = vrot.lane.b32.xlu0 %v9346_v21, %s5260_s9  ;;  %v4147_v23 = vsel %vm1070_vm2, %v3956_v25, 0.0 }
 0x847   : > { %4081 = vrot.lane.b32.xlu1 %v9347_v4, %s5260_s9  ;;  %v3960_v39 = vpop.permute.xlu1 %3959 }
 0x848   : > { %v3964_v5 = vpop.permute.xlu0 %3963  ;;  %v4153_v13 = vsel %vm1070_vm2, %v3960_v39, 0.0 }
 0x849   : > { %v4159_v8 = vsel %vm1070_vm2, %v3964_v5, 0.0 }
 0x84b   : > { %v3962_v55 = vpop.permute.xlu1 %3961 }
 0x84c   : > { %v3968_v26 = vpop.permute.xlu0 %3967  ;;  %v4156_v31 = vsel %vm1070_vm2, %v3962_v55, 0.0 }
 0x84d   : > { %v4165_v34 = vsel %vm1070_vm2, %v3968_v26, 0.0 }
 0x84f   : > { %v3966_v53 = vpop.permute.xlu1 %3965 }
 0x850   : > { %v3972_v33 = vpop.permute.xlu0 %3971  ;;  %v4162_v48 = vsel %vm1070_vm2, %v3966_v53, 0.0 }
 0x851   : > { %v4171_v51 = vsel %vm1070_vm2, %v3972_v33, 0.0 }
 0x853   : > { %v3970_v0 = vpop.permute.xlu1 %3969 }
 0x854   : > { %v3976_v36 = vpop.permute.xlu0 %3975  ;;  %v4168_v27 = vsel %vm1070_vm2, %v3970_v0, 0.0 }
 0x855   : > { %v4177_v20 = vsel %vm1070_vm2, %v3976_v36, 0.0 }
 0x857   : > { %v3974_v24 = vpop.permute.xlu1 %3973 }
 0x858   : > { %v3980_v47 = vpop.permute.xlu0 %3979  ;;  %v4174_v35 = vsel %vm1070_vm2, %v3974_v24, 0.0 }
 0x859   : > { %v4183_v43 = vsel %vm1070_vm2, %v3980_v47, 0.0 }
 0x85b   : > { %v3978_v1 = vpop.permute.xlu1 %3977 }
 0x85c   : > { %v3984_v57 = vpop.permute.xlu0 %3983  ;;  %v4180_v49 = vsel %vm1070_vm2, %v3978_v1, 0.0 }
 0x85d   : > { %v4189_v37 = vsel %vm1070_vm2, %v3984_v57, 0.0 }
 0x85f   : > { %v3982_v44 = vpop.permute.xlu1 %3981 }
 0x860   : > { %v3988_v22 = vpop.permute.xlu0 %3987  ;;  %v4186_v2 = vsel %vm1070_vm2, %v3982_v44, 0.0 }
 0x861   : > { %v4195_v60 = vsel %vm1070_vm2, %v3988_v22, 0.0 }
 0x863   : > { %v3986_v30 = vpop.permute.xlu1 %3985 }
 0x864   : > { %4148 = vadd.xlane.f32.xlu0 %v4147_v23  ;;  %v3992_v40 = vpop.permute.xlu0 %3991  ;;  %v4192_v62 = vsel %vm1070_vm2, %v3986_v30, 0.0 }
 0x865   : > { %v4201_v42 = vsel %vm1070_vm2, %v3992_v40, 0.0 }
 0x867   : > { %v3990_v58 = vpop.permute.xlu1 %3989 }
 0x868   : > { %4154 = vadd.xlane.f32.xlu0 %v4153_v13  ;;  %v3996_v50 = vpop.permute.xlu0 %3995  ;;  %v4198_v52 = vsel %vm1070_vm2, %v3990_v58, 0.0 }
 0x869   : > { %v4207_v63 = vsel %vm1070_vm2, %v3996_v50, 0.0 }
 0x86b   : > { %4151 = vadd.xlane.f32.xlu1 %v4150_v7  ;;  %v3994_v11 = vpop.permute.xlu1 %3993 }
 0x86c   : > { %4157 = vadd.xlane.f32.xlu0 %v4156_v31  ;;  %v4000_v3 = vpop.permute.xlu0 %3999  ;;  %v4204_v56 = vsel %vm1070_vm2, %v3994_v11, 0.0 }
 0x86d   : > { %v4213_v45 = vsel %vm1070_vm2, %v4000_v3, 0.0 }
 0x86f   : > { %4163 = vadd.xlane.f32.xlu1 %v4162_v48  ;;  %v3998_v18 = vpop.permute.xlu1 %3997 }
 0x870   : > { %4160 = vadd.xlane.f32.xlu0 %v4159_v8  ;;  %v4004_v16 = vpop.permute.xlu0 %4003  ;;  %v4210_v38 = vsel %vm1070_vm2, %v3998_v18, 0.0 }
 0x871   : > { %v4219_v25 = vsel %vm1070_vm2, %v4004_v16, 0.0 }
 0x873   : > { %4169 = vadd.xlane.f32.xlu1 %v4168_v27  ;;  %v4002_v46 = vpop.permute.xlu1 %4001 }
 0x874   : > { %4166 = vadd.xlane.f32.xlu0 %v4165_v34  ;;  %v4008_v41 = vpop.permute.xlu0 %4007  ;;  %v4216_v14 = vsel %vm1070_vm2, %v4002_v46, 0.0 }
 0x875   : > { %v4225_v5 = vsel %vm1070_vm2, %v4008_v41, 0.0 }
 0x877   : > { %4175 = vadd.xlane.f32.xlu1 %v4174_v35  ;;  %v4006_v12 = vpop.permute.xlu1 %4005 }
 0x878   : > { %4172 = vadd.xlane.f32.xlu0 %v4171_v51  ;;  %v4012_v9 = vpop.permute.xlu0 %4011  ;;  %v4222_v59 = vsel %vm1070_vm2, %v4006_v12, 0.0 }
 0x879   : > { %v4231_v33 = vsel %vm1070_vm2, %v4012_v9, 0.0 }
 0x87b   : > { %4181 = vadd.xlane.f32.xlu1 %v4180_v49  ;;  %v4010_v61 = vpop.permute.xlu1 %4009 }
 0x87c   : > { %4178 = vadd.xlane.f32.xlu0 %v4177_v20  ;;  %v4016_v19 = vpop.permute.xlu0 %4015  ;;  %v4228_v39 = vsel %vm1070_vm2, %v4010_v61, 0.0 }
 0x87d   : > { %v4237_v36 = vsel %vm1070_vm2, %v4016_v19, 0.0 }
 0x87f   : > { %4187 = vadd.xlane.f32.xlu1 %v4186_v2  ;;  %v4014_v10 = vpop.permute.xlu1 %4013 }
 0x880   : > { %4184 = vadd.xlane.f32.xlu0 %v4183_v43  ;;  %v4020_v28 = vpop.permute.xlu0 %4019  ;;  %v4234_v53 = vsel %vm1070_vm2, %v4014_v10, 0.0 }
 0x881   : > { %v4243_v1 = vsel %vm1070_vm2, %v4020_v28, 0.0 }
 0x883   : > { %4193 = vadd.xlane.f32.xlu1 %v4192_v62  ;;  %v4018_v54 = vpop.permute.xlu1 %4017 }
 0x884   : > { %4190 = vadd.xlane.f32.xlu0 %v4189_v37  ;;  %v4024_v15 = vpop.permute.xlu0 %4023  ;;  %v4240_v0 = vsel %vm1070_vm2, %v4018_v54, 0.0 }
 0x885   : > { %v4249_v23 = vsel %vm1070_vm2, %v4024_v15, 0.0 }
 0x887   : > { %4199 = vadd.xlane.f32.xlu1 %v4198_v52  ;;  %v4022_v6 = vpop.permute.xlu1 %4021 }
 0x888   : > { %4196 = vadd.xlane.f32.xlu0 %v4195_v60  ;;  %v4028_v29 = vpop.permute.xlu0 %4027  ;;  %v4246_v57 = vsel %vm1070_vm2, %v4022_v6, 0.0 }
 0x889   : > { %v4255_v40 = vsel %vm1070_vm2, %v4028_v29, 0.0 }
 0x88b   : > { %4205 = vadd.xlane.f32.xlu1 %v4204_v56  ;;  %v4026_v32 = vpop.permute.xlu1 %4025 }
 0x88c   : > { %4202 = vadd.xlane.f32.xlu0 %v4201_v42  ;;  %v4032_v21 = vpop.permute.xlu0 %4031  ;;  %v4252_v30 = vsel %vm1070_vm2, %v4026_v32, 0.0 }
 0x88d   : > { %v4261_v7 = vsel %vm1070_vm2, %v4032_v21, 0.0 }
 0x88f   : > { %4211 = vadd.xlane.f32.xlu1 %v4210_v38  ;;  %v4030_v17 = vpop.permute.xlu1 %4029 }
 0x890   : > { %4208 = vadd.xlane.f32.xlu0 %v4207_v63  ;;  %v4036_v55 = vpop.permute.xlu0 %4035  ;;  %v4258_v13 = vsel %vm1070_vm2, %v4030_v17, 0.0 }
 0x891   : > { %v4267_v48 = vsel %vm1070_vm2, %v4036_v55, 0.0 }
 0x893   : > { %4217 = vadd.xlane.f32.xlu1 %v4216_v14  ;;  %v4034_v4 = vpop.permute.xlu1 %4033 }
 0x894   : > { %4214 = vadd.xlane.f32.xlu0 %v4213_v45  ;;  %v4040_v24 = vpop.permute.xlu0 %4039  ;;  %v4264_v31 = vsel %vm1070_vm2, %v4034_v4, 0.0 }
 0x895   : > { %v4273_v18 = vsel %vm1070_vm2, %v4040_v24, 0.0 }
 0x897   : > { %4223 = vadd.xlane.f32.xlu1 %v4222_v59  ;;  %v4038_v26 = vpop.permute.xlu1 %4037 }
 0x898   : > { %4220 = vadd.xlane.f32.xlu0 %v4219_v25  ;;  %v4044_v44 = vpop.permute.xlu0 %4043  ;;  %v4270_v8 = vsel %vm1070_vm2, %v4038_v26, 0.0 }
 0x899   : > { %v4279_v46 = vsel %vm1070_vm2, %v4044_v44, 0.0 }
 0x89b   : > { %4229 = vadd.xlane.f32.xlu1 %v4228_v39  ;;  %v4042_v47 = vpop.permute.xlu1 %4041 }
 0x89c   : > { %4226 = vadd.xlane.f32.xlu0 %v4225_v5  ;;  %v4048_v58 = vpop.permute.xlu0 %4047  ;;  %v4276_v16 = vsel %vm1070_vm2, %v4042_v47, 0.0 }
 0x89d   : > { %v4285_v12 = vsel %vm1070_vm2, %v4048_v58, 0.0 }
 0x89f   : > { %4235 = vadd.xlane.f32.xlu1 %v4234_v53  ;;  %v4046_v22 = vpop.permute.xlu1 %4045 }
 0x8a0   : > { %4232 = vadd.xlane.f32.xlu0 %v4231_v33  ;;  %v4052_v11 = vpop.permute.xlu0 %4051  ;;  %v4282_v41 = vsel %vm1070_vm2, %v4046_v22, 0.0 }
 0x8a1   : > { %v4291_v49 = vsel %vm1070_vm2, %v4052_v11, 0.0 }
 0x8a3   : > { %4241 = vadd.xlane.f32.xlu1 %v4240_v0  ;;  %v4050_v50 = vpop.permute.xlu1 %4049 }
 0x8a4   : > { %4238 = vadd.xlane.f32.xlu0 %v4237_v36  ;;  %v4056_v27 = vpop.permute.xlu0 %4055  ;;  %v4288_v9 = vsel %vm1070_vm2, %v4050_v50, 0.0 }
 0x8a5   : > { %v4297_v43 = vsel %vm1070_vm2, %v4056_v27, 0.0 }
 0x8a7   : > { %4247 = vadd.xlane.f32.xlu1 %v4246_v57  ;;  %v4054_v3 = vpop.permute.xlu1 %4053 }
 0x8a8   : > { %4244 = vadd.xlane.f32.xlu0 %v4243_v1  ;;  %v4060_v35 = vpop.permute.xlu0 %4059  ;;  %v4294_v20 = vsel %vm1070_vm2, %v4054_v3, 0.0 }
 0x8a9   : > { %v4303_v37 = vsel %vm1070_vm2, %v4060_v35, 0.0 }
 0x8ab   : > { %4253 = vadd.xlane.f32.xlu1 %v4252_v30  ;;  %v4058_v34 = vpop.permute.xlu1 %4057 }
 0x8ac   : > { %4250 = vadd.xlane.f32.xlu0 %v4249_v23  ;;  %v4064_v61 = vpop.permute.xlu0 %4063  ;;  %v4300_v19 = vsel %vm1070_vm2, %v4058_v34, 0.0 }
 0x8ad   : > { %v4309_v28 = vsel %vm1070_vm2, %v4064_v61, 0.0 }
 0x8af   : > { %4259 = vadd.xlane.f32.xlu1 %v4258_v13  ;;  %v4062_v51 = vpop.permute.xlu1 %4061 }
 0x8b0   : > { %4256 = vadd.xlane.f32.xlu0 %v4255_v40  ;;  %v4068_v10 = vpop.permute.xlu0 %4067  ;;  %v4306_v54 = vsel %vm1070_vm2, %v4062_v51, 0.0 }
 0x8b1   : > { %v4315_v56 = vsel %vm1070_vm2, %v4068_v10, 0.0 }
 0x8b3   : > { %4265 = vadd.xlane.f32.xlu1 %v4264_v31  ;;  %v4066_v2 = vpop.permute.xlu1 %4065 }
 0x8b4   : > { %4262 = vadd.xlane.f32.xlu0 %v4261_v7  ;;  %v4312_v52 = vsel %vm1070_vm2, %v4066_v2, 0.0  ;;  %v4072_v60 = vpop.permute.xlu0 %4071 }
 0x8b5   : > { %v4321_v38 = vsel %vm1070_vm2, %v4072_v60, 0.0 }
 0x8b7   : > { %4271 = vadd.xlane.f32.xlu1 %v4270_v8  ;;  %v4070_v62 = vpop.permute.xlu1 %4069 }
 0x8b8   : > { %4268 = vadd.xlane.f32.xlu0 %v4267_v48  ;;  %v4318_v42 = vsel %vm1070_vm2, %v4070_v62, 0.0  ;;  %v4076_v15 = vpop.permute.xlu0 %4075 }
 0x8b9   : > { %v4327_v29 = vsel %vm1070_vm2, %v4076_v15, 0.0 }
 0x8bb   : > { %4277 = vadd.xlane.f32.xlu1 %v4276_v16  ;;  %v4074_v6 = vpop.permute.xlu1 %4073 }
 0x8bc   : > { %4274 = vadd.xlane.f32.xlu0 %v4273_v18  ;;  %v4324_v63 = vsel %vm1070_vm2, %v4074_v6, 0.0  ;;  %v4080_v14 = vpop.permute.xlu0 %4079 }
 0x8bd   : > { %v4333_v59 = vsel %vm1070_vm2, %v4080_v14, 0.0 }
 0x8bf   : > { %4283 = vadd.xlane.f32.xlu1 %v4282_v41  ;;  %v4078_v32 = vpop.permute.xlu1 %4077 }
 0x8c0   : > { %4280 = vadd.xlane.f32.xlu0 %v4279_v46  ;;  %v4330_v17 = vsel %vm1070_vm2, %v4078_v32, 0.0 }
 0x8c3   : > { %4289 = vadd.xlane.f32.xlu1 %v4288_v9  ;;  %v4082_v45 = vpop.permute.xlu1 %4081 }
 0x8c4   : > { %4286 = vadd.xlane.f32.xlu0 %v4285_v12  ;;  %v4336_v25 = vsel %vm1070_vm2, %v4082_v45, 0.0 }
 0x8c7   : > { %4295 = vadd.xlane.f32.xlu1 %v4294_v20 }
 0x8c8   : > { %4292 = vadd.xlane.f32.xlu0 %v4291_v49 }
 0x8cb   : > { %4301 = vadd.xlane.f32.xlu1 %v4300_v19 }
 0x8cc   : > { %4298 = vadd.xlane.f32.xlu0 %v4297_v43 }
 0x8cf   : > { %4307 = vadd.xlane.f32.xlu1 %v4306_v54 }
 0x8d0   : > { %4304 = vadd.xlane.f32.xlu0 %v4303_v37 }
 0x8d3   : > { %4313 = vadd.xlane.f32.xlu1 %v4312_v52 }
 0x8d4   : > { %4310 = vadd.xlane.f32.xlu0 %v4309_v28 }
 0x8d7   : > { %4319 = vadd.xlane.f32.xlu1 %v4318_v42 }
 0x8d8   : > { %4316 = vadd.xlane.f32.xlu0 %v4315_v56 }
 0x8db   : > { %4325 = vadd.xlane.f32.xlu1 %v4324_v63 }
 0x8dc   : > { %4322 = vadd.xlane.f32.xlu0 %v4321_v38 }
 0x8df   : > { %4331 = vadd.xlane.f32.xlu1 %v4330_v17 }
 0x8e0   : > { %4328 = vadd.xlane.f32.xlu0 %v4327_v29 }
 0x8e3   : > { %4337 = vadd.xlane.f32.xlu1 %v4336_v25 }
 0x8e4   : > { %4334 = vadd.xlane.f32.xlu0 %v4333_v59 }
 0x8ed   : > { %v4149_v21 = vpop.xlane.xlu0 %4148 }
 0x8ee   : > { %4339 = vst.msk [vmem:[%s6279_s26] sm:$0xff] %vm3890_vm6, %v4149_v21 }
 0x8f1   : > { %v4155_v4 = vpop.xlane.xlu0 %4154 }
 0x8f2   : > { %4341 = vst.msk [vmem:[%s6279_s26 + $0x10] sm:$0xff] %vm3890_vm6, %v4155_v4 }
 0x8f4   : > { %v4152_v39 = vpop.xlane.xlu1 %4151 }
 0x8f5   : > { %v4158_v5 = vpop.xlane.xlu0 %4157  ;;  %4340 = vst.msk [vmem:[%s6279_s26 + $0x8] sm:$0xff] %vm3890_vm6, %v4152_v39 }
 0x8f6   : > { %4342 = vst.msk [vmem:[%s6279_s26 + $0x18] sm:$0xff] %vm3890_vm6, %v4158_v5 }
 0x8f8   : > { %v4164_v55 = vpop.xlane.xlu1 %4163 }
 0x8f9   : > { %v4161_v26 = vpop.xlane.xlu0 %4160  ;;  %4344 = vst.msk [vmem:[%s6279_s26 + $0x28] sm:$0xff] %vm3890_vm6, %v4164_v55 }
 0x8fa   : > { %4343 = vst.msk [vmem:[%s6279_s26 + $0x20] sm:$0xff] %vm3890_vm6, %v4161_v26 }
 0x8fc   : > { %v4170_v53 = vpop.xlane.xlu1 %4169 }
 0x8fd   : > { %v4167_v33 = vpop.xlane.xlu0 %4166  ;;  %4346 = vst.msk [vmem:[%s6279_s26 + $0x38] sm:$0xff] %vm3890_vm6, %v4170_v53 }
 0x8fe   : > { %4345 = vst.msk [vmem:[%s6279_s26 + $0x30] sm:$0xff] %vm3890_vm6, %v4167_v33 }
 0x900   : > { %v4176_v0 = vpop.xlane.xlu1 %4175 }
 0x901   : > { %v4173_v36 = vpop.xlane.xlu0 %4172  ;;  %4348 = vst.msk [vmem:[%s6279_s26 + $0x48] sm:$0xff] %vm3890_vm6, %v4176_v0 }
 0x902   : > { %4347 = vst.msk [vmem:[%s6279_s26 + $0x40] sm:$0xff] %vm3890_vm6, %v4173_v36 }
 0x904   : > { %v4182_v24 = vpop.xlane.xlu1 %4181 }
 0x905   : > { %v4179_v47 = vpop.xlane.xlu0 %4178  ;;  %4350 = vst.msk [vmem:[%s6279_s26 + $0x58] sm:$0xff] %vm3890_vm6, %v4182_v24 }
 0x906   : > { %4349 = vst.msk [vmem:[%s6279_s26 + $0x50] sm:$0xff] %vm3890_vm6, %v4179_v47 }
 0x908   : > { %v4188_v1 = vpop.xlane.xlu1 %4187 }
 0x909   : > { %v4185_v57 = vpop.xlane.xlu0 %4184  ;;  %4352 = vst.msk [vmem:[%s6279_s26 + $0x68] sm:$0xff] %vm3890_vm6, %v4188_v1 }
 0x90a   : > { %4351 = vst.msk [vmem:[%s6279_s26 + $0x60] sm:$0xff] %vm3890_vm6, %v4185_v57 }
 0x90c   : > { %v4194_v44 = vpop.xlane.xlu1 %4193 }
 0x90d   : > { %v4191_v22 = vpop.xlane.xlu0 %4190  ;;  %4354 = vst.msk [vmem:[%s6279_s26 + $0x78] sm:$0xff] %vm3890_vm6, %v4194_v44 }
 0x90e   : > { %4353 = vst.msk [vmem:[%s6279_s26 + $0x70] sm:$0xff] %vm3890_vm6, %v4191_v22 }
 0x910   : > { %v4200_v23 = vpop.xlane.xlu1 %4199 }
 0x911   : > { %v4197_v30 = vpop.xlane.xlu0 %4196  ;;  %4356 = vst.msk [vmem:[%s6279_s26 + $0x88] sm:$0xff] %vm3890_vm6, %v4200_v23 }
 0x912   : > { %4355 = vst.msk [vmem:[%s6279_s26 + $0x80] sm:$0xff] %vm3890_vm6, %v4197_v30 }
 0x914   : > { %v4206_v40 = vpop.xlane.xlu1 %4205 }
 0x915   : > { %v4203_v13 = vpop.xlane.xlu0 %4202  ;;  %4358 = vst.msk [vmem:[%s6279_s26 + $0x98] sm:$0xff] %vm3890_vm6, %v4206_v40 }
 0x916   : > { %4357 = vst.msk [vmem:[%s6279_s26 + $0x90] sm:$0xff] %vm3890_vm6, %v4203_v13 }
 0x918   : > { %v4212_v58 = vpop.xlane.xlu1 %4211 }
 0x919   : > { %v4209_v50 = vpop.xlane.xlu0 %4208  ;;  %4360 = vst.msk [vmem:[%s6279_s26 + $0xa8] sm:$0xff] %vm3890_vm6, %v4212_v58 }
 0x91a   : > { %4359 = vst.msk [vmem:[%s6279_s26 + $0xa0] sm:$0xff] %vm3890_vm6, %v4209_v50 }
 0x91c   : > { %v4218_v7 = vpop.xlane.xlu1 %4217 }
 0x91d   : > { %v4215_v31 = vpop.xlane.xlu0 %4214  ;;  %4362 = vst.msk [vmem:[%s6279_s26 + $0xb8] sm:$0xff] %vm3890_vm6, %v4218_v7 }
 0x91e   : > { %4361 = vst.msk [vmem:[%s6279_s26 + $0xb0] sm:$0xff] %vm3890_vm6, %v4215_v31 }
 0x920   : > { %v4224_v11 = vpop.xlane.xlu1 %4223 }
 0x921   : > { %v4221_v3 = vpop.xlane.xlu0 %4220  ;;  %4364 = vst.msk [vmem:[%s6279_s26 + $0xc8] sm:$0xff] %vm3890_vm6, %v4224_v11 }
 0x922   : > { %4363 = vst.msk [vmem:[%s6279_s26 + $0xc0] sm:$0xff] %vm3890_vm6, %v4221_v3 }
 0x924   : > { %v4230_v48 = vpop.xlane.xlu1 %4229 }
 0x925   : > { %v4227_v8 = vpop.xlane.xlu0 %4226  ;;  %4366 = vst.msk [vmem:[%s6279_s26 + $0xd8] sm:$0xff] %vm3890_vm6, %v4230_v48 }
 0x926   : > { %4365 = vst.msk [vmem:[%s6279_s26 + $0xd0] sm:$0xff] %vm3890_vm6, %v4227_v8 }
 0x928   : > { %v4236_v18 = vpop.xlane.xlu1 %4235 }
 0x929   : > { %v4233_v16 = vpop.xlane.xlu0 %4232  ;;  %4368 = vst.msk [vmem:[%s6279_s26 + $0xe8] sm:$0xff] %vm3890_vm6, %v4236_v18 }
 0x92a   : > { %4367 = vst.msk [vmem:[%s6279_s26 + $0xe0] sm:$0xff] %vm3890_vm6, %v4233_v16 }
 0x92c   : > { %v4242_v27 = vpop.xlane.xlu1 %4241 }
 0x92d   : > { %v4239_v34 = vpop.xlane.xlu0 %4238  ;;  %4370 = vst.msk [vmem:[%s6279_s26 + $0xf8] sm:$0xff] %vm3890_vm6, %v4242_v27 }
 0x92e   : > { %4369 = vst.msk [vmem:[%s6279_s26 + $0xf0] sm:$0xff] %vm3890_vm6, %v4239_v34 }
 0x930   : > { %v4248_v46 = vpop.xlane.xlu1 %4247 }
 0x931   : > { %v4245_v41 = vpop.xlane.xlu0 %4244  ;;  %4372 = vst.msk [vmem:[%s6279_s26 + $0x108] sm:$0xff] %vm3890_vm6, %v4248_v46 }
 0x932   : > { %4371 = vst.msk [vmem:[%s6279_s26 + $0x100] sm:$0xff] %vm3890_vm6, %v4245_v41 }
 0x934   : > { %v4254_v35 = vpop.xlane.xlu1 %4253 }
 0x935   : > { %v4251_v51 = vpop.xlane.xlu0 %4250  ;;  %4374 = vst.msk [vmem:[%s6279_s26 + $0x118] sm:$0xff] %vm3890_vm6, %v4254_v35 }
 0x936   : > { %4373 = vst.msk [vmem:[%s6279_s26 + $0x110] sm:$0xff] %vm3890_vm6, %v4251_v51 }
 0x938   : > { %v4260_v12 = vpop.xlane.xlu1 %4259 }
 0x939   : > { %v4257_v9 = vpop.xlane.xlu0 %4256  ;;  %4376 = vst.msk [vmem:[%s6279_s26 + $0x128] sm:$0xff] %vm3890_vm6, %v4260_v12 }
 0x93a   : > { %4375 = vst.msk [vmem:[%s6279_s26 + $0x120] sm:$0xff] %vm3890_vm6, %v4257_v9 }
 0x93c   : > { %v4266_v49 = vpop.xlane.xlu1 %4265 }
 0x93d   : > { %v4263_v20 = vpop.xlane.xlu0 %4262  ;;  %4378 = vst.msk [vmem:[%s6279_s26 + $0x138] sm:$0xff] %vm3890_vm6, %v4266_v49 }
 0x93e   : > { %4377 = vst.msk [vmem:[%s6279_s26 + $0x130] sm:$0xff] %vm3890_vm6, %v4263_v20 }
 0x940   : > { %v4272_v61 = vpop.xlane.xlu1 %4271 }
 0x941   : > { %v4269_v2 = vpop.xlane.xlu0 %4268  ;;  %4380 = vst.msk [vmem:[%s6279_s26 + $0x148] sm:$0xff] %vm3890_vm6, %v4272_v61 }
 0x942   : > { %4379 = vst.msk [vmem:[%s6279_s26 + $0x140] sm:$0xff] %vm3890_vm6, %v4269_v2 }
 0x944   : > { %v4278_v43 = vpop.xlane.xlu1 %4277 }
 0x945   : > { %v4275_v19 = vpop.xlane.xlu0 %4274  ;;  %4382 = vst.msk [vmem:[%s6279_s26 + $0x158] sm:$0xff] %vm3890_vm6, %v4278_v43 }
 0x946   : > { %4381 = vst.msk [vmem:[%s6279_s26 + $0x150] sm:$0xff] %vm3890_vm6, %v4275_v19 }
 0x948   : > { %v4284_v10 = vpop.xlane.xlu1 %4283 }
 0x949   : > { %v4281_v62 = vpop.xlane.xlu0 %4280  ;;  %4384 = vst.msk [vmem:[%s6279_s26 + $0x168] sm:$0xff] %vm3890_vm6, %v4284_v10 }
 0x94a   : > { %4383 = vst.msk [vmem:[%s6279_s26 + $0x160] sm:$0xff] %vm3890_vm6, %v4281_v62 }
 0x94c   : > { %v4290_v37 = vpop.xlane.xlu1 %4289 }
 0x94d   : > { %v4287_v54 = vpop.xlane.xlu0 %4286  ;;  %4386 = vst.msk [vmem:[%s6279_s26 + $0x178] sm:$0xff] %vm3890_vm6, %v4290_v37 }
 0x94e   : > { %4385 = vst.msk [vmem:[%s6279_s26 + $0x170] sm:$0xff] %vm3890_vm6, %v4287_v54 }
 0x950   : > { %v4296_v28 = vpop.xlane.xlu1 %4295 }
 0x951   : > { %v4293_v52 = vpop.xlane.xlu0 %4292  ;;  %4388 = vst.msk [vmem:[%s6279_s26 + $0x188] sm:$0xff] %vm3890_vm6, %v4296_v28 }
 0x952   : > { %4387 = vst.msk [vmem:[%s6279_s26 + $0x180] sm:$0xff] %vm3890_vm6, %v4293_v52 }
 0x954   : > { %v4302_v60 = vpop.xlane.xlu1 %4301 }
 0x955   : > { %v4299_v6 = vpop.xlane.xlu0 %4298  ;;  %4390 = vst.msk [vmem:[%s6279_s26 + $0x198] sm:$0xff] %vm3890_vm6, %v4302_v60 }
 0x956   : > { %4389 = vst.msk [vmem:[%s6279_s26 + $0x190] sm:$0xff] %vm3890_vm6, %v4299_v6 }
 0x958   : > { %v4308_v56 = vpop.xlane.xlu1 %4307 }
 0x959   : > { %v4305_v42 = vpop.xlane.xlu0 %4304  ;;  %4392 = vst.msk [vmem:[%s6279_s26 + $0x1a8] sm:$0xff] %vm3890_vm6, %v4308_v56 }
 0x95a   : > { %4391 = vst.msk [vmem:[%s6279_s26 + $0x1a0] sm:$0xff] %vm3890_vm6, %v4305_v42 }
 0x95c   : > { %v4314_v15 = vpop.xlane.xlu1 %4313 }
 0x95d   : > { %v4311_v32 = vpop.xlane.xlu0 %4310  ;;  %4394 = vst.msk [vmem:[%s6279_s26 + $0x1b8] sm:$0xff] %vm3890_vm6, %v4314_v15 }
 0x95e   : > { %4393 = vst.msk [vmem:[%s6279_s26 + $0x1b0] sm:$0xff] %vm3890_vm6, %v4311_v32 }
 0x960   : > { %v4320_v38 = vpop.xlane.xlu1 %4319 }
 0x961   : > { %v4317_v63 = vpop.xlane.xlu0 %4316  ;;  %4396 = vst.msk [vmem:[%s6279_s26 + $0x1c8] sm:$0xff] %vm3890_vm6, %v4320_v38 }
 0x962   : > { %4395 = vst.msk [vmem:[%s6279_s26 + $0x1c0] sm:$0xff] %vm3890_vm6, %v4317_v63 }
 0x964   : > { %v4326_v29 = vpop.xlane.xlu1 %4325 }
 0x965   : > { %v4323_v17 = vpop.xlane.xlu0 %4322  ;;  %4398 = vst.msk [vmem:[%s6279_s26 + $0x1d8] sm:$0xff] %vm3890_vm6, %v4326_v29 }
 0x966   : > { %4397 = vst.msk [vmem:[%s6279_s26 + $0x1d0] sm:$0xff] %vm3890_vm6, %v4323_v17 }
 0x968   : > { %v4332_v14 = vpop.xlane.xlu1 %4331 }
 0x969   : > { %v4329_v45 = vpop.xlane.xlu0 %4328  ;;  %4400 = vst.msk [vmem:[%s6279_s26 + $0x1e8] sm:$0xff] %vm3890_vm6, %v4332_v14 }
 0x96a   : > { %4399 = vst.msk [vmem:[%s6279_s26 + $0x1e0] sm:$0xff] %vm3890_vm6, %v4329_v45 }
 0x96c   : > { %v4338_v59 = vpop.xlane.xlu1 %4337 }
 0x96d   : > { %v4335_v25 = vpop.xlane.xlu0 %4334  ;;  %4402 = vst.msk [vmem:[%s6279_s26 + $0x1f8] sm:$0xff] %vm3890_vm6, %v4338_v59 }
 0x96e   : > { %4401 = vst.msk [vmem:[%s6279_s26 + $0x1f0] sm:$0xff] %vm3890_vm6, %v4335_v25 }
 0x96f PF: > { %s17_s21 = sadd.s32 1, %s5256_s21  }
 0x970   : > { %p14_p4 = scmp.ge.s32.totalorder %s17_s21, 4  }
 0x972   :  { %16 = sbr.rel (!%p14_p4) target bundleno = 1 (0x1), region = 90 }

</bundles_post_ra>
